<compile_context>
chip_gen: v7x
topology: tpu7x:2x2x1
jax: 0.10.0
libtpu: 0.0.40
codegen_flags: <defaults>
</compile_context>

<pallas_src>
import functools
import math

import jax
import jax.numpy as jnp
from jax.experimental import pallas as pl
from jax.experimental.pallas import tpu as pltpu

_BN_EPS = 1e-5
_TILE_ROWS = 256  # row tile (multiple of 8); grid axis is "parallel"


# ----------------------------------------------------------------------------
# Pallas kernels
# ----------------------------------------------------------------------------
def _matmul_bn_silu_kernel(x_ref, w_ref, s_ref, b_ref, o_ref):
    """y = silu((x @ w) * scale + bias); single MXU dot, f32 epilogue.

    x_ref : (TILE, K)   bf16 im2col patches / activations
    w_ref : (K, N)      bf16 weights (9 conv taps folded into K)
    s_ref : (1, N)      f32 folded-BN scale
    b_ref : (1, N)      f32 folded (conv bias + BN) bias
    o_ref : (TILE, N)   bf16
    """
    acc = jnp.dot(x_ref[...], w_ref[...], preferred_element_type=jnp.float32)
    y = acc * s_ref[...] + b_ref[...]
    y = y * jax.nn.sigmoid(y)
    o_ref[...] = y.astype(o_ref.dtype)


def _head_kernel(x_ref, w_ref, b_ref, o_ref, *, num_classes):
    """Fused 1x1 heads: y = x @ w + b; softmax over the first `num_classes`
    lanes (the class logits), all other lanes (reg / mask kernel / mask feat /
    padding) are passed through raw.

    x_ref : (TILE, 4*F)     bf16
    w_ref : (4*F, N_pad)    bf16 block-structured head weight
    b_ref : (1, N_pad)      f32
    o_ref : (TILE, N_pad)   f32
    """
    y = jnp.dot(x_ref[...], w_ref[...], preferred_element_type=jnp.float32)
    y = y + b_ref[...]
    lane = jax.lax.broadcasted_iota(jnp.int32, y.shape, 1)
    cls_mask = lane < num_classes
    m = jnp.max(jnp.where(cls_mask, y, -1e30), axis=-1, keepdims=True)
    e = jnp.exp(jnp.where(cls_mask, y - m, 0.0))
    denom = jnp.sum(jnp.where(cls_mask, e, 0.0), axis=-1, keepdims=True)
    soft = e / denom
    o_ref[...] = jnp.where(cls_mask, soft, y).astype(o_ref.dtype)


# ----------------------------------------------------------------------------
# pallas_call wrappers
# ----------------------------------------------------------------------------
def _pad_axis(x, axis, multiple):
    pad = (-x.shape[axis]) % multiple
    if pad == 0:
        return x
    widths = [(0, 0)] * x.ndim
    widths[axis] = (0, pad)
    return jnp.pad(x, widths)


def _row_tiled_call(kernel, x_rows, consts, out_dim, out_dtype):
    """Run `kernel(x_tile, *consts, o_tile)` over row tiles of x_rows.

    x_rows : (rows, K)     tiled along rows with tile _TILE_ROWS
    consts : list of 2-D arrays broadcast (whole) to every tile
    """
    rows, k = x_rows.shape
    xp = _pad_axis(x_rows, 0, _TILE_ROWS)
    rows_p = xp.shape[0]
    grid = (rows_p // _TILE_ROWS,)

    in_specs = [pl.BlockSpec((_TILE_ROWS, k), lambda i: (i, 0))]
    for c in consts:
        in_specs.append(pl.BlockSpec(c.shape, lambda i: (0, 0)))

    out = pl.pallas_call(
        kernel,
        out_shape=jax.ShapeDtypeStruct((rows_p, out_dim), out_dtype),
        grid=grid,
        in_specs=in_specs,
        out_specs=pl.BlockSpec((_TILE_ROWS, out_dim), lambda i: (i, 0)),
        compiler_params=pltpu.CompilerParams(dimension_semantics=("parallel",)),
    )(xp, *consts)
    return out[:rows]


def _conv_rows(patches, w, scale, bias):
    """3x3-conv-as-matmul + folded BN + SiLU on flattened rows."""
    return _row_tiled_call(_matmul_bn_silu_kernel, patches, [w, scale, bias],
                           w.shape[1], jnp.bfloat16)


def _extract_patches(x_nhwc):
    """im2col glue: (B, H, W, C) -> (B*H*W, 9*C) shifted 3x3 patches
    (tap-major channel blocks, matching the (9, Cin, Cout) weight flatten)."""
    B, H, W, C = x_nhwc.shape
    xp = jnp.pad(x_nhwc, ((0, 0), (1, 1), (1, 1), (0, 0)))
    pats = [xp[:, dy:dy + H, dx:dx + W, :] for dy in range(3) for dx in range(3)]
    return jnp.concatenate(pats, axis=-1).reshape(B * H * W, 9 * C)


# ----------------------------------------------------------------------------
# Deterministic parameter construction (synthetic; no checkpoint loading)
# ----------------------------------------------------------------------------
def _init_conv3x3_bn(key, cin, cout):
    k1, k2, k3, k4, k5, k6 = jax.random.split(key, 6)
    w = jax.random.normal(k1, (9, cin, cout), jnp.float32) / math.sqrt(9 * cin)
    b = 0.05 * jax.random.normal(k2, (cout,), jnp.float32)
    gamma = 1.0 + 0.1 * jax.random.normal(k3, (cout,), jnp.float32)
    beta = 0.05 * jax.random.normal(k4, (cout,), jnp.float32)
    mean = 0.05 * jax.random.normal(k5, (cout,), jnp.float32)
    var = 1.0 + 0.1 * jax.random.uniform(k6, (cout,), jnp.float32)
    scale = gamma / jnp.sqrt(var + _BN_EPS)
    bias = scale * (b - mean) + beta
    return {"w": w, "scale": scale, "bias": bias}


def _init_conv1x1(key, cin, cout):
    k1, k2 = jax.random.split(key)
    w = jax.random.normal(k1, (cin, cout), jnp.float32) / math.sqrt(cin)
    b = 0.05 * jax.random.normal(k2, (cout,), jnp.float32)
    return {"w": w, "b": b}


def init_rtmdet_head_params(key, in_channels, feat_channels, num_classes,
                            stacked_convs=2, mask_features=8,
                            mask_kernel_features=169):
    keys = iter(jax.random.split(key, 32))
    return {
        "cls_convs": [
            _init_conv3x3_bn(next(keys),
                             in_channels if i == 0 else feat_channels,
                             feat_channels)
            for i in range(stacked_convs)],
        "cls_out": _init_conv1x1(next(keys), feat_channels, num_classes),
        "reg_convs": [
            _init_conv3x3_bn(next(keys),
                             in_channels if i == 0 else feat_channels,
                             feat_channels)
            for i in range(stacked_convs)],
        "reg_out": _init_conv1x1(next(keys), feat_channels, 4),
        "mask_kernel_convs": [
            _init_conv3x3_bn(next(keys), in_channels, feat_channels),
            _init_conv3x3_bn(next(keys), feat_channels, feat_channels)],
        "mask_kernel_out": _init_conv1x1(next(keys), feat_channels,
                                         mask_kernel_features),
        "mask_feat_convs": [
            _init_conv3x3_bn(next(keys), in_channels, feat_channels),
            _init_conv3x3_bn(next(keys), feat_channels, feat_channels),
            _init_conv3x3_bn(next(keys), feat_channels, feat_channels),
            _init_conv3x3_bn(next(keys), feat_channels, feat_channels)],
        "mask_feat_out": _init_conv1x1(next(keys), feat_channels, mask_features),
    }


def fuse_rtmdet_params(raw, in_channels, feat_channels, num_classes,
                       mask_features=8, mask_kernel_features=169):
    """Pack per-layer weights into the fused forms the kernels consume."""
    # TODO(synk): fusion below assumes stacked_convs == 2 (the module default).
    assert len(raw["cls_convs"]) == 2 and len(raw["reg_convs"]) == 2
    F = feat_channels
    bf = jnp.bfloat16

    branches1 = [raw["cls_convs"][0], raw["reg_convs"][0],
                 raw["mask_kernel_convs"][0], raw["mask_feat_convs"][0]]
    branches2 = [raw["cls_convs"][1], raw["reg_convs"][1],
                 raw["mask_kernel_convs"][1], raw["mask_feat_convs"][1]]

    # layer 1: concat output channels of the four branch heads -> (9*Cin, 4F)
    w1 = jnp.concatenate([L["w"] for L in branches1], axis=-1)
    w1 = _pad_axis(w1.reshape(9 * in_channels, 4 * F), 0, 128).astype(bf)
    s1 = jnp.concatenate([L["scale"] for L in branches1]).reshape(1, 4 * F)
    b1 = jnp.concatenate([L["bias"] for L in branches1]).reshape(1, 4 * F)

    # layer 2: block-diagonal (each branch reads only its own 32-ch slice)
    w2 = jnp.zeros((9, 4 * F, 4 * F), jnp.float32)
    for j, L in enumerate(branches2):
        w2 = w2.at[:, j * F:(j + 1) * F, j * F:(j + 1) * F].set(L["w"])
    w2 = _pad_axis(w2.reshape(9 * 4 * F, 4 * F), 0, 128).astype(bf)
    s2 = jnp.concatenate([L["scale"] for L in branches2]).reshape(1, 4 * F)
    b2 = jnp.concatenate([L["bias"] for L in branches2]).reshape(1, 4 * F)

    # mask_feat extra 3x3 convs (#3, #4)
    mf3, mf4 = raw["mask_feat_convs"][2], raw["mask_feat_convs"][3]
    w_mf3 = _pad_axis(mf3["w"].reshape(9 * F, F), 0, 128).astype(bf)
    w_mf4 = _pad_axis(mf4["w"].reshape(9 * F, F), 0, 128).astype(bf)

    # fused 1x1 heads: [cls | reg | mask_kernel | mask_feat | zero pad]
    nc = num_classes
    n_head = nc + 4 + mask_kernel_features + mask_features
    n_pad = ((n_head + 127) // 128) * 128
    w_head = jnp.zeros((4 * F, n_pad), jnp.float32)
    b_head = jnp.zeros((n_pad,), jnp.float32)
    col = 0
    for j, hd in enumerate([raw["cls_out"], raw["reg_out"],
                            raw["mask_kernel_out"], raw["mask_feat_out"]]):
        cout = hd["w"].shape[1]
        w_head = w_head.at[j * F:(j + 1) * F, col:col + cout].set(hd["w"])
        b_head = b_head.at[col:col + cout].set(hd["b"])
        col += cout
    w_head = _pad_axis(w_head, 0, 128).astype(bf)

    return {
        "w1": w1, "s1": s1, "b1": b1,
        "w2": w2, "s2": s2, "b2": b2,
        "w_mf3": w_mf3, "s_mf3": mf3["scale"].reshape(1, F),
        "b_mf3": mf3["bias"].reshape(1, F),
        "w_mf4": w_mf4, "s_mf4": mf4["scale"].reshape(1, F),
        "b_mf4": mf4["bias"].reshape(1, F),
        "w_head": w_head, "b_head": b_head.reshape(1, n_pad),
    }


# ----------------------------------------------------------------------------
# Forward pass
# ----------------------------------------------------------------------------
def create_coord_features(B, H, W):
    # TODO(synk): `create_coord_features` was not provided with the module; this
    # follows the standard SOLOv2-style normalized [-1, 1] (x, y) coordinate maps.
    xs = jnp.linspace(-1.0, 1.0, W, dtype=jnp.float32)
    ys = jnp.linspace(-1.0, 1.0, H, dtype=jnp.float32)
    xg = jnp.broadcast_to(xs[None, :], (H, W))
    yg = jnp.broadcast_to(ys[:, None], (H, W))
    coord = jnp.stack([xg, yg], axis=-1)                 # (H, W, 2)
    return jnp.broadcast_to(coord[None], (B, H, W, 2))   # (B, H, W, 2)


def rtmdet_head_forward(params, p3, p4, p5, *, num_classes, feat_channels,
                        mask_features=8, mask_kernel_features=169):
    F = feat_channels
    nc = num_classes

    shapes, x_levels = [], []
    for x in (p3, p4, p5):
        B, _, H, W = x.shape
        shapes.append((B, H, W))
        x_levels.append(jnp.transpose(x, (0, 2, 3, 1)).astype(jnp.bfloat16))

    offsets = [0]
    for (B, H, W) in shapes:
        offsets.append(offsets[-1] + B * H * W)

    def split_levels(flat, c):
        return [flat[offsets[i]:offsets[i + 1]].reshape(
                    shapes[i][0], shapes[i][1], shapes[i][2], c)
                for i in range(3)]

    # ---- layer 1: fused first 3x3 conv of all four branches, all levels ----
    pat1 = jnp.concatenate([_extract_patches(x) for x in x_levels], axis=0)
    pat1 = _pad_axis(pat1, 1, 128)
    f1 = _conv_rows(pat1, params["w1"], params["s1"], params["b1"])  # (rows, 4F)

    # ---- layer 2: block-diagonal fused second 3x3 conv ----
    pat2 = jnp.concatenate(
        [_extract_patches(f) for f in split_levels(f1, 4 * F)], axis=0)
    pat2 = _pad_axis(pat2, 1, 128)
    f2 = _conv_rows(pat2, params["w2"], params["s2"], params["b2"])  # (rows, 4F)

    # ---- mask_feat branch: two more 3x3 convs on its F-channel slice ----
    mf = f2[:, 3 * F:4 * F]
    pat3 = jnp.concatenate(
        [_extract_patches(f) for f in split_levels(mf, F)], axis=0)
    pat3 = _pad_axis(pat3, 1, 128)
    mf = _conv_rows(pat3, params["w_mf3"], params["s_mf3"], params["b_mf3"])
    pat4 = jnp.concatenate(
        [_extract_patches(f) for f in split_levels(mf, F)], axis=0)
    pat4 = _pad_axis(pat4, 1, 128)
    mf = _conv_rows(pat4, params["w_mf4"], params["s_mf4"], params["b_mf4"])

    # ---- fused 1x1 heads (cls + reg + mask_kernel + mask_feat), all levels ----
    head_in = _pad_axis(jnp.concatenate([f2[:, :3 * F], mf], axis=-1), 1, 128)
    head = _row_tiled_call(
        functools.partial(_head_kernel, num_classes=nc),
        head_in, [params["w_head"], params["b_head"]],
        params["w_head"].shape[1], jnp.float32)

    cls_list, reg_list, idx_list, mk_list, mf_list = [], [], [], [], []
    mk_off = nc + 4
    mf_off = mk_off + mask_kernel_features
    for li, (B, H, W) in enumerate(shapes):
        h = head[offsets[li]:offsets[li + 1]].reshape(B, H * W, -1)
        cls_list.append(h[..., :nc])
        reg_list.append(h[..., nc:nc + 4])
        mk = h[..., mk_off:mf_off].reshape(B, H, W, mask_kernel_features)
        mk_list.append(jnp.transpose(mk, (0, 3, 1, 2)))
        mfo = h[..., mf_off:mf_off + mask_features].reshape(B, H, W, mask_features)
        mfc = jnp.concatenate([mfo, create_coord_features(B, H, W)], axis=-1)
        mf_list.append(jnp.transpose(mfc, (0, 3, 1, 2)))

        h_idx = jnp.repeat(jnp.arange(H, dtype=jnp.int32), W)
        w_idx = jnp.tile(jnp.arange(W, dtype=jnp.int32), H)
        lvl = jnp.full_like(h_idx, li)
        indices = jnp.stack([lvl, h_idx, w_idx], axis=1)
        idx_list.append(jnp.broadcast_to(indices[None], (B, H * W, 3)))

    cls_score = jnp.concatenate(cls_list, axis=1)
    bbox_pred = jnp.concatenate(reg_list, axis=1)
    batch_indices = jnp.concatenate(idx_list, axis=1)
    return (cls_score, bbox_pred, batch_indices,
            mk_list[0], mf_list[0], mk_list[1], mf_list[1],
            mk_list[2], mf_list[2])


# ----------------------------------------------------------------------------
# Main
# ----------------------------------------------------------------------------
if __name__ == "__main__":
    B = 2
    in_channels = 8
    feat_channels = 32
    num_classes = 16

    key = jax.random.PRNGKey(0)
    kp, k3, k4, k5 = jax.random.split(key, 4)
    raw = init_rtmdet_head_params(kp, in_channels, feat_channels, num_classes)
    params = fuse_rtmdet_params(raw, in_channels, feat_channels, num_classes)

    # PAFPN-like pyramid inputs (NCHW, like the PyTorch module).
    p3 = jax.random.normal(k3, (B, in_channels, 16, 16), jnp.float32)
    p4 = jax.random.normal(k4, (B, in_channels, 8, 8), jnp.float32)
    p5 = jax.random.normal(k5, (B, in_channels, 4, 4), jnp.float32)

    fwd = jax.jit(functools.partial(rtmdet_head_forward,
                                    num_classes=num_classes,
                                    feat_channels=feat_channels))
    outputs = jax.block_until_ready(fwd(params, p3, p4, p5))

    (cls_score, bbox_pred, batch_indices,
     p3_mk, p3_mf, p4_mk, p4_mf, p5_mk, p5_mf) = outputs

    total = 16 * 16 + 8 * 8 + 4 * 4
    assert cls_score.shape == (B, total, num_classes)
    assert bbox_pred.shape == (B, total, 4)
    assert batch_indices.shape == (B, total, 3)
    assert p3_mk.shape == (B, 169, 16, 16) and p3_mf.shape == (B, 10, 16, 16)
    assert p4_mk.shape == (B, 169, 8, 8) and p4_mf.shape == (B, 10, 8, 8)
    assert p5_mk.shape == (B, 169, 4, 4) and p5_mf.shape == (B, 10, 4, 4)
    # softmax rows sum to 1
    assert jnp.allclose(jnp.sum(cls_score, axis=-1), 1.0, atol=1e-4)

    print("KERNEL_OK")
</pallas_src>

<mosaic_0001>
module attributes {stable_mosaic.version = 11 : i64} {
  func.func @_matmul_bn_silu_kernel(%arg0: i32, %arg1: memref<256x128xbf16, #tpu.memory_space<vmem>>, %arg2: memref<128x128xbf16, #tpu.memory_space<vmem>>, %arg3: memref<1x128xf32, #tpu.memory_space<vmem>>, %arg4: memref<1x128xf32, #tpu.memory_space<vmem>>, %arg5: memref<256x128xbf16, #tpu.memory_space<vmem>>) attributes {dimension_semantics = [#tpu.dimension_semantics<parallel>], iteration_bounds = array<i64: 3>, scalar_prefetch = 0 : i64, scratch_operands = 0 : i64, tpu.core_type = #tpu.core_type<tc>, window_params = [{transform_indices = @transform_0, window_bounds = array<i64: 256, 128>}, {pipeline_mode = #tpu.pipeline_mode<synchronous>, transform_indices = @transform_1, window_bounds = array<i64: 128, 128>}, {pipeline_mode = #tpu.pipeline_mode<synchronous>, transform_indices = @transform_2, window_bounds = array<i64: 1, 128>}, {pipeline_mode = #tpu.pipeline_mode<synchronous>, transform_indices = @transform_3, window_bounds = array<i64: 1, 128>}, {transform_indices = @transform_4, window_bounds = array<i64: 256, 128>}]} {
    %c0 = arith.constant 0 : index
    %c0_0 = arith.constant 0 : index
    %0 = vector.load %arg1[%c0, %c0_0] : memref<256x128xbf16, #tpu.memory_space<vmem>>, vector<256x128xbf16>
    %c0_1 = arith.constant 0 : index
    %c0_2 = arith.constant 0 : index
    %1 = vector.load %arg2[%c0_1, %c0_2] : memref<128x128xbf16, #tpu.memory_space<vmem>>, vector<128x128xbf16>
    %cst = arith.constant dense<0.000000e+00> : vector<256x128xf32>
    %2 = tpu.matmul %0, %1, %cst {dimension_numbers = #tpu.dot_dimension_numbers<[1], [0], [0], [1], [0, 0, 1, 1], [], []>} : vector<256x128xbf16>, vector<128x128xbf16>, vector<256x128xf32> -> vector<256x128xf32>
    %c0_3 = arith.constant 0 : index
    %c0_4 = arith.constant 0 : index
    %3 = vector.load %arg3[%c0_3, %c0_4] : memref<1x128xf32, #tpu.memory_space<vmem>>, vector<1x128xf32>
    %4 = vector.broadcast %3 : vector<1x128xf32> to vector<256x128xf32>
    %5 = arith.mulf %2, %4 : vector<256x128xf32>
    %c0_5 = arith.constant 0 : index
    %c0_6 = arith.constant 0 : index
    %6 = vector.load %arg4[%c0_5, %c0_6] : memref<1x128xf32, #tpu.memory_space<vmem>>, vector<1x128xf32>
    %7 = vector.broadcast %6 : vector<1x128xf32> to vector<256x128xf32>
    %8 = arith.addf %5, %7 : vector<256x128xf32>
    %9 = arith.negf %8 : vector<256x128xf32>
    %10 = math.exp %9 : vector<256x128xf32>
    %cst_7 = arith.constant 1.000000e+00 : f32
    %11 = vector.broadcast %cst_7 : f32 to vector<256x128xf32>
    %12 = arith.addf %11, %10 : vector<256x128xf32>
    %13 = arith.divf %11, %12 : vector<256x128xf32>
    %14 = arith.mulf %8, %13 : vector<256x128xf32>
    %15 = arith.truncf %14 : vector<256x128xf32> to vector<256x128xbf16>
    %c0_8 = arith.constant 0 : index
    %c0_9 = arith.constant 0 : index
    %16 = vector.load %arg5[%c0_8, %c0_9] : memref<256x128xbf16, #tpu.memory_space<vmem>>, vector<256x128xbf16>
    tpu.vector_store %arg5[%c0_8, %c0_9], %15 {strides = array<i32>} : memref<256x128xbf16, #tpu.memory_space<vmem>>, vector<256x128xbf16>,
    return
  }
  func.func @transform_0(%arg0: i32) -> (i32, i32) {
    %c0_i32 = arith.constant 0 : i32
    %c0_i32_0 = arith.constant 0 : i32
    return %arg0, %c0_i32 : i32, i32
  }
  func.func @transform_1(%arg0: i32) -> (i32, i32) {
    %c0_i32 = arith.constant 0 : i32
    %c0_i32_0 = arith.constant 0 : i32
    %c0_i32_1 = arith.constant 0 : i32
    return %c0_i32, %c0_i32_0 : i32, i32
  }
  func.func @transform_2(%arg0: i32) -> (i32, i32) {
    %c0_i32 = arith.constant 0 : i32
    %c0_i32_0 = arith.constant 0 : i32
    %c0_i32_1 = arith.constant 0 : i32
    return %c0_i32, %c0_i32_0 : i32, i32
  }
  func.func @transform_3(%arg0: i32) -> (i32, i32) {
    %c0_i32 = arith.constant 0 : i32
    %c0_i32_0 = arith.constant 0 : i32
    %c0_i32_1 = arith.constant 0 : i32
    return %c0_i32, %c0_i32_0 : i32, i32
  }
  func.func @transform_4(%arg0: i32) -> (i32, i32) {
    %c0_i32 = arith.constant 0 : i32
    %c0_i32_0 = arith.constant 0 : i32
    return %arg0, %c0_i32 : i32, i32
  }
}

module attributes {stable_mosaic.version = 11 : i64} {
  func.func @_matmul_bn_silu_kernel(%arg0: i32, %arg1: memref<256x1152xbf16, #tpu.memory_space<vmem>>, %arg2: memref<1152x128xbf16, #tpu.memory_space<vmem>>, %arg3: memref<1x128xf32, #tpu.memory_space<vmem>>, %arg4: memref<1x128xf32, #tpu.memory_space<vmem>>, %arg5: memref<256x128xbf16, #tpu.memory_space<vmem>>) attributes {dimension_semantics = [#tpu.dimension_semantics<parallel>], iteration_bounds = array<i64: 3>, scalar_prefetch = 0 : i64, scratch_operands = 0 : i64, tpu.core_type = #tpu.core_type<tc>, window_params = [{transform_indices = @transform_0, window_bounds = array<i64: 256, 1152>}, {pipeline_mode = #tpu.pipeline_mode<synchronous>, transform_indices = @transform_1, window_bounds = array<i64: 1152, 128>}, {pipeline_mode = #tpu.pipeline_mode<synchronous>, transform_indices = @transform_2, window_bounds = array<i64: 1, 128>}, {pipeline_mode = #tpu.pipeline_mode<synchronous>, transform_indices = @transform_3, window_bounds = array<i64: 1, 128>}, {transform_indices = @transform_4, window_bounds = array<i64: 256, 128>}]} {
    %c0 = arith.constant 0 : index
    %c0_0 = arith.constant 0 : index
    %0 = vector.load %arg1[%c0, %c0_0] : memref<256x1152xbf16, #tpu.memory_space<vmem>>, vector<256x1152xbf16>
    %c0_1 = arith.constant 0 : index
    %c0_2 = arith.constant 0 : index
    %1 = vector.load %arg2[%c0_1, %c0_2] : memref<1152x128xbf16, #tpu.memory_space<vmem>>, vector<1152x128xbf16>
    %cst = arith.constant dense<0.000000e+00> : vector<256x128xf32>
    %2 = tpu.matmul %0, %1, %cst {dimension_numbers = #tpu.dot_dimension_numbers<[1], [0], [0], [1], [0, 0, 1, 1], [], []>} : vector<256x1152xbf16>, vector<1152x128xbf16>, vector<256x128xf32> -> vector<256x128xf32>
    %c0_3 = arith.constant 0 : index
    %c0_4 = arith.constant 0 : index
    %3 = vector.load %arg3[%c0_3, %c0_4] : memref<1x128xf32, #tpu.memory_space<vmem>>, vector<1x128xf32>
    %4 = vector.broadcast %3 : vector<1x128xf32> to vector<256x128xf32>
    %5 = arith.mulf %2, %4 : vector<256x128xf32>
    %c0_5 = arith.constant 0 : index
    %c0_6 = arith.constant 0 : index
    %6 = vector.load %arg4[%c0_5, %c0_6] : memref<1x128xf32, #tpu.memory_space<vmem>>, vector<1x128xf32>
    %7 = vector.broadcast %6 : vector<1x128xf32> to vector<256x128xf32>
    %8 = arith.addf %5, %7 : vector<256x128xf32>
    %9 = arith.negf %8 : vector<256x128xf32>
    %10 = math.exp %9 : vector<256x128xf32>
    %cst_7 = arith.constant 1.000000e+00 : f32
    %11 = vector.broadcast %cst_7 : f32 to vector<256x128xf32>
    %12 = arith.addf %11, %10 : vector<256x128xf32>
    %13 = arith.divf %11, %12 : vector<256x128xf32>
    %14 = arith.mulf %8, %13 : vector<256x128xf32>
    %15 = arith.truncf %14 : vector<256x128xf32> to vector<256x128xbf16>
    %c0_8 = arith.constant 0 : index
    %c0_9 = arith.constant 0 : index
    %16 = vector.load %arg5[%c0_8, %c0_9] : memref<256x128xbf16, #tpu.memory_space<vmem>>, vector<256x128xbf16>
    tpu.vector_store %arg5[%c0_8, %c0_9], %15 {strides = array<i32>} : memref<256x128xbf16, #tpu.memory_space<vmem>>, vector<256x128xbf16>,
    return
  }
  func.func @transform_0(%arg0: i32) -> (i32, i32) {
    %c0_i32 = arith.constant 0 : i32
    %c0_i32_0 = arith.constant 0 : i32
    return %arg0, %c0_i32 : i32, i32
  }
  func.func @transform_1(%arg0: i32) -> (i32, i32) {
    %c0_i32 = arith.constant 0 : i32
    %c0_i32_0 = arith.constant 0 : i32
    %c0_i32_1 = arith.constant 0 : i32
    return %c0_i32, %c0_i32_0 : i32, i32
  }
  func.func @transform_2(%arg0: i32) -> (i32, i32) {
    %c0_i32 = arith.constant 0 : i32
    %c0_i32_0 = arith.constant 0 : i32
    %c0_i32_1 = arith.constant 0 : i32
    return %c0_i32, %c0_i32_0 : i32, i32
  }
  func.func @transform_3(%arg0: i32) -> (i32, i32) {
    %c0_i32 = arith.constant 0 : i32
    %c0_i32_0 = arith.constant 0 : i32
    %c0_i32_1 = arith.constant 0 : i32
    return %c0_i32, %c0_i32_0 : i32, i32
  }
  func.func @transform_4(%arg0: i32) -> (i32, i32) {
    %c0_i32 = arith.constant 0 : i32
    %c0_i32_0 = arith.constant 0 : i32
    return %arg0, %c0_i32 : i32, i32
  }
}

module attributes {stable_mosaic.version = 11 : i64} {
  func.func @_matmul_bn_silu_kernel(%arg0: i32, %arg1: memref<256x384xbf16, #tpu.memory_space<vmem>>, %arg2: memref<384x32xbf16, #tpu.memory_space<vmem>>, %arg3: memref<1x32xf32, #tpu.memory_space<vmem>>, %arg4: memref<1x32xf32, #tpu.memory_space<vmem>>, %arg5: memref<256x32xbf16, #tpu.memory_space<vmem>>) attributes {dimension_semantics = [#tpu.dimension_semantics<parallel>], iteration_bounds = array<i64: 3>, scalar_prefetch = 0 : i64, scratch_operands = 0 : i64, tpu.core_type = #tpu.core_type<tc>, window_params = [{transform_indices = @transform_0, window_bounds = array<i64: 256, 384>}, {pipeline_mode = #tpu.pipeline_mode<synchronous>, transform_indices = @transform_1, window_bounds = array<i64: 384, 32>}, {pipeline_mode = #tpu.pipeline_mode<synchronous>, transform_indices = @transform_2, window_bounds = array<i64: 1, 32>}, {pipeline_mode = #tpu.pipeline_mode<synchronous>, transform_indices = @transform_3, window_bounds = array<i64: 1, 32>}, {transform_indices = @transform_4, window_bounds = array<i64: 256, 32>}]} {
    %c0 = arith.constant 0 : index
    %c0_0 = arith.constant 0 : index
    %0 = vector.load %arg1[%c0, %c0_0] : memref<256x384xbf16, #tpu.memory_space<vmem>>, vector<256x384xbf16>
    %c0_1 = arith.constant 0 : index
    %c0_2 = arith.constant 0 : index
    %1 = vector.load %arg2[%c0_1, %c0_2] : memref<384x32xbf16, #tpu.memory_space<vmem>>, vector<384x32xbf16>
    %cst = arith.constant dense<0.000000e+00> : vector<256x32xf32>
    %2 = tpu.matmul %0, %1, %cst {dimension_numbers = #tpu.dot_dimension_numbers<[1], [0], [0], [1], [0, 0, 1, 1], [], []>} : vector<256x384xbf16>, vector<384x32xbf16>, vector<256x32xf32> -> vector<256x32xf32>
    %c0_3 = arith.constant 0 : index
    %c0_4 = arith.constant 0 : index
    %3 = vector.load %arg3[%c0_3, %c0_4] : memref<1x32xf32, #tpu.memory_space<vmem>>, vector<1x32xf32>
    %4 = vector.broadcast %3 : vector<1x32xf32> to vector<256x32xf32>
    %5 = arith.mulf %2, %4 : vector<256x32xf32>
    %c0_5 = arith.constant 0 : index
    %c0_6 = arith.constant 0 : index
    %6 = vector.load %arg4[%c0_5, %c0_6] : memref<1x32xf32, #tpu.memory_space<vmem>>, vector<1x32xf32>
    %7 = vector.broadcast %6 : vector<1x32xf32> to vector<256x32xf32>
    %8 = arith.addf %5, %7 : vector<256x32xf32>
    %9 = arith.negf %8 : vector<256x32xf32>
    %10 = math.exp %9 : vector<256x32xf32>
    %cst_7 = arith.constant 1.000000e+00 : f32
    %11 = vector.broadcast %cst_7 : f32 to vector<256x32xf32>
    %12 = arith.addf %11, %10 : vector<256x32xf32>
    %13 = arith.divf %11, %12 : vector<256x32xf32>
    %14 = arith.mulf %8, %13 : vector<256x32xf32>
    %15 = arith.truncf %14 : vector<256x32xf32> to vector<256x32xbf16>
    %c0_8 = arith.constant 0 : index
    %c0_9 = arith.constant 0 : index
    %16 = vector.load %arg5[%c0_8, %c0_9] : memref<256x32xbf16, #tpu.memory_space<vmem>>, vector<256x32xbf16>
    tpu.vector_store %arg5[%c0_8, %c0_9], %15 {strides = array<i32>} : memref<256x32xbf16, #tpu.memory_space<vmem>>, vector<256x32xbf16>,
    return
  }
  func.func @transform_0(%arg0: i32) -> (i32, i32) {
    %c0_i32 = arith.constant 0 : i32
    %c0_i32_0 = arith.constant 0 : i32
    return %arg0, %c0_i32 : i32, i32
  }
  func.func @transform_1(%arg0: i32) -> (i32, i32) {
    %c0_i32 = arith.constant 0 : i32
    %c0_i32_0 = arith.constant 0 : i32
    %c0_i32_1 = arith.constant 0 : i32
    return %c0_i32, %c0_i32_0 : i32, i32
  }
  func.func @transform_2(%arg0: i32) -> (i32, i32) {
    %c0_i32 = arith.constant 0 : i32
    %c0_i32_0 = arith.constant 0 : i32
    %c0_i32_1 = arith.constant 0 : i32
    return %c0_i32, %c0_i32_0 : i32, i32
  }
  func.func @transform_3(%arg0: i32) -> (i32, i32) {
    %c0_i32 = arith.constant 0 : i32
    %c0_i32_0 = arith.constant 0 : i32
    %c0_i32_1 = arith.constant 0 : i32
    return %c0_i32, %c0_i32_0 : i32, i32
  }
  func.func @transform_4(%arg0: i32) -> (i32, i32) {
    %c0_i32 = arith.constant 0 : i32
    %c0_i32_0 = arith.constant 0 : i32
    return %arg0, %c0_i32 : i32, i32
  }
}

module attributes {stable_mosaic.version = 11 : i64} {
  func.func @_head_kernel(%arg0: i32, %arg1: memref<256x128xbf16, #tpu.memory_space<vmem>>, %arg2: memref<128x256xbf16, #tpu.memory_space<vmem>>, %arg3: memref<1x256xf32, #tpu.memory_space<vmem>>, %arg4: memref<256x256xf32, #tpu.memory_space<vmem>>) attributes {dimension_semantics = [#tpu.dimension_semantics<parallel>], iteration_bounds = array<i64: 3>, scalar_prefetch = 0 : i64, scratch_operands = 0 : i64, tpu.core_type = #tpu.core_type<tc>, window_params = [{transform_indices = @transform_0, window_bounds = array<i64: 256, 128>}, {pipeline_mode = #tpu.pipeline_mode<synchronous>, transform_indices = @transform_1, window_bounds = array<i64: 128, 256>}, {pipeline_mode = #tpu.pipeline_mode<synchronous>, transform_indices = @transform_2, window_bounds = array<i64: 1, 256>}, {transform_indices = @transform_3, window_bounds = array<i64: 256, 256>}]} {
    %c0 = arith.constant 0 : index
    %c0_0 = arith.constant 0 : index
    %0 = vector.load %arg1[%c0, %c0_0] : memref<256x128xbf16, #tpu.memory_space<vmem>>, vector<256x128xbf16>
    %c0_1 = arith.constant 0 : index
    %c0_2 = arith.constant 0 : index
    %1 = vector.load %arg2[%c0_1, %c0_2] : memref<128x256xbf16, #tpu.memory_space<vmem>>, vector<128x256xbf16>
    %cst = arith.constant dense<0.000000e+00> : vector<256x256xf32>
    %2 = tpu.matmul %0, %1, %cst {dimension_numbers = #tpu.dot_dimension_numbers<[1], [0], [0], [1], [0, 0, 1, 1], [], []>} : vector<256x128xbf16>, vector<128x256xbf16>, vector<256x256xf32> -> vector<256x256xf32>
    %c0_3 = arith.constant 0 : index
    %c0_4 = arith.constant 0 : index
    %3 = vector.load %arg3[%c0_3, %c0_4] : memref<1x256xf32, #tpu.memory_space<vmem>>, vector<1x256xf32>
    %4 = vector.broadcast %3 : vector<1x256xf32> to vector<256x256xf32>
    %5 = arith.addf %2, %4 : vector<256x256xf32>
    %6 = tpu.iota {dimensions = array<i32: 1>} : vector<256x256xi32>
    %c16_i32 = arith.constant 16 : i32
    %7 = vector.broadcast %c16_i32 : i32 to vector<256x256xi32>
    %8 = arith.cmpi slt, %6, %7 : vector<256x256xi32>
    %cst_5 = arith.constant -1.000000e+30 : f32
    %9 = vector.broadcast %cst_5 : f32 to vector<256x256xf32>
    %10 = arith.select %8, %5, %9 : vector<256x256xi1>, vector<256x256xf32>
    %cst_6 = arith.constant dense<0xFF800000> : vector<256xf32>
    %11 = vector.multi_reduction <maximumf>, %10, %cst_6 [1] : vector<256x256xf32> to vector<256xf32>
    %12 = vector.shape_cast %11 : vector<256xf32> to vector<256x1xf32>
    %13 = vector.broadcast %12 : vector<256x1xf32> to vector<256x256xf32>
    %14 = arith.subf %5, %13 : vector<256x256xf32>
    %cst_7 = arith.constant 0.000000e+00 : f32
    %15 = vector.broadcast %cst_7 : f32 to vector<256x256xf32>
    %16 = arith.select %8, %14, %15 : vector<256x256xi1>, vector<256x256xf32>
    %17 = math.exp %16 : vector<256x256xf32>
    %cst_8 = arith.constant 0.000000e+00 : f32
    %18 = vector.broadcast %cst_8 : f32 to vector<256x256xf32>
    %19 = arith.select %8, %17, %18 : vector<256x256xi1>, vector<256x256xf32>
    %cst_9 = arith.constant dense<0.000000e+00> : vector<256xf32>
    %20 = vector.multi_reduction <add>, %19, %cst_9 [1] : vector<256x256xf32> to vector<256xf32>
    %21 = vector.shape_cast %20 : vector<256xf32> to vector<256x1xf32>
    %22 = vector.broadcast %21 : vector<256x1xf32> to vector<256x256xf32>
    %23 = arith.divf %17, %22 : vector<256x256xf32>
    %24 = arith.select %8, %23, %5 : vector<256x256xi1>, vector<256x256xf32>
    %c0_10 = arith.constant 0 : index
    %c0_11 = arith.constant 0 : index
    %25 = vector.load %arg4[%c0_10, %c0_11] : memref<256x256xf32, #tpu.memory_space<vmem>>, vector<256x256xf32>
    tpu.vector_store %arg4[%c0_10, %c0_11], %24 {strides = array<i32>} : memref<256x256xf32, #tpu.memory_space<vmem>>, vector<256x256xf32>,
    return
  }
  func.func @transform_0(%arg0: i32) -> (i32, i32) {
    %c0_i32 = arith.constant 0 : i32
    %c0_i32_0 = arith.constant 0 : i32
    return %arg0, %c0_i32 : i32, i32
  }
  func.func @transform_1(%arg0: i32) -> (i32, i32) {
    %c0_i32 = arith.constant 0 : i32
    %c0_i32_0 = arith.constant 0 : i32
    %c0_i32_1 = arith.constant 0 : i32
    return %c0_i32, %c0_i32_0 : i32, i32
  }
  func.func @transform_2(%arg0: i32) -> (i32, i32) {
    %c0_i32 = arith.constant 0 : i32
    %c0_i32_0 = arith.constant 0 : i32
    %c0_i32_1 = arith.constant 0 : i32
    return %c0_i32, %c0_i32_0 : i32, i32
  }
  func.func @transform_3(%arg0: i32) -> (i32, i32) {
    %c0_i32 = arith.constant 0 : i32
    %c0_i32_0 = arith.constant 0 : i32
    return %arg0, %c0_i32 : i32, i32
  }
}

</mosaic_0001>

<bundles_post_ra>
// kernel: rtmdet_head_forward.5
= control target key start
LH: loop header
LB: loop body
LE: loop exit
PB: predicated region body
PF: predicated region fallthrough
CT: control target
= control target key end

     0   :  { %s1582_s15 = smov 0   ;;  %s1898_s0 = inlined_call_operand.vmem [shape: bf16[768,128], index: 0, kind: input, shape index: {}]   ;;  %s1899_s1 = inlined_call_operand.vmem [shape: bf16[128,128], index: 1, kind: input, shape index: {}]   ;;  %s1900_s2 = inlined_call_operand.vmem [shape: f32[1,128], index: 2, kind: input, shape index: {}]   ;;  %s1901_s3 = inlined_call_operand.vmem [shape: f32[1,128], index: 3, kind: input, shape index: {}]   ;;  %s1902_s4 = inlined_call_operand.vmem [shape: bf16[768,128], index: 4, kind: output, shape index: {}]  }
   0x1 LB: > { %s1073_s16 = sadd.s32 4294967295, %s1555_s15   ;;  %p1077_p0 = scmp.ge.s32.totalorder %s1555_s15, 1  ;;  %s1555_s15 = sphi %s1582_s15, %s14_s15  }
   0x2   : > { %p163_p1 = scmp.lt.s32.totalorder %s1555_s15, 4 }
   0x4   : > { %p164_p2 = pnand %p1077_p0, %p163_p1 }
   0x5   : > { %v1397_v0 = vld [vmem:[%s1899_s1] sm:$0xff] (!%p164_p2)   ;;  %s1078_s19 = sshll.u32 (!%p164_p2), %s1073_s16, 5  ;;  %v1398_v1 = vld [vmem:[%s1899_s1 + $0x8] sm:$0xff] (!%p164_p2)   ;;  %v1399_v2 = vld [vmem:[%s1899_s1 + $0x10] sm:$0xff] (!%p164_p2)  }
   0x6   : > { %167 = sbr.rel (%p164_p2) target bundleno = 342 (0x156), region = 36  ;;  %p190_p3 = scmp.lt.s32.totalorder (!%p164_p2), %s1078_s19, 95  ;;  %1325 = vmatprep.subr.bf16.mxu0 (!%p164_p2), %v1397_v0  ;;  %1373 = vmatprep.subr.bf16.mxu1 (!%p164_p2), %v1397_v0  ;;  %v1400_v3 = vld [vmem:[%s1899_s1 + $0x18] sm:$0xff] (!%p164_p2)   ;;  %v1401_v6 = vld [vmem:[%s1899_s1 + $0x20] sm:$0xff] (!%p164_p2)   ;;  %v1402_v7 = vld [vmem:[%s1899_s1 + $0x28] sm:$0xff] (!%p164_p2)  }
   0x7   : > { %1326 = vmatpush3.bf16.msra.mxu0 (!%p164_p2), %v1397_v0  ;;  %1381 = vmatpush3.bf16.msra.mxu1 (!%p164_p2), %v1397_v0  ;;  %v1403_v8 = vld [vmem:[%s1899_s1 + $0x30] sm:$0xff] (!%p164_p2)   ;;  %v1404_v9 = vld [vmem:[%s1899_s1 + $0x38] sm:$0xff] (!%p164_p2)   ;;  %v1643_v24 = vld [vmem:[%s1900_s2] ss:$0 sm:$0xff] (!%p164_p2) }
   0x8   : > { %1327 = vmatprep.subr.bf16.mxu0 (!%p164_p2), %v1398_v1  ;;  %1374 = vmatprep.subr.bf16.mxu1 (!%p164_p2), %v1398_v1  ;;  %v1648_v26 = vld [vmem:[%s1901_s3] ss:$0 sm:$0xff] (!%p164_p2) }
   0xb   : > { %1328 = vmatpush3.bf16.msra.mxu0 (!%p164_p2), %v1398_v1  ;;  %1382 = vmatpush3.bf16.msra.mxu1 (!%p164_p2), %v1398_v1 }
   0xc   : > { %1329 = vmatprep.subr.bf16.mxu0 (!%p164_p2), %v1399_v2  ;;  %1375 = vmatprep.subr.bf16.mxu1 (!%p164_p2), %v1399_v2 }
   0xd   : > { %s1904_s19 = smov (!%p190_p3, %s1078_s19), 95 }
   0xe   : > { %s1079_s24 = sshll.u32 %s1904_s19, 2 }
   0xf   : > { %s1607_s27 = scalar_lea.vmem %s1898_s0, %s1079_s24  ;;  %1330 = vmatpush3.bf16.msra.mxu0 %v1399_v2  ;;  %1383 = vmatpush3.bf16.msra.mxu1 %v1399_v2  ;;  %s1794_s20 = scalar_lea.vmem %s1902_s4, %s1079_s24 }
  0x10   : > { %v1405_v4 = vld [vmem:[%s1607_s27] sm:$0xff]   ;;  %1331 = vmatprep.subr.bf16.mxu0 %v1400_v3  ;;  %1376 = vmatprep.subr.bf16.mxu1 %v1400_v3  ;;  %v1407_v10 = vld [vmem:[%s1607_s27 + $0x8] sm:$0xff]   ;;  %v1409_v12 = vld [vmem:[%s1607_s27 + $0x10] sm:$0xff]  }
  0x11   : > { %v1406_v5 = vld [vmem:[%s1607_s27 + $0x40] sm:$0xff]   ;;  %1341 = vmatprep.mubr.bf16.mxu0 %v1405_v4  ;;  %v1408_v11 = vld [vmem:[%s1607_s27 + $0x48] sm:$0xff]   ;;  %v1410_v13 = vld [vmem:[%s1607_s27 + $0x50] sm:$0xff]  }
  0x12   : > { %1357 = vmatprep.mubr.bf16.mxu1 %v1406_v5  ;;  %v1411_v14 = vld [vmem:[%s1607_s27 + $0x18] sm:$0xff]   ;;  %v1413_v16 = vld [vmem:[%s1607_s27 + $0x20] sm:$0xff]   ;;  %v1415_v18 = vld [vmem:[%s1607_s27 + $0x28] sm:$0xff]  }
  0x13   : > { %1332 = vmatpush3.bf16.msra.mxu0 %v1400_v3  ;;  %1384 = vmatpush3.bf16.msra.mxu1 %v1400_v3  ;;  %v1412_v15 = vld [vmem:[%s1607_s27 + $0x58] sm:$0xff]   ;;  %v1414_v17 = vld [vmem:[%s1607_s27 + $0x60] sm:$0xff]   ;;  %v1416_v19 = vld [vmem:[%s1607_s27 + $0x68] sm:$0xff]  }
  0x14   : > { %1333 = vmatprep.subr.bf16.mxu0 %v1401_v6  ;;  %1377 = vmatprep.subr.bf16.mxu1 %v1401_v6  ;;  %v1417_v20 = vld [vmem:[%s1607_s27 + $0x30] sm:$0xff]   ;;  %v1419_v22 = vld [vmem:[%s1607_s27 + $0x38] sm:$0xff]  }
  0x15   : > { %v1418_v21 = vld [vmem:[%s1607_s27 + $0x70] sm:$0xff]   ;;  %v1420_v23 = vld [vmem:[%s1607_s27 + $0x78] sm:$0xff]  }
  0x17   : > { %1334 = vmatpush3.bf16.msra.mxu0 %v1401_v6  ;;  %1385 = vmatpush3.bf16.msra.mxu1 %v1401_v6 }
  0x18   : > { %1335 = vmatprep.subr.bf16.mxu0 %v1402_v7  ;;  %1378 = vmatprep.subr.bf16.mxu1 %v1402_v7 }
  0x1b   : > { %1336 = vmatpush3.bf16.msra.mxu0 %v1402_v7  ;;  %1386 = vmatpush3.bf16.msra.mxu1 %v1402_v7 }
  0x1c   : > { %1337 = vmatprep.subr.bf16.mxu0 %v1403_v8  ;;  %1379 = vmatprep.subr.bf16.mxu1 %v1403_v8 }
  0x1f   : > { %1338 = vmatpush3.bf16.msra.mxu0 %v1403_v8  ;;  %1387 = vmatpush3.bf16.msra.mxu1 %v1403_v8 }
  0x20   : > { %1339 = vmatprep.subr.bf16.mxu0 %v1404_v9  ;;  %1380 = vmatprep.subr.bf16.mxu1 %v1404_v9 }
  0x23   : > { %1340 = vmatpush3.bf16.msra.mxu0 %v1404_v9  ;;  %1388 = vmatpush3.bf16.msra.mxu1 %v1404_v9 }
  0x26   : > { %1342 = vmatmul.mubr.bf16.vlgmr.msra.gmra.mrb[0].mxu0 %v1407_v10  ;;  %1358 = vmatmul.mubr.bf16.vlgmr.msra.gmra.mrb[0].mxu1 %v1408_v11 }
  0x27   : > { %1345 = vmatprep.mubr.bf16.mxu0 %v1409_v12  ;;  %1361 = vmatprep.mubr.bf16.mxu1 %v1410_v13 }
  0x2e   : > { %1346 = vmatmul.mubr.bf16.gmra.mrb[4].mxu0 %v1411_v14  ;;  %1362 = vmatmul.mubr.bf16.gmra.mrb[4].mxu1 %v1412_v15 }
  0x2f   : > { %1349 = vmatprep.mubr.bf16.mxu0 %v1413_v16  ;;  %1365 = vmatprep.mubr.bf16.mxu1 %v1414_v17 }
  0x36   : > { %1350 = vmatmul.mubr.bf16.gmra.mrb[8].mxu0 %v1415_v18  ;;  %1366 = vmatmul.mubr.bf16.gmra.mrb[8].mxu1 %v1416_v19 }
  0x37   : > { %1353 = vmatprep.mubr.bf16.mxu0 %v1417_v20  ;;  %1369 = vmatprep.mubr.bf16.mxu1 %v1418_v21 }
  0x3e   : > { %1354 = vmatmul.mubr.bf16.gmra.mrb[12].mxu0 %v1419_v22  ;;  %1370 = vmatmul.mubr.bf16.gmra.mrb[12].mxu1 %v1420_v23 }
  0xf9   : > { %v1343_v25 = vpop.f32.mrb[0].mxu0  ;;  %v1359_v27 = vpop.f32.mrb[0].mxu1 }
  0xfa   : > { %v564_v28 = vmul.f32 %v1343_v25, %v1643_v24  ;;  %v580_v29 = vmul.f32 %v1359_v27, %v1643_v24  ;;  %v428_v30 = vpop.f32.mrb[1].mxu0  ;;  %v492_v31 = vpop.f32.mrb[1].mxu1 }
  0xfb   : > { %v562_v32 = vmul.f32 %v1643_v24, %v428_v30  ;;  %v578_v33 = vmul.f32 %v1643_v24, %v492_v31  ;;  %v1344_v34 = vpop.f32.mrb[2].mxu0  ;;  %v1360_v35 = vpop.f32.mrb[2].mxu1 }
  0xfc   : > { %v1655_v36 = vadd.f32 %v1648_v26, %v564_v28  ;;  %v1658_v37 = vadd.f32 %v1648_v26, %v580_v29  ;;  %v565_v38 = vmul.f32 %v1344_v34, %v1643_v24  ;;  %v581_v39 = vmul.f32 %v1360_v35, %v1643_v24  ;;  %v431_v40 = vpop.f32.mrb[3].mxu0  ;;  %v495_v41 = vpop.f32.mrb[3].mxu1 }
  0xfd   : > { %v1663_v42 = vadd.f32 %v1648_v26, %v562_v32  ;;  %v1666_v43 = vadd.f32 %v1648_v26, %v578_v33  ;;  %v563_v44 = vmul.f32 %v1643_v24, %v431_v40  ;;  %v579_v45 = vmul.f32 %v1643_v24, %v495_v41 }
  0xfe   : > { %v1110_v46 = vmul.f32 -1.442695, %v1655_v36  ;;  %v1126_v47 = vmul.f32 -1.442695, %v1658_v37  ;;  %v1673_v48 = vadd.f32 %v1648_v26, %v565_v38  ;;  %v1676_v49 = vadd.f32 %v1648_v26, %v581_v39 }
  0xff   : > { %v1108_v50 = vmul.f32 -1.442695, %v1663_v42  ;;  %v1124_v51 = vmul.f32 -1.442695, %v1666_v43  ;;  %v1681_v52 = vadd.f32 %v1648_v26, %v563_v44  ;;  %v1684_v53 = vadd.f32 %v1648_v26, %v579_v45 }
 0x100   : > { %1421 = vpow2.f32 %v1110_v46  ;;  %v1111_v54 = vmul.f32 -1.442695, %v1673_v48  ;;  %v1127_v55 = vmul.f32 -1.442695, %v1676_v49 }
 0x101   : > { %1423 = vpow2.f32 %v1126_v47  ;;  %v1347_v56 = vpop.f32.mrb[4].mxu0  ;;  %v1363_v57 = vpop.f32.mrb[4].mxu1  ;;  %v1109_v58 = vmul.f32 -1.442695, %v1681_v52  ;;  %v1125_v63 = vmul.f32 -1.442695, %v1684_v53 }
 0x102   : > { %1425 = vpow2.f32 %v1108_v50  ;;  %v568_v59 = vmul.f32 %v1347_v56, %v1643_v24  ;;  %v584_v60 = vmul.f32 %v1363_v57, %v1643_v24  ;;  %v444_v61 = vpop.f32.mrb[5].mxu0  ;;  %v508_v62 = vpop.f32.mrb[5].mxu1 }
 0x103   : > { %1427 = vpow2.f32 %v1124_v51  ;;  %v566_v0 = vmul.f32 %v1643_v24, %v444_v61  ;;  %v582_v1 = vmul.f32 %v1643_v24, %v508_v62  ;;  %v1348_v2 = vpop.f32.mrb[6].mxu0  ;;  %v1364_v3 = vpop.f32.mrb[6].mxu1 }
 0x104   : > { %1429 = vpow2.f32 %v1111_v54  ;;  %v1695_v4 = vadd.f32 %v1648_v26, %v568_v59  ;;  %v1698_v5 = vadd.f32 %v1648_v26, %v584_v60  ;;  %v569_v6 = vmul.f32 %v1348_v2, %v1643_v24  ;;  %v447_v7 = vpop.f32.mrb[7].mxu0  ;;  %v511_v8 = vpop.f32.mrb[7].mxu1 }
 0x105   : > { %1431 = vpow2.f32 %v1127_v55  ;;  %v1702_v9 = vadd.f32 %v1648_v26, %v566_v0  ;;  %v1705_v10 = vadd.f32 %v1648_v26, %v582_v1  ;;  %v585_v11 = vmul.f32 %v1364_v3, %v1643_v24 }
 0x106   : > { %1433 = vpow2.f32 %v1109_v58  ;;  %v1114_v12 = vmul.f32 -1.442695, %v1695_v4  ;;  %v1130_v13 = vmul.f32 -1.442695, %v1698_v5  ;;  %v1711_v14 = vadd.f32 %v1648_v26, %v569_v6 }
 0x107   : > { %1435 = vpow2.f32 %v1125_v63  ;;  %v1112_v15 = vmul.f32 -1.442695, %v1702_v9  ;;  %v1128_v16 = vmul.f32 -1.442695, %v1705_v10  ;;  %v1717_v21 = vadd.f32 %v1648_v26, %v585_v11 }
 0x108   : > { %1437 = vpow2.f32 %v1114_v12  ;;  %v1115_v17 = vmul.f32 -1.442695, %v1711_v14  ;;  %v567_v28 = vmul.f32 %v1643_v24, %v447_v7  ;;  %v583_v29 = vmul.f32 %v1643_v24, %v511_v8 }
 0x109   : > { %1439 = vpow2.f32 %v1130_v13  ;;  %v1351_v18 = vpop.f32.mrb[8].mxu0  ;;  %v1367_v19 = vpop.f32.mrb[8].mxu1  ;;  %v1722_v44 = vmul.f32 -1.442695, %v1717_v21 }
 0x10a   : > { %v1422_v20 = vpop.eup %1421  ;;  %1441 = vpow2.f32 %v1112_v15  ;;  %v460_v22 = vpop.f32.mrb[9].mxu0  ;;  %v1725_v47 = vadd.f32 %v1648_v26, %v567_v28  ;;  %v1728_v50 = vadd.f32 %v1648_v26, %v583_v29  ;;  %v572_v55 = vmul.f32 %v1351_v18, %v1643_v24 }
 0x10b   : > { %v524_v23 = vpop.f32.mrb[9].mxu1  ;;  %v1424_v25 = vpop.eup %1423  ;;  %v731_v27 = vadd.f32 1.0, %v1422_v20  ;;  %1443 = vpow2.f32 %v1128_v16  ;;  %v588_v56 = vmul.f32 %v1367_v19, %v1643_v24  ;;  %v570_v59 = vmul.f32 %v1643_v24, %v460_v22 }
 0x10c   : > { %v1352_v30 = vpop.f32.mrb[10].mxu0  ;;  %v1368_v31 = vpop.f32.mrb[10].mxu1  ;;  %v747_v33 = vadd.f32 1.0, %v1424_v25  ;;  %1445 = vpow2.f32 %v1115_v17  ;;  %v586_v60 = vmul.f32 %v1643_v24, %v524_v23  ;;  %v1113_v11 = vmul.f32 -1.442695, %v1725_v47 }
 0x10d   : > { %v1426_v32 = vpop.eup %1425  ;;  %v463_v34 = vpop.f32.mrb[11].mxu0  ;;  %1447 = vrcp.f32 %v731_v27  ;;  %v573_v1 = vmul.f32 %v1352_v30, %v1643_v24  ;;  %v589_v2 = vmul.f32 %v1368_v31, %v1643_v24  ;;  %v1747_v18 = vadd.f32 %v1648_v26, %v572_v55 }
 0x10e   : > { %v1428_v35 = vpop.eup %1427  ;;  %v729_v38 = vadd.f32 1.0, %v1426_v32  ;;  %v527_v39 = vpop.f32.mrb[11].mxu1  ;;  %1449 = vrcp.f32 %v747_v33  ;;  %v571_v12 = vmul.f32 %v1643_v24, %v463_v34  ;;  %v1750_v19 = vadd.f32 %v1648_v26, %v588_v56 }
 0x10f   : > { %v1430_v40 = vpop.eup %1429  ;;  %v745_v41 = vadd.f32 1.0, %v1428_v35  ;;  %v1757_v27 = vadd.f32 %v1648_v26, %v570_v59  ;;  %v1760_v28 = vadd.f32 %v1648_v26, %v586_v60  ;;  %v1763_v31 = vadd.f32 %v1648_v26, %v573_v1 }
 0x110   : > { %v1432_v45 = vpop.eup %1431  ;;  %1451 = vrcp.f32 %v729_v38  ;;  %v732_v46 = vadd.f32 1.0, %v1430_v40  ;;  %v1766_v32 = vadd.f32 %v1648_v26, %v589_v2  ;;  %v1769_v35 = vadd.f32 %v1648_v26, %v571_v12 }
 0x111   : > { %v1434_v51 = vpop.eup %1433  ;;  %1453 = vrcp.f32 %v745_v41  ;;  %v748_v54 = vadd.f32 1.0, %v1432_v45  ;;  %v1355_v61 = vpop.f32.mrb[12].mxu0  ;;  %v587_v38 = vmul.f32 %v1643_v24, %v527_v39  ;;  %v1129_v41 = vmul.f32 -1.442695, %v1728_v50 }
 0x112   : > { %v1436_v57 = vpop.eup %1435  ;;  %1455 = vrcp.f32 %v732_v46  ;;  %v730_v58 = vadd.f32 1.0, %v1434_v51  ;;  %v1371_v62 = vpop.f32.mrb[12].mxu1  ;;  %v1118_v45 = vmul.f32 -1.442695, %v1747_v18  ;;  %v1134_v51 = vmul.f32 -1.442695, %v1750_v19 }
 0x113   : > { %v1438_v63 = vpop.eup %1437  ;;  %1457 = vrcp.f32 %v748_v54  ;;  %v746_v0 = vadd.f32 1.0, %v1436_v57  ;;  %v1736_v3 = vpop.f32.mrb[13].mxu0  ;;  %v576_v54 = vmul.f32 %v1355_v61, %v1643_v24  ;;  %v592_v55 = vmul.f32 %v1371_v62, %v1643_v24 }
 0x114   : > { %v1738_v6 = vpop.f32.mrb[13].mxu1  ;;  %v1440_v7 = vpop.eup %1439  ;;  %1459 = vrcp.f32 %v730_v58  ;;  %v735_v8 = vadd.f32 1.0, %v1438_v63  ;;  %v1116_v39 = vmul.f32 -1.442695, %v1757_v27  ;;  %v1132_v57 = vmul.f32 -1.442695, %v1760_v28 }
 0x115   : > { %v1742_v13 = vpop.f32.mrb[14].mxu0  ;;  %v1744_v15 = vpop.f32.mrb[14].mxu1  ;;  %1461 = vrcp.f32 %v746_v0  ;;  %v751_v17 = vadd.f32 1.0, %v1440_v7  ;;  %v1119_v58 = vmul.f32 -1.442695, %v1763_v31  ;;  %v1784_v61 = vadd.f32 %v1648_v26, %v587_v38 }
 0x116   : > { %v1442_v16 = vpop.eup %1441  ;;  %v1752_v20 = vpop.f32.mrb[15].mxu0  ;;  %1463 = vrcp.f32 %v735_v8  ;;  %v1135_v60 = vmul.f32 -1.442695, %v1766_v32  ;;  %v1117_v63 = vmul.f32 -1.442695, %v1769_v35  ;;  %v1798_v8 = vadd.f32 %v1648_v26, %v576_v54 }
 0x117   : > { %v1754_v22 = vpop.f32.mrb[15].mxu1  ;;  %v1444_v23 = vpop.eup %1443  ;;  %v733_v25 = vadd.f32 1.0, %v1442_v16  ;;  %1465 = vrcp.f32 %v751_v17 }
 0x118   : > { %v1446_v29 = vpop.eup %1445  ;;  %v749_v30 = vadd.f32 1.0, %v1444_v23 }
 0x119   : > { %v1448_v33 = vpop.eup %1447  ;;  %1467 = vrcp.f32 %v733_v25  ;;  %v736_v34 = vadd.f32 1.0, %v1446_v29 }
 0x11a   : > { %v1450_v40 = vpop.eup %1449  ;;  %1469 = vrcp.f32 %v749_v30  ;;  %v827_v0 = vmul.f32 %v1448_v33, %v1655_v36  ;;  %v1801_v36 = vadd.f32 %v1648_v26, %v592_v55  ;;  %v1122_v33 = vmul.f32 -1.442695, %v1798_v8 }
 0x11b   : > { %v1452_v46 = vpop.eup %1451  ;;  %1471 = vrcp.f32 %v736_v34 }
 0x11c   : > { %v1454_v56 = vpop.eup %1453  ;;  %1473 = vpow2.f32 %v1722_v44  ;;  %v843_v44 = vmul.f32 %v1450_v40, %v1658_v37 }
 0x11d   : > { %v1456_v59 = vpop.eup %1455  ;;  %1475 = vpow2.f32 %v1113_v11  ;;  %v841_v17 = vmul.f32 %v1454_v56, %v1666_v43 }
 0x11e   : > { %v1458_v62 = vpop.eup %1457  ;;  %v828_v1 = vmul.f32 %v1456_v59, %v1673_v48  ;;  %1477 = vpow2.f32 %v1129_v41  ;;  %v825_v48 = vmul.f32 %v1452_v46, %v1663_v42  ;;  %v1133_v42 = vmul.f32 -1.442695, %v1784_v61 }
 0x11f   : > { %v1460_v2 = vpop.eup %1459  ;;  %v844_v7 = vmul.f32 %v1458_v62, %v1676_v49  ;;  %1479 = vpow2.f32 %v1118_v45 }
 0x120   : > { %v1462_v37 = vpop.eup %1461  ;;  %v1214_v11 = vpack.c.bf16 %v828_v1, %v827_v0  ;;  %v826_v12 = vmul.f32 %v1460_v2, %v1681_v52  ;;  %1481 = vpow2.f32 %v1134_v51  ;;  %v577_v0 = vmul.f32 %v1742_v13, %v1643_v24 }
 0x121   : > { %v1464_v16 = vpop.eup %1463  ;;  %v1254_v49 = vpack.c.bf16 %v844_v7, %v843_v44  ;;  %v842_v23 = vmul.f32 %v1462_v37, %v1684_v53  ;;  %1483 = vpow2.f32 %v1116_v39  ;;  %v1138_v53 = vmul.f32 -1.442695, %v1801_v36 }
 0x122   : > { %v1807_v25 = vpop.eup %1465  ;;  %1286 = vst [vmem:[%s1794_s20 + $0x8] sm:$0xff] %v1214_v11   ;;  %v1209_v29 = vpack.c.bf16 %v826_v12, %v825_v48  ;;  %1485 = vpow2.f32 %v1132_v57  ;;  %v831_v40 = vmul.f32 %v1464_v16, %v1695_v4  ;;  %v574_v4 = vmul.f32 %v1643_v24, %v1736_v3 }
 0x123   : > { %v1811_v30 = vpop.eup %1467  ;;  %1294 = vst [vmem:[%s1794_s20 + $0x48] sm:$0xff] %v1254_v49   ;;  %v1249_v52 = vpack.c.bf16 %v842_v23, %v841_v17  ;;  %1487 = vpow2.f32 %v1119_v58  ;;  %v593_v2 = vmul.f32 %v1744_v15, %v1643_v24  ;;  %v591_v12 = vmul.f32 %v1643_v24, %v1754_v22 }
 0x124   : > { %v1815_v43 = vpop.eup %1469  ;;  %1210 = vst [vmem:[%s1794_s20] sm:$0xff] %v1209_v29   ;;  %1489 = vpow2.f32 %v1135_v60  ;;  %v590_v60 = vmul.f32 %v1643_v24, %v1738_v6  ;;  %v1832_v37 = vadd.f32 %v1648_v26, %v574_v4  ;;  %v575_v6 = vmul.f32 %v1643_v24, %v1752_v20 }
 0x125   : > { %v1472_v34 = vpop.eup %1471  ;;  %1293 = vst [vmem:[%s1794_s20 + $0x40] sm:$0xff] %v1249_v52   ;;  %1491 = vpow2.f32 %v1117_v63  ;;  %v1842_v17 = vadd.f32 %v1648_v26, %v577_v0  ;;  %v1845_v20 = vadd.f32 %v1648_v26, %v593_v2 }
 0x126   : > { %v1474_v38 = vpop.eup %1473  ;;  %v832_v41 = vmul.f32 %v1472_v34, %v1711_v14  ;;  %1493 = vpow2.f32 %v1133_v42  ;;  %v1837_v13 = vadd.f32 %v1648_v26, %v590_v60  ;;  %v1120_v42 = vmul.f32 -1.442695, %v1832_v37 }
 0x127   : > { %v1476_v45 = vpop.eup %1475  ;;  %v752_v46 = vadd.f32 1.0, %v1474_v38  ;;  %1495 = vpow2.f32 %v1122_v33  ;;  %v1849_v52 = vadd.f32 %v1648_v26, %v575_v6  ;;  %v1853_v33 = vadd.f32 %v1648_v26, %v591_v12 }
 0x128   : > { %v1478_v51 = vpop.eup %1477  ;;  %v1224_v54 = vpack.c.bf16 %v832_v41, %v831_v40  ;;  %v734_v55 = vadd.f32 1.0, %v1476_v45  ;;  %1497 = vpow2.f32 %v1138_v53  ;;  %v1136_v22 = vmul.f32 -1.442695, %v1837_v13 }
 0x129   : > { %v1480_v56 = vpop.eup %1479  ;;  %1499 = vrcp.f32 %v752_v46  ;;  %v750_v39 = vadd.f32 1.0, %v1478_v51  ;;  %v847_v34 = vmul.f32 %v1807_v25, %v1698_v5  ;;  %v1123_v40 = vmul.f32 -1.442695, %v1842_v17 }
 0x12a   : > { %v1482_v57 = vpop.eup %1481  ;;  %1288 = vst [vmem:[%s1794_s20 + $0x18] sm:$0xff] %v1224_v54   ;;  %1501 = vrcp.f32 %v734_v55  ;;  %v739_v58 = vadd.f32 1.0, %v1480_v56  ;;  %v829_v45 = vmul.f32 %v1811_v30, %v1702_v9  ;;  %v845_v46 = vmul.f32 %v1815_v43, %v1705_v10 }
 0x12b   : > { %v1484_v59 = vpop.eup %1483  ;;  %1503 = vrcp.f32 %v750_v39  ;;  %v755_v14 = vadd.f32 1.0, %v1482_v57  ;;  %v1139_v26 = vmul.f32 -1.442695, %v1845_v20  ;;  %v1137_v9 = vmul.f32 -1.442695, %v1853_v33 }
 0x12c   : > { %v1486_v63 = vpop.eup %1485  ;;  %1505 = vrcp.f32 %v739_v58  ;;  %v737_v62 = vadd.f32 1.0, %v1484_v59 }
 0x12d   : > { %v1488_v44 = vpop.eup %1487  ;;  %1507 = vrcp.f32 %v755_v14  ;;  %v753_v1 = vadd.f32 1.0, %v1486_v63 }
 0x12e   : > { %v1490_v7 = vpop.eup %1489  ;;  %1509 = vrcp.f32 %v737_v62  ;;  %v740_v3 = vadd.f32 1.0, %v1488_v44 }
 0x12f   : > { %v1492_v48 = vpop.eup %1491  ;;  %1511 = vrcp.f32 %v753_v1  ;;  %v756_v11 = vadd.f32 1.0, %v1490_v7 }
 0x130   : > { %v1494_v16 = vpop.eup %1493  ;;  %1513 = vrcp.f32 %v740_v3  ;;  %v738_v15 = vadd.f32 1.0, %v1492_v48 }
 0x131   : > { %v1496_v49 = vpop.eup %1495  ;;  %1515 = vrcp.f32 %v756_v11  ;;  %v754_v23 = vadd.f32 1.0, %v1494_v16 }
 0x132   : > { %v1498_v29 = vpop.eup %1497  ;;  %1517 = vrcp.f32 %v738_v15  ;;  %v743_v0 = vadd.f32 1.0, %v1496_v49 }
 0x133   : > { %v1500_v24 = vpop.eup %1499  ;;  %1519 = vrcp.f32 %v754_v23  ;;  %v759_v1 = vadd.f32 1.0, %v1498_v29 }
 0x134   : > { %v1502_v53 = vpop.eup %1501  ;;  %v848_v38 = vmul.f32 %v1500_v24, %v1717_v21  ;;  %1521 = vpow2.f32 %v1120_v42  ;;  %v1121_v21 = vmul.f32 -1.442695, %v1849_v52 }
 0x135   : > { %v1504_v41 = vpop.eup %1503  ;;  %v830_v51 = vmul.f32 %v1502_v53, %v1725_v47  ;;  %1523 = vpow2.f32 %v1136_v22 }
 0x136   : > { %v1506_v54 = vpop.eup %1505  ;;  %v1264_v55 = vpack.c.bf16 %v848_v38, %v847_v34  ;;  %v846_v5 = vmul.f32 %v1504_v41, %v1728_v50  ;;  %1525 = vpow2.f32 %v1123_v40 }
 0x137   : > { %v1508_v25 = vpop.eup %1507  ;;  %v1219_v56 = vpack.c.bf16 %v830_v51, %v829_v45  ;;  %1527 = vpow2.f32 %v1139_v26  ;;  %v835_v50 = vmul.f32 %v1506_v54, %v1747_v18 }
 0x138   : > { %v1510_v30 = vpop.eup %1509  ;;  %1296 = vst [vmem:[%s1794_s20 + $0x58] sm:$0xff] %v1264_v55   ;;  %v1259_v10 = vpack.c.bf16 %v846_v5, %v845_v46  ;;  %1529 = vpow2.f32 %v1121_v21  ;;  %v851_v4 = vmul.f32 %v1508_v25, %v1750_v19 }
 0x139   : > { %v1512_v47 = vpop.eup %1511  ;;  %1287 = vst [vmem:[%s1794_s20 + $0x10] sm:$0xff] %v1219_v56   ;;  %1531 = vpow2.f32 %v1137_v9  ;;  %v833_v60 = vmul.f32 %v1510_v30, %v1757_v27 }
 0x13a   : > { %v1514_v43 = vpop.eup %1513  ;;  %1295 = vst [vmem:[%s1794_s20 + $0x50] sm:$0xff] %v1259_v10   ;;  %v849_v18 = vmul.f32 %v1512_v47, %v1760_v28  ;;  %1533 = vrcp.f32 %v743_v0 }
 0x13b   : > { %v1516_v39 = vpop.eup %1515  ;;  %v836_v57 = vmul.f32 %v1514_v43, %v1763_v31  ;;  %1535 = vrcp.f32 %v759_v1 }
 0x13c   : > { %v1518_v58 = vpop.eup %1517  ;;  %v852_v59 = vmul.f32 %v1516_v39, %v1766_v32 }
 0x13d   : > { %v1520_v14 = vpop.eup %1519  ;;  %v1234_v63 = vpack.c.bf16 %v836_v57, %v835_v50  ;;  %v834_v62 = vmul.f32 %v1518_v58, %v1769_v35 }
 0x13e   : > { %v1274_v44 = vpack.c.bf16 %v852_v59, %v851_v4  ;;  %v850_v31 = vmul.f32 %v1520_v14, %v1784_v61  ;;  %v1522_v19 = vpop.eup %1521 }
 0x13f   : > { %1290 = vst [vmem:[%s1794_s20 + $0x28] sm:$0xff] %v1234_v63   ;;  %v1229_v2 = vpack.c.bf16 %v834_v62, %v833_v60  ;;  %v1524_v7 = vpop.eup %1523  ;;  %v741_v27 = vadd.f32 1.0, %v1522_v19 }
 0x140   : > { %1298 = vst [vmem:[%s1794_s20 + $0x68] sm:$0xff] %v1274_v44   ;;  %v1269_v32 = vpack.c.bf16 %v850_v31, %v849_v18  ;;  %v1526_v3 = vpop.eup %1525  ;;  %v757_v35 = vadd.f32 1.0, %v1524_v7 }
 0x141   : > { %1289 = vst [vmem:[%s1794_s20 + $0x20] sm:$0xff] %v1229_v2   ;;  %v1528_v6 = vpop.eup %1527  ;;  %1537 = vrcp.f32 %v741_v27  ;;  %v744_v28 = vadd.f32 1.0, %v1526_v3 }
 0x142   : > { %1297 = vst [vmem:[%s1794_s20 + $0x60] sm:$0xff] %v1269_v32   ;;  %v1530_v48 = vpop.eup %1529  ;;  %1539 = vrcp.f32 %v757_v35  ;;  %v760_v61 = vadd.f32 1.0, %v1528_v6 }
 0x143   : > { %v1532_v11 = vpop.eup %1531  ;;  %1541 = vrcp.f32 %v744_v28  ;;  %v742_v12 = vadd.f32 1.0, %v1530_v48 }
 0x144   : > { %1543 = vrcp.f32 %v760_v61  ;;  %v758_v16 = vadd.f32 1.0, %v1532_v11  ;;  %v1534_v15 = vpop.eup %1533 }
 0x145   : > { %1545 = vrcp.f32 %v742_v12  ;;  %v1536_v49 = vpop.eup %1535  ;;  %v839_v22 = vmul.f32 %v1534_v15, %v1798_v8 }
 0x146   : > { %1547 = vrcp.f32 %v758_v16  ;;  %v855_v38 = vmul.f32 %v1536_v49, %v1801_v36 }
 0x14b   : > { %v1538_v23 = vpop.eup %1537 }
 0x14c   : > { %v1540_v29 = vpop.eup %1539  ;;  %v837_v45 = vmul.f32 %v1538_v23, %v1832_v37 }
 0x14d   : > { %v1542_v42 = vpop.eup %1541  ;;  %v853_v26 = vmul.f32 %v1540_v29, %v1837_v13 }
 0x14e   : > { %v1544_v24 = vpop.eup %1543  ;;  %v840_v53 = vmul.f32 %v1542_v42, %v1842_v17 }
 0x14f   : > { %v1546_v34 = vpop.eup %1545  ;;  %v856_v40 = vmul.f32 %v1544_v24, %v1845_v20 }
 0x150   : > { %v1548_v41 = vpop.eup %1547  ;;  %v1244_v46 = vpack.c.bf16 %v840_v53, %v839_v22  ;;  %v838_v51 = vmul.f32 %v1546_v34, %v1849_v52 }
 0x151   : > { %v1284_v54 = vpack.c.bf16 %v856_v40, %v855_v38  ;;  %v854_v8 = vmul.f32 %v1548_v41, %v1853_v33 }
 0x152   : > { %1292 = vst [vmem:[%s1794_s20 + $0x38] sm:$0xff] %v1244_v46   ;;  %v1239_v55 = vpack.c.bf16 %v838_v51, %v837_v45 }
 0x153   : > { %1300 = vst [vmem:[%s1794_s20 + $0x78] sm:$0xff] %v1284_v54   ;;  %v1279_v17 = vpack.c.bf16 %v854_v8, %v853_v26 }
 0x154   : > { %1291 = vst [vmem:[%s1794_s20 + $0x30] sm:$0xff] %v1239_v55  }
 0x155   : > { %1299 = vst [vmem:[%s1794_s20 + $0x70] sm:$0xff] %v1279_v17  }
 0x156 PF: > { %s14_s15 = sadd.s32 1, %s1555_s15  }
 0x157   : > { %p11_p4 = scmp.ge.s32.totalorder %s14_s15, 5  }
 0x159   :  { %13 = sbr.rel (!%p11_p4) target bundleno = 1 (0x1), region = 66 }

// kernel: rtmdet_head_forward.6
= control target key start
LH: loop header
LB: loop body
LE: loop exit
PB: predicated region body
PF: predicated region fallthrough
CT: control target
= control target key end

     0   :  { %s4406_s15 = smov 0   ;;  %s5359_s0 = inlined_call_operand.vmem [shape: bf16[768,1152], index: 0, kind: input, shape index: {}]   ;;  %s5360_s1 = inlined_call_operand.vmem [shape: bf16[1152,128], index: 1, kind: input, shape index: {}]   ;;  %s5361_s2 = inlined_call_operand.vmem [shape: f32[1,128], index: 2, kind: input, shape index: {}]   ;;  %s5362_s3 = inlined_call_operand.vmem [shape: f32[1,128], index: 3, kind: input, shape index: {}]   ;;  %s5363_s4 = inlined_call_operand.vmem [shape: bf16[768,128], index: 4, kind: output, shape index: {}]  }
   0x1 LB: > { %s3000_s16 = sadd.s32 4294967295, %s4379_s15   ;;  %p3004_p0 = scmp.ge.s32.totalorder %s4379_s15, 1  ;;  %s4379_s15 = sphi %s4406_s15, %s14_s15  }
   0x2   : > { %p164_p1 = scmp.lt.s32.totalorder %s4379_s15, 4 }
   0x4   : > { %p165_p2 = pnand %p3004_p0, %p164_p1 }
   0x5   : > { %v3965_v0 = vld [vmem:[%s5360_s1 + $0x40] sm:$0xff] (!%p165_p2)   ;;  %s3005_s19 = sshll.u32 (!%p165_p2), %s3000_s16, 5  ;;  %v3967_v2 = vld [vmem:[%s5360_s1 + $0x48] sm:$0xff] (!%p165_p2)   ;;  %v3969_v4 = vld [vmem:[%s5360_s1 + $0x50] sm:$0xff] (!%p165_p2)  }
   0x6   : > { %168 = sbr.rel (%p165_p2) target bundleno = 582 (0x246), region = 36  ;;  %v3966_v1 = vld [vmem:[%s5360_s1] sm:$0xff] (!%p165_p2)   ;;  %3420 = vmatprep.subr.bf16.mxu0 (!%p165_p2), %v3965_v0  ;;  %3940 = vmatprep.subr.bf16.mxu1 (!%p165_p2), %v3965_v0  ;;  %p192_p3 = scmp.lt.s32.totalorder (!%p165_p2), %s3005_s19, 95  ;;  %v3968_v3 = vld [vmem:[%s5360_s1 + $0x8] sm:$0xff] (!%p165_p2)   ;;  %v3970_v5 = vld [vmem:[%s5360_s1 + $0x10] sm:$0xff] (!%p165_p2)  }
   0x7   : > { %3421 = vmatpush3.bf16.msra.mxu0 (!%p165_p2), %v3966_v1  ;;  %3948 = vmatpush3.bf16.msra.mxu1 (!%p165_p2), %v3966_v1  ;;  %v3971_v6 = vld [vmem:[%s5360_s1 + $0x58] sm:$0xff] (!%p165_p2)   ;;  %v3973_v8 = vld [vmem:[%s5360_s1 + $0x60] sm:$0xff] (!%p165_p2)   ;;  %v3975_v10 = vld [vmem:[%s5360_s1 + $0x68] sm:$0xff] (!%p165_p2)  }
   0x8   : > { %3422 = vmatprep.subr.bf16.mxu0 (!%p165_p2), %v3967_v2  ;;  %3941 = vmatprep.subr.bf16.mxu1 (!%p165_p2), %v3967_v2  ;;  %v3972_v7 = vld [vmem:[%s5360_s1 + $0x18] sm:$0xff] (!%p165_p2)   ;;  %v3974_v9 = vld [vmem:[%s5360_s1 + $0x20] sm:$0xff] (!%p165_p2)   ;;  %v3976_v13 = vld [vmem:[%s5360_s1 + $0x28] sm:$0xff] (!%p165_p2)  }
   0x9   : > { %v3977_v14 = vld [vmem:[%s5360_s1 + $0x70] sm:$0xff] (!%p165_p2)   ;;  %v3979_v16 = vld [vmem:[%s5360_s1 + $0x78] sm:$0xff] (!%p165_p2)   ;;  %v3987_v18 = vld [vmem:[%s5360_s1 + $0xc0] sm:$0xff] (!%p165_p2)  }
   0xa   : > { %v3978_v15 = vld [vmem:[%s5360_s1 + $0x30] sm:$0xff] (!%p165_p2)   ;;  %v3980_v17 = vld [vmem:[%s5360_s1 + $0x38] sm:$0xff] (!%p165_p2)   ;;  %v3990_v21 = vld [vmem:[%s5360_s1 + $0x140] sm:$0xff] (!%p165_p2)  }
   0xb   : > { %3423 = vmatpush3.bf16.msra.mxu0 (!%p165_p2), %v3968_v3  ;;  %3949 = vmatpush3.bf16.msra.mxu1 (!%p165_p2), %v3968_v3  ;;  %v3988_v22 = vld [vmem:[%s5360_s1 + $0x80] sm:$0xff] (!%p165_p2)   ;;  %v3989_v23 = vld [vmem:[%s5360_s1 + $0xc8] sm:$0xff] (!%p165_p2)   ;;  %v3999_v31 = vld [vmem:[%s5360_s1 + $0xd0] sm:$0xff] (!%p165_p2)  }
   0xc   : > { %3424 = vmatprep.subr.bf16.mxu0 (!%p165_p2), %v3969_v4  ;;  %3942 = vmatprep.subr.bf16.mxu1 (!%p165_p2), %v3969_v4  ;;  %v3992_v24 = vld [vmem:[%s5360_s1 + $0x100] sm:$0xff] (!%p165_p2)   ;;  %v3991_v27 = vld [vmem:[%s5360_s1 + $0x88] sm:$0xff] (!%p165_p2)   ;;  %v4000_v32 = vld [vmem:[%s5360_s1 + $0x90] sm:$0xff] (!%p165_p2)  }
   0xd   : > { %s5365_s19 = smov (!%p192_p3, %s3005_s19), 95  ;;  %v4010_v28 = vld [vmem:[%s5360_s1 + $0x148] sm:$0xff]   ;;  %v4001_v34 = vld [vmem:[%s5360_s1 + $0xd8] sm:$0xff]   ;;  %v4009_v40 = vld [vmem:[%s5360_s1 + $0xe0] sm:$0xff]  }
   0xe   : > { %s3956_s6 = smul.u32 36, %s5365_s19  ;;  %v4012_v33 = vld [vmem:[%s5360_s1 + $0x108] sm:$0xff]   ;;  %v4002_v37 = vld [vmem:[%s5360_s1 + $0x98] sm:$0xff]   ;;  %v4011_v41 = vld [vmem:[%s5360_s1 + $0xa0] sm:$0xff]   ;;  %s3008_s30 = sshll.u32 %s5365_s19, 2 }
   0xf   : > { %3425 = vmatpush3.bf16.msra.mxu0 %v3970_v5  ;;  %3950 = vmatpush3.bf16.msra.mxu1 %v3970_v5  ;;  %v4013_v42 = vld [vmem:[%s5360_s1 + $0xe8] sm:$0xff]   ;;  %v4024_v43 = vld [vmem:[%s5360_s1 + $0x150] sm:$0xff]   ;;  %v4023_v52 = vld [vmem:[%s5360_s1 + $0xf8] sm:$0xff]  }
  0x10   : > { %3426 = vmatprep.subr.bf16.mxu0 %v3971_v6  ;;  %3943 = vmatprep.subr.bf16.mxu1 %v3971_v6  ;;  %s4447_s13 = scalar_lea.vmem %s5359_s0, %s3956_s6  ;;  %v4026_v46 = vld [vmem:[%s5360_s1 + $0x110] sm:$0xff]   ;;  %v4014_v47 = vld [vmem:[%s5360_s1 + $0xa8] sm:$0xff]   ;;  %v4041_v55 = vld [vmem:[%s5360_s1 + $0x158] sm:$0xff]   ;;  %s5209_s6 = scalar_lea.vmem %s5363_s4, %s3008_s30 }
  0x11   : > { %v3983_v11 = vld [vmem:[%s4447_s13 + $0x4] ss:$36 sps:$4 sm:$0xff]   ;;  %v3993_v25 = vld [vmem:[%s4447_s13 + $0x4c] ss:$36 sps:$4 sm:$0xff]   ;;  %v4003_v35 = vld [vmem:[%s4447_s13 + $0x94] ss:$36 sps:$4 sm:$0xff]  }
  0x12   : > { %v3986_v12 = vld [vmem:[%s4447_s13 + $0x364] ss:$36 sps:$4 sm:$0xff]   ;;  %1709 = vmatprep.mubr.bf16.mxu0 %v3983_v11  ;;  %v3995_v26 = vld [vmem:[%s4447_s13 + $0x3ac] ss:$36 sps:$4 sm:$0xff]   ;;  %v4005_v36 = vld [vmem:[%s4447_s13 + $0x3f4] ss:$36 sps:$4 sm:$0xff]  }
  0x13   : > { %3427 = vmatpush3.bf16.msra.mxu0 %v3972_v7  ;;  %3951 = vmatpush3.bf16.msra.mxu1 %v3972_v7  ;;  %v3981_v19 = vld [vmem:[%s4447_s13] ss:$36 sps:$4 sm:$0xff]   ;;  %v3997_v29 = vld [vmem:[%s4447_s13 + $0x48] ss:$36 sps:$4 sm:$0xff]   ;;  %v4007_v38 = vld [vmem:[%s4447_s13 + $0x90] ss:$36 sps:$4 sm:$0xff]  }
  0x14   : > { %3428 = vmatprep.subr.bf16.mxu0 %v3973_v8  ;;  %3944 = vmatprep.subr.bf16.mxu1 %v3973_v8  ;;  %v3984_v20 = vld [vmem:[%s4447_s13 + $0x360] ss:$36 sps:$4 sm:$0xff]   ;;  %v3998_v30 = vld [vmem:[%s4447_s13 + $0x3a8] ss:$36 sps:$4 sm:$0xff]   ;;  %v4008_v39 = vld [vmem:[%s4447_s13 + $0x3f0] ss:$36 sps:$4 sm:$0xff]  }
  0x15   : > { %1805 = vmatprep.mubr.bf16.mxu1 %v3986_v12  ;;  %v4015_v44 = vld [vmem:[%s4447_s13 + $0xdc] ss:$36 sps:$4 sm:$0xff]   ;;  %v4021_v48 = vld [vmem:[%s5360_s1 + $0xf0] sm:$0xff]   ;;  %v4027_v53 = vld [vmem:[%s4447_s13 + $0x124] ss:$36 sps:$4 sm:$0xff]  }
  0x16   : > { %v4017_v45 = vld [vmem:[%s4447_s13 + $0x43c] ss:$36 sps:$4 sm:$0xff]   ;;  %v4022_v51 = vld [vmem:[%s5360_s1 + $0xb0] sm:$0xff]   ;;  %v4029_v58 = vld [vmem:[%s4447_s13 + $0x8] ss:$36 sps:$4 sm:$0xff]  }
  0x17   : > { %3429 = vmatpush3.bf16.msra.mxu0 %v3974_v9  ;;  %3952 = vmatpush3.bf16.msra.mxu1 %v3974_v9  ;;  %v4019_v49 = vld [vmem:[%s4447_s13 + $0xd8] ss:$36 sps:$4 sm:$0xff]   ;;  %v4031_v54 = vld [vmem:[%s4447_s13 + $0xc] ss:$36 sps:$4 sm:$0xff]   ;;  %v4032_v59 = vld [vmem:[%s4447_s13 + $0x120] ss:$36 sps:$4 sm:$0xff]  }
  0x18   : > { %3430 = vmatprep.subr.bf16.mxu0 %v3975_v10  ;;  %3945 = vmatprep.subr.bf16.mxu1 %v3975_v10  ;;  %v4020_v50 = vld [vmem:[%s4447_s13 + $0x438] ss:$36 sps:$4 sm:$0xff]   ;;  %v4033_v60 = vld [vmem:[%s5360_s1 + $0x1c0] sm:$0xff]   ;;  %v4035_v62 = vld [vmem:[%s4447_s13 + $0x16c] ss:$36 sps:$4 sm:$0xff]  }
  0x19   : > { %v4042_v56 = vld [vmem:[%s5360_s1 + $0x118] sm:$0xff]   ;;  %v4034_v61 = vld [vmem:[%s5360_s1 + $0x180] sm:$0xff]   ;;  %v4049_v1 = vld [vmem:[%s5360_s1 + $0x1c8] sm:$0xff]  }
  0x1a   : > { %v4025_v57 = vld [vmem:[%s5360_s1 + $0xb8] sm:$0xff]   ;;  %v4051_v0 = vld [vmem:[%s5360_s1 + $0x160] sm:$0xff]   ;;  %v4050_v3 = vld [vmem:[%s5360_s1 + $0x188] sm:$0xff]  }
  0x1b   : > { %3431 = vmatpush3.bf16.msra.mxu0 %v3976_v13  ;;  %3953 = vmatpush3.bf16.msra.mxu1 %v3976_v13  ;;  %v4037_v63 = vld [vmem:[%s4447_s13 + $0x54] ss:$36 sps:$4 sm:$0xff]   ;;  %v4052_v2 = vld [vmem:[%s5360_s1 + $0x120] sm:$0xff]   ;;  %v4039_v4 = vld [vmem:[%s4447_s13 + $0x168] ss:$36 sps:$4 sm:$0xff]  }
  0x1c   : > { %3432 = vmatprep.subr.bf16.mxu0 %v3977_v14  ;;  %3946 = vmatprep.subr.bf16.mxu1 %v3977_v14  ;;  %v4040_v5 = vld [vmem:[%s4447_s13 + $0x50] ss:$36 sps:$4 sm:$0xff]   ;;  %v4045_v7 = vld [vmem:[%s4447_s13 + $0x9c] ss:$36 sps:$4 sm:$0xff]   ;;  %v4065_v8 = vld [vmem:[%s5360_s1 + $0x168] sm:$0xff]  }
  0x1d   : > { %v4043_v6 = vld [vmem:[%s4447_s13 + $0x1b4] ss:$36 sps:$4 sm:$0xff]   ;;  %v4067_v10 = vld [vmem:[%s5360_s1 + $0x128] sm:$0xff]   ;;  %v4053_v14 = vld [vmem:[%s4447_s13 + $0x1fc] ss:$36 sps:$4 sm:$0xff]  }
  0x1e   : > { %v4066_v9 = vld [vmem:[%s5360_s1 + $0x1d0] sm:$0xff]   ;;  %v4048_v13 = vld [vmem:[%s4447_s13 + $0x98] ss:$36 sps:$4 sm:$0xff]  }
  0x1f   : > { %3433 = vmatpush3.bf16.msra.mxu0 %v3978_v15  ;;  %3954 = vmatpush3.bf16.msra.mxu1 %v3978_v15  ;;  %v4068_v11 = vld [vmem:[%s5360_s1 + $0x190] sm:$0xff]  }
  0x20   : > { %3434 = vmatprep.subr.bf16.mxu0 %v3979_v16  ;;  %3947 = vmatprep.subr.bf16.mxu1 %v3979_v16  ;;  %v4047_v12 = vld [vmem:[%s4447_s13 + $0x1b0] ss:$36 sps:$4 sm:$0xff]  }
  0x21   : > { %v4075_v15 = vld [vmem:[%s5360_s1 + $0x170] sm:$0xff]  }
  0x22   : > { %v4076_v16 = vld [vmem:[%s5360_s1 + $0x130] sm:$0xff]  }
  0x23   : > { %3435 = vmatpush3.bf16.msra.mxu0 %v3980_v17  ;;  %3955 = vmatpush3.bf16.msra.mxu1 %v3980_v17  ;;  %v4055_v17 = vld [vmem:[%s4447_s13 + $0xe4] ss:$36 sps:$4 sm:$0xff]  }
  0x24   : > { %3532 = vmatprep.subr.bf16.mxu1 %v3987_v18  ;;  %3644 = vmatprep.subr.bf16.mxu0 %v3990_v21  ;;  %v4083_v18 = vld [vmem:[%s5360_s1 + $0x1d8] sm:$0xff]   ;;  %v4058_v21 = vld [vmem:[%s4447_s13 + $0xe0] ss:$36 sps:$4 sm:$0xff]  }
  0x26   : > { %1710 = vmatmul.mubr.bf16.vlgmr.msra.gmra.mrb[0].mxu0 %v3981_v19  ;;  %1806 = vmatmul.mubr.bf16.vlgmr.msra.gmra.mrb[0].mxu1 %v3984_v20  ;;  %v4084_v19 = vld [vmem:[%s5360_s1 + $0x198] sm:$0xff]  }
  0x27   : > { %3533 = vmatpush3.bf16.msra.mxu1 %v3988_v22  ;;  %3645 = vmatpush3.bf16.msra.mxu0 %v3992_v24  ;;  %v4057_v20 = vld [vmem:[%s4447_s13 + $0x1f8] ss:$36 sps:$4 sm:$0xff]   ;;  %v4059_v22 = vld [vmem:[%s4447_s13 + $0x244] ss:$36 sps:$4 sm:$0xff]  }
  0x28   : > { %3534 = vmatprep.subr.bf16.mxu1 %v3989_v23  ;;  %1717 = vmatprep.mubr.bf16.mxu0 %v3993_v25  ;;  %v4061_v23 = vld [vmem:[%s4447_s13 + $0x12c] ss:$36 sps:$4 sm:$0xff]   ;;  %v4091_v24 = vld [vmem:[%s5360_s1 + $0x178] sm:$0xff]  }
  0x29   : > { %1813 = vmatprep.mubr.bf16.mxu1 %v3995_v26  ;;  %3646 = vmatprep.subr.bf16.mxu0 %v4010_v28  ;;  %v4092_v25 = vld [vmem:[%s5360_s1 + $0x138] sm:$0xff]   ;;  %v4099_v26 = vld [vmem:[%s5360_s1 + $0x1e0] sm:$0xff]  }
  0x2a   : > { %v4100_v28 = vld [vmem:[%s5360_s1 + $0x1a0] sm:$0xff]  }
  0x2b   : > { %3535 = vmatpush3.bf16.msra.mxu1 %v3991_v27  ;;  %3647 = vmatpush3.bf16.msra.mxu0 %v4012_v33  ;;  %v4063_v27 = vld [vmem:[%s4447_s13 + $0x240] ss:$36 sps:$4 sm:$0xff]   ;;  %v4114_v33 = vld [vmem:[%s5360_s1 + $0x1e8] sm:$0xff]  }
  0x2c   : > { %3536 = vmatprep.subr.bf16.mxu1 %v3999_v31  ;;  %3648 = vmatprep.subr.bf16.mxu0 %v4024_v43  ;;  %v4069_v31 = vld [vmem:[%s4447_s13 + $0x28c] ss:$36 sps:$4 sm:$0xff]   ;;  %v4085_v43 = vld [vmem:[%s4447_s13 + $0x31c] ss:$36 sps:$4 sm:$0xff]  }
  0x2e   : > { %1718 = vmatmul.mubr.bf16.gmra.mrb[4].mxu0 %v3997_v29  ;;  %1814 = vmatmul.mubr.bf16.gmra.mrb[4].mxu1 %v3998_v30  ;;  %v4101_v29 = vld [vmem:[%s5360_s1 + $0x200] sm:$0xff]   ;;  %v4064_v30 = vld [vmem:[%s4447_s13 + $0x128] ss:$36 sps:$4 sm:$0xff]  }
  0x2f   : > { %3537 = vmatpush3.bf16.msra.mxu1 %v4000_v32  ;;  %1725 = vmatprep.mubr.bf16.mxu0 %v4003_v35  ;;  %v4071_v32 = vld [vmem:[%s4447_s13 + $0x174] ss:$36 sps:$4 sm:$0xff]   ;;  %v4115_v35 = vld [vmem:[%s5360_s1 + $0x1a8] sm:$0xff]  }
  0x30   : > { %3538 = vmatprep.subr.bf16.mxu1 %v4001_v34  ;;  %1821 = vmatprep.mubr.bf16.mxu1 %v4005_v36  ;;  %v4073_v34 = vld [vmem:[%s4447_s13 + $0x288] ss:$36 sps:$4 sm:$0xff]   ;;  %v4074_v36 = vld [vmem:[%s4447_s13 + $0x170] ss:$36 sps:$4 sm:$0xff]  }
  0x31   : > { %3649 = vmatpush3.bf16.msra.mxu0 %v4026_v46  ;;  %v4090_v46 = vld [vmem:[%s4447_s13 + $0x200] ss:$36 sps:$4 sm:$0xff]  }
  0x32   : > { %3650 = vmatprep.subr.bf16.mxu0 %v4041_v55  ;;  %v4116_v55 = vld [vmem:[%s5360_s1 + $0x208] sm:$0xff]  }
  0x33   : > { %3539 = vmatpush3.bf16.msra.mxu1 %v4002_v37  ;;  %v4077_v37 = vld [vmem:[%s4447_s13 + $0x2d4] ss:$36 sps:$4 sm:$0xff]  }
  0x34   : > { %3540 = vmatprep.subr.bf16.mxu1 %v4009_v40  ;;  %v4082_v40 = vld [vmem:[%s4447_s13 + $0x1b8] ss:$36 sps:$4 sm:$0xff]  }
  0x35   : > { %3651 = vmatpush3.bf16.msra.mxu0 %v4042_v56  ;;  %v4131_v56 = vld [vmem:[%s5360_s1 + $0x210] sm:$0xff]  }
  0x36   : > { %1726 = vmatmul.mubr.bf16.gmra.mrb[8].mxu0 %v4007_v38  ;;  %1822 = vmatmul.mubr.bf16.gmra.mrb[8].mxu1 %v4008_v39  ;;  %v4079_v38 = vld [vmem:[%s4447_s13 + $0x1bc] ss:$36 sps:$4 sm:$0xff]   ;;  %v4081_v39 = vld [vmem:[%s4447_s13 + $0x2d0] ss:$36 sps:$4 sm:$0xff]  }
  0x37   : > { %3541 = vmatpush3.bf16.msra.mxu1 %v4011_v41  ;;  %1733 = vmatprep.mubr.bf16.mxu0 %v4015_v44  ;;  %v4129_v41 = vld [vmem:[%s5360_s1 + $0x1f0] sm:$0xff]   ;;  %v4087_v44 = vld [vmem:[%s4447_s13 + $0x204] ss:$36 sps:$4 sm:$0xff]  }
  0x38   : > { %3542 = vmatprep.subr.bf16.mxu1 %v4013_v42  ;;  %1829 = vmatprep.mubr.bf16.mxu1 %v4017_v45  ;;  %v4130_v42 = vld [vmem:[%s5360_s1 + $0x1b0] sm:$0xff]   ;;  %v4089_v45 = vld [vmem:[%s4447_s13 + $0x318] ss:$36 sps:$4 sm:$0xff]  }
  0x39   : > { %3652 = vmatprep.subr.bf16.mxu0 %v4051_v0  ;;  %v4113_v0 = vld [vmem:[%s4447_s13 + $0xa0] ss:$36 sps:$4 sm:$0xff]  }
  0x3a   : > { %3653 = vmatpush3.bf16.msra.mxu0 %v4052_v2  ;;  %v4119_v2 = vld [vmem:[%s4447_s13 + $0xec] ss:$36 sps:$4 sm:$0xff]  }
  0x3b   : > { %3543 = vmatpush3.bf16.msra.mxu1 %v4014_v47  ;;  %3654 = vmatprep.subr.bf16.mxu0 %v4065_v8  ;;  %v4144_v47 = vld [vmem:[%s5360_s1 + $0x1f8] sm:$0xff]  }
  0x3c   : > { %3544 = vmatprep.subr.bf16.mxu1 %v4021_v48  ;;  %v4145_v48 = vld [vmem:[%s5360_s1 + $0x1b8] sm:$0xff]  }
  0x3d   : > { %v4125_v8 = vld [vmem:[%s4447_s13 + $0x134] ss:$36 sps:$4 sm:$0xff]  }
  0x3e   : > { %1734 = vmatmul.mubr.bf16.gmra.mrb[12].mxu0 %v4019_v49  ;;  %1830 = vmatmul.mubr.bf16.gmra.mrb[12].mxu1 %v4020_v50  ;;  %v4093_v49 = vld [vmem:[%s4447_s13 + $0x24c] ss:$36 sps:$4 sm:$0xff]   ;;  %v4097_v50 = vld [vmem:[%s4447_s13 + $0x14] ss:$36 sps:$4 sm:$0xff]  }
  0x3f   : > { %3545 = vmatpush3.bf16.msra.mxu1 %v4022_v51  ;;  %1741 = vmatprep.mubr.bf16.mxu0 %v4027_v53  ;;  %v4095_v51 = vld [vmem:[%s4447_s13 + $0x10] ss:$36 sps:$4 sm:$0xff]  }
  0x40   : > { %3546 = vmatprep.subr.bf16.mxu1 %v4023_v52  ;;  %1870 = vmatprep.mubr.bf16.mxu1 %v4031_v54  ;;  %v4098_v52 = vld [vmem:[%s4447_s13 + $0x248] ss:$36 sps:$4 sm:$0xff]   ;;  %v4102_v53 = vld [vmem:[%s4447_s13 + $0x294] ss:$36 sps:$4 sm:$0xff]   ;;  %v4104_v54 = vld [vmem:[%s4447_s13 + $0x5c] ss:$36 sps:$4 sm:$0xff]  }
  0x41   : > { %3655 = vmatpush3.bf16.msra.mxu0 %v4067_v10  ;;  %v4127_v10 = vld [vmem:[%s4447_s13 + $0x368] ss:$36 sps:$4 sm:$0xff]  }
  0x42   : > { %3656 = vmatprep.subr.bf16.mxu0 %v4075_v15  ;;  %v4137_v15 = vld [vmem:[%s4447_s13 + $0x178] ss:$36 sps:$4 sm:$0xff]  }
  0x43   : > { %3547 = vmatpush3.bf16.msra.mxu1 %v4025_v57  ;;  %v4106_v57 = vld [vmem:[%s4447_s13 + $0x290] ss:$36 sps:$4 sm:$0xff]  }
  0x44   : > { %3756 = vmatprep.subr.bf16.mxu1 %v4033_v60  ;;  %v4110_v60 = vld [vmem:[%s4447_s13 + $0xa4] ss:$36 sps:$4 sm:$0xff]  }
  0x45   : > { %3657 = vmatpush3.bf16.msra.mxu0 %v4076_v16  ;;  %v4138_v16 = vld [vmem:[%s4447_s13 + $0x3fc] ss:$36 sps:$4 sm:$0xff]  }
  0x46   : > { %1742 = vmatmul.mubr.bf16.gmra.mrb[16].mxu0 %v4032_v59  ;;  %1871 = vmatmul.mubr.bf16.vlgmr.msra.gmra.mrb[16].mxu1 %v4029_v58  ;;  %v4107_v58 = vld [vmem:[%s4447_s13 + $0x58] ss:$36 sps:$4 sm:$0xff]  }
  0x47   : > { %3757 = vmatpush3.bf16.msra.mxu1 %v4034_v61  ;;  %1749 = vmatprep.mubr.bf16.mxu0 %v4035_v62  ;;  %v4108_v59 = vld [vmem:[%s4447_s13 + $0x2dc] ss:$36 sps:$4 sm:$0xff]  }
  0x48   : > { %1878 = vmatprep.mubr.bf16.mxu1 %v4037_v63  ;;  %3758 = vmatprep.subr.bf16.mxu1 %v4049_v1  ;;  %v4146_v61 = vld [vmem:[%s5360_s1 + $0x218] sm:$0xff]   ;;  %v4159_v62 = vld [vmem:[%s5360_s1 + $0x220] sm:$0xff]  }
  0x49   : > { %3658 = vmatprep.subr.bf16.mxu0 %v4091_v24  ;;  %v4112_v63 = vld [vmem:[%s4447_s13 + $0x2d8] ss:$36 sps:$4 sm:$0xff]   ;;  %v4117_v1 = vld [vmem:[%s4447_s13 + $0x324] ss:$36 sps:$4 sm:$0xff]  }
  0x4a   : > { %3659 = vmatpush3.bf16.msra.mxu0 %v4092_v25  ;;  %v4153_v24 = vld [vmem:[%s4447_s13 + $0x254] ss:$36 sps:$4 sm:$0xff]   ;;  %v4157_v25 = vld [vmem:[%s4447_s13 + $0x1c] ss:$36 sps:$4 sm:$0xff]  }
  0x4b   : > { %3759 = vmatpush3.bf16.msra.mxu1 %v4050_v3  ;;  %3892 = vmatprep.subr.bf16.mxu0 %v4101_v29  ;;  %v4172_v3 = vld [vmem:[%s5360_s1 + $0x228] sm:$0xff]  }
  0x4c   : > { %3760 = vmatprep.subr.bf16.mxu1 %v4066_v9  ;;  %v4198_v9 = vld [vmem:[%s5360_s1 + $0x238] sm:$0xff]  }
  0x4e   : > { %1750 = vmatmul.mubr.bf16.gmra.mrb[20].mxu0 %v4039_v4  ;;  %1879 = vmatmul.mubr.bf16.gmra.mrb[20].mxu1 %v4040_v5  ;;  %v4121_v4 = vld [vmem:[%s4447_s13 + $0x320] ss:$36 sps:$4 sm:$0xff]   ;;  %v4122_v5 = vld [vmem:[%s4447_s13 + $0xe8] ss:$36 sps:$4 sm:$0xff]  }
  0x4f   : > { %1757 = vmatprep.mubr.bf16.mxu0 %v4043_v6  ;;  %1886 = vmatprep.mubr.bf16.mxu1 %v4045_v7  ;;  %v4185_v6 = vld [vmem:[%s5360_s1 + $0x230] sm:$0xff]  }
  0x50   : > { %3761 = vmatpush3.bf16.msra.mxu1 %v4068_v11  ;;  %v4123_v7 = vld [vmem:[%s4447_s13 + $0x36c] ss:$36 sps:$4 sm:$0xff]  }
  0x51   : > { %3762 = vmatprep.subr.bf16.mxu1 %v4083_v18  ;;  %v4128_v11 = vld [vmem:[%s4447_s13 + $0x130] ss:$36 sps:$4 sm:$0xff]   ;;  %v4142_v18 = vld [vmem:[%s4447_s13 + $0x3f8] ss:$36 sps:$4 sm:$0xff]  }
  0x54   : > { %3763 = vmatpush3.bf16.msra.mxu1 %v4084_v19  ;;  %v4143_v19 = vld [vmem:[%s4447_s13 + $0x1c0] ss:$36 sps:$4 sm:$0xff]  }
  0x55   : > { %3764 = vmatprep.subr.bf16.mxu1 %v4099_v26  ;;  %v4155_v26 = vld [vmem:[%s4447_s13 + $0x18] ss:$36 sps:$4 sm:$0xff]  }
  0x56   : > { %1758 = vmatmul.mubr.bf16.gmra.mrb[24].mxu0 %v4047_v12  ;;  %1887 = vmatmul.mubr.bf16.gmra.mrb[24].mxu1 %v4048_v13  ;;  %v4132_v12 = vld [vmem:[%s4447_s13 + $0x3b4] ss:$36 sps:$4 sm:$0xff]   ;;  %v4134_v13 = vld [vmem:[%s4447_s13 + $0x17c] ss:$36 sps:$4 sm:$0xff]  }
  0x57   : > { %1765 = vmatprep.mubr.bf16.mxu0 %v4053_v14  ;;  %1894 = vmatprep.mubr.bf16.mxu1 %v4055_v17  ;;  %v4136_v14 = vld [vmem:[%s4447_s13 + $0x3b0] ss:$36 sps:$4 sm:$0xff]   ;;  %v4140_v17 = vld [vmem:[%s4447_s13 + $0x1c4] ss:$36 sps:$4 sm:$0xff]  }
  0x58   : > { %3765 = vmatpush3.bf16.msra.mxu1 %v4100_v28  ;;  %v4160_v28 = vld [vmem:[%s4447_s13 + $0x29c] ss:$36 sps:$4 sm:$0xff]  }
  0x59   : > { %3766 = vmatprep.subr.bf16.mxu1 %v4114_v33  ;;  %v4168_v33 = vld [vmem:[%s4447_s13 + $0xac] ss:$36 sps:$4 sm:$0xff]  }
  0x5c   : > { %3767 = vmatpush3.bf16.msra.mxu1 %v4115_v35  ;;  %v4171_v35 = vld [vmem:[%s4447_s13 + $0xa8] ss:$36 sps:$4 sm:$0xff]  }
  0x5d   : > { %3768 = vmatprep.subr.bf16.mxu1 %v4129_v41  ;;  %v4181_v41 = vld [vmem:[%s4447_s13 + $0x13c] ss:$36 sps:$4 sm:$0xff]  }
  0x5e   : > { %1766 = vmatmul.mubr.bf16.gmra.mrb[28].mxu0 %v4057_v20  ;;  %1895 = vmatmul.mubr.bf16.gmra.mrb[28].mxu1 %v4058_v21  ;;  %v4147_v20 = vld [vmem:[%s4447_s13 + $0x444] ss:$36 sps:$4 sm:$0xff]   ;;  %v4149_v21 = vld [vmem:[%s4447_s13 + $0x20c] ss:$36 sps:$4 sm:$0xff]  }
  0x5f   : > { %1773 = vmatprep.mubr.bf16.mxu0 %v4059_v22  ;;  %1902 = vmatprep.mubr.bf16.mxu1 %v4061_v23  ;;  %v4151_v22 = vld [vmem:[%s4447_s13 + $0x440] ss:$36 sps:$4 sm:$0xff]   ;;  %v4152_v23 = vld [vmem:[%s4447_s13 + $0x208] ss:$36 sps:$4 sm:$0xff]  }
  0x60   : > { %3769 = vmatpush3.bf16.msra.mxu1 %v4130_v42  ;;  %v4183_v42 = vld [vmem:[%s4447_s13 + $0x370] ss:$36 sps:$4 sm:$0xff]  }
  0x61   : > { %3770 = vmatprep.subr.bf16.mxu1 %v4144_v47  ;;  %v4191_v47 = vld [vmem:[%s4447_s13 + $0x180] ss:$36 sps:$4 sm:$0xff]  }
  0x64   : > { %3771 = vmatpush3.bf16.msra.mxu1 %v4145_v48  ;;  %v4192_v48 = vld [vmem:[%s4447_s13 + $0x404] ss:$36 sps:$4 sm:$0xff]  }
  0x66   : > { %1774 = vmatmul.mubr.bf16.gmra.mrb[32].mxu0 %v4063_v27  ;;  %1903 = vmatmul.mubr.bf16.gmra.mrb[32].mxu1 %v4064_v30  ;;  %v4158_v27 = vld [vmem:[%s4447_s13 + $0x250] ss:$36 sps:$4 sm:$0xff]   ;;  %v4164_v30 = vld [vmem:[%s4447_s13 + $0x298] ss:$36 sps:$4 sm:$0xff]  }
  0x67   : > { %1781 = vmatprep.mubr.bf16.mxu0 %v4069_v31  ;;  %1910 = vmatprep.mubr.bf16.mxu1 %v4071_v32  ;;  %v4165_v31 = vld [vmem:[%s4447_s13 + $0x60] ss:$36 sps:$4 sm:$0xff]  }
  0x68   : > { %v4166_v32 = vld [vmem:[%s4447_s13 + $0x2e4] ss:$36 sps:$4 sm:$0xff]  }
  0x6e   : > { %1782 = vmatmul.mubr.bf16.gmra.mrb[36].mxu0 %v4073_v34  ;;  %1911 = vmatmul.mubr.bf16.gmra.mrb[36].mxu1 %v4074_v36  ;;  %v4170_v34 = vld [vmem:[%s4447_s13 + $0x2e0] ss:$36 sps:$4 sm:$0xff]   ;;  %v4173_v36 = vld [vmem:[%s4447_s13 + $0x32c] ss:$36 sps:$4 sm:$0xff]  }
  0x6f   : > { %1789 = vmatprep.mubr.bf16.mxu0 %v4077_v37  ;;  %1918 = vmatprep.mubr.bf16.mxu1 %v4079_v38  ;;  %v4175_v37 = vld [vmem:[%s4447_s13 + $0xf4] ss:$36 sps:$4 sm:$0xff]   ;;  %v4177_v38 = vld [vmem:[%s4447_s13 + $0x328] ss:$36 sps:$4 sm:$0xff]  }
  0x76   : > { %1790 = vmatmul.mubr.bf16.gmra.mrb[40].mxu0 %v4081_v39  ;;  %1919 = vmatmul.mubr.bf16.gmra.mrb[40].mxu1 %v4082_v40  ;;  %v4178_v39 = vld [vmem:[%s4447_s13 + $0xf0] ss:$36 sps:$4 sm:$0xff]  }
  0x77   : > { %1797 = vmatprep.mubr.bf16.mxu0 %v4085_v43  ;;  %1926 = vmatprep.mubr.bf16.mxu1 %v4087_v44  ;;  %v4179_v40 = vld [vmem:[%s4447_s13 + $0x374] ss:$36 sps:$4 sm:$0xff]   ;;  %v4186_v44 = vld [vmem:[%s4447_s13 + $0x3bc] ss:$36 sps:$4 sm:$0xff]  }
  0x78   : > { %v4184_v43 = vld [vmem:[%s4447_s13 + $0x138] ss:$36 sps:$4 sm:$0xff]  }
  0x7e   : > { %1798 = vmatmul.mubr.bf16.gmra.mrb[44].mxu0 %v4089_v45  ;;  %1927 = vmatmul.mubr.bf16.gmra.mrb[44].mxu1 %v4090_v46  ;;  %v4188_v45 = vld [vmem:[%s4447_s13 + $0x184] ss:$36 sps:$4 sm:$0xff]   ;;  %v4190_v46 = vld [vmem:[%s4447_s13 + $0x3b8] ss:$36 sps:$4 sm:$0xff]  }
  0x7f   : > { %1934 = vmatprep.mubr.bf16.mxu1 %v4093_v49  ;;  %2031 = vmatprep.mubr.bf16.mxu0 %v4097_v50  ;;  %v4194_v49 = vld [vmem:[%s4447_s13 + $0x1cc] ss:$36 sps:$4 sm:$0xff]   ;;  %v4196_v50 = vld [vmem:[%s4447_s13 + $0x400] ss:$36 sps:$4 sm:$0xff]  }
  0x86   : > { %1935 = vmatmul.mubr.bf16.gmra.mrb[48].mxu1 %v4098_v52  ;;  %2032 = vmatmul.mubr.bf16.vlgmr.msra.gmra.mrb[48].mxu0 %v4095_v51  ;;  %v4197_v51 = vld [vmem:[%s4447_s13 + $0x1c8] ss:$36 sps:$4 sm:$0xff]  }
  0x87   : > { %3893 = vmatpush3.bf16.msra.mxu0 %v4101_v29  ;;  %1942 = vmatprep.mubr.bf16.mxu1 %v4102_v53  ;;  %v4162_v29 = vld [vmem:[%s4447_s13 + $0x64] ss:$36 sps:$4 sm:$0xff]   ;;  %v4199_v52 = vld [vmem:[%s4447_s13 + $0x44c] ss:$36 sps:$4 sm:$0xff]   ;;  %v4201_v53 = vld [vmem:[%s4447_s13 + $0x214] ss:$36 sps:$4 sm:$0xff]  }
  0x88   : > { %2039 = vmatprep.mubr.bf16.mxu0 %v4104_v54  ;;  %3894 = vmatprep.subr.bf16.mxu0 %v4116_v55 }
  0x8b   : > { %3895 = vmatpush3.bf16.msra.mxu0 %v4116_v55 }
  0x8c   : > { %3896 = vmatprep.subr.bf16.mxu0 %v4131_v56 }
  0x8e   : > { %1943 = vmatmul.mubr.bf16.gmra.mrb[52].mxu1 %v4106_v57  ;;  %2040 = vmatmul.mubr.bf16.gmra.mrb[52].mxu0 %v4107_v58  ;;  %v4203_v58 = vld [vmem:[%s4447_s13 + $0x448] ss:$36 sps:$4 sm:$0xff]  }
  0x8f   : > { %1950 = vmatprep.mubr.bf16.mxu1 %v4108_v59  ;;  %2047 = vmatprep.mubr.bf16.mxu0 %v4110_v60  ;;  %v4204_v59 = vld [vmem:[%s4447_s13 + $0x210] ss:$36 sps:$4 sm:$0xff]  }
  0x90   : > { %3897 = vmatpush3.bf16.msra.mxu0 %v4131_v56 }
  0x91   : > { %3898 = vmatprep.subr.bf16.mxu0 %v4146_v61 }
  0x94   : > { %3899 = vmatpush3.bf16.msra.mxu0 %v4146_v61 }
  0x95   : > { %3900 = vmatprep.subr.bf16.mxu0 %v4159_v62 }
  0x96   : > { %1951 = vmatmul.mubr.bf16.gmra.mrb[56].mxu1 %v4112_v63  ;;  %2048 = vmatmul.mubr.bf16.gmra.mrb[56].mxu0 %v4113_v0  ;;  %v4205_v0 = vld [vmem:[%s4447_s13 + $0x25c] ss:$36 sps:$4 sm:$0xff]  }
  0x97   : > { %1958 = vmatprep.mubr.bf16.mxu1 %v4117_v1  ;;  %2055 = vmatprep.mubr.bf16.mxu0 %v4119_v2  ;;  %v4207_v1 = vld [vmem:[%s4447_s13 + $0x20] ss:$36 sps:$4 sm:$0xff]  }
  0x98   : > { %3901 = vmatpush3.bf16.msra.mxu0 %v4159_v62 }
  0x99   : > { %3902 = vmatprep.subr.bf16.mxu0 %v4172_v3 }
  0x9c   : > { %3903 = vmatpush3.bf16.msra.mxu0 %v4172_v3 }
  0x9d   : > { %3904 = vmatprep.subr.bf16.mxu0 %v4185_v6 }
  0x9e   : > { %1959 = vmatmul.mubr.bf16.gmra.mrb[60].mxu1 %v4121_v4  ;;  %2056 = vmatmul.mubr.bf16.gmra.mrb[60].mxu0 %v4122_v5 }
  0x9f   : > { %1966 = vmatprep.mubr.bf16.mxu1 %v4123_v7  ;;  %2063 = vmatprep.mubr.bf16.mxu0 %v4125_v8 }
  0xa0   : > { %3905 = vmatpush3.bf16.msra.mxu0 %v4185_v6 }
  0xa1   : > { %3906 = vmatprep.subr.bf16.mxu0 %v4198_v9 }
  0xa4   : > { %3907 = vmatpush3.bf16.msra.mxu0 %v4198_v9 }
  0xa6   : > { %1967 = vmatmul.mubr.bf16.gmra.mrb[64].mxu1 %v4127_v10  ;;  %2064 = vmatmul.mubr.bf16.gmra.mrb[64].mxu0 %v4128_v11  ;;  %v4208_v10 = vld [vmem:[%s4447_s13 + $0x258] ss:$36 sps:$4 sm:$0xff]   ;;  %v4209_v11 = vld [vmem:[%s4447_s13 + $0x68] ss:$36 sps:$4 sm:$0xff]  }
  0xa7   : > { %1974 = vmatprep.mubr.bf16.mxu1 %v4132_v12  ;;  %2071 = vmatprep.mubr.bf16.mxu0 %v4134_v13 }
  0xae   : > { %1975 = vmatmul.mubr.bf16.gmra.mrb[68].mxu1 %v4136_v14  ;;  %2072 = vmatmul.mubr.bf16.gmra.mrb[68].mxu0 %v4137_v15 }
  0xaf   : > { %1982 = vmatprep.mubr.bf16.mxu1 %v4138_v16  ;;  %2079 = vmatprep.mubr.bf16.mxu0 %v4140_v17  ;;  %v4210_v16 = vld [vmem:[%s4447_s13 + $0x2a4] ss:$36 sps:$4 sm:$0xff]   ;;  %v4212_v17 = vld [vmem:[%s4447_s13 + $0xb0] ss:$36 sps:$4 sm:$0xff]  }
  0xb6   : > { %1983 = vmatmul.mubr.bf16.gmra.mrb[72].mxu1 %v4142_v18  ;;  %2080 = vmatmul.mubr.bf16.gmra.mrb[72].mxu0 %v4143_v19 }
  0xb7   : > { %1990 = vmatprep.mubr.bf16.mxu1 %v4147_v20  ;;  %2087 = vmatprep.mubr.bf16.mxu0 %v4149_v21 }
  0xbe   : > { %1991 = vmatmul.mubr.bf16.gmra.mrb[76].mxu1 %v4151_v22  ;;  %2088 = vmatmul.mubr.bf16.gmra.mrb[76].mxu0 %v4152_v23 }
  0xbf   : > { %2095 = vmatprep.mubr.bf16.mxu0 %v4153_v24  ;;  %2192 = vmatprep.mubr.bf16.mxu1 %v4157_v25 }
  0xc6   : > { %2096 = vmatmul.mubr.bf16.gmra.mrb[80].mxu0 %v4158_v27  ;;  %2193 = vmatmul.mubr.bf16.vlgmr.msra.gmra.mrb[80].mxu1 %v4155_v26  ;;  %v4213_v26 = vld [vmem:[%s4447_s13 + $0x2a0] ss:$36 sps:$4 sm:$0xff]   ;;  %v4214_v27 = vld [vmem:[%s4447_s13 + $0xf8] ss:$36 sps:$4 sm:$0xff]  }
  0xc7   : > { %2103 = vmatprep.mubr.bf16.mxu0 %v4160_v28  ;;  %2200 = vmatprep.mubr.bf16.mxu1 %v4162_v29 }
  0xce   : > { %2104 = vmatmul.mubr.bf16.gmra.mrb[84].mxu0 %v4164_v30  ;;  %2201 = vmatmul.mubr.bf16.gmra.mrb[84].mxu1 %v4165_v31 }
  0xcf   : > { %2111 = vmatprep.mubr.bf16.mxu0 %v4166_v32  ;;  %2208 = vmatprep.mubr.bf16.mxu1 %v4168_v33  ;;  %v4215_v32 = vld [vmem:[%s4447_s13 + $0x2ec] ss:$36 sps:$4 sm:$0xff]   ;;  %v4217_v33 = vld [vmem:[%s4447_s13 + $0x140] ss:$36 sps:$4 sm:$0xff]  }
  0xd6   : > { %2112 = vmatmul.mubr.bf16.gmra.mrb[88].mxu0 %v4170_v34  ;;  %2209 = vmatmul.mubr.bf16.gmra.mrb[88].mxu1 %v4171_v35 }
  0xd7   : > { %2119 = vmatprep.mubr.bf16.mxu0 %v4173_v36  ;;  %2216 = vmatprep.mubr.bf16.mxu1 %v4175_v37 }
  0xde   : > { %2120 = vmatmul.mubr.bf16.gmra.mrb[92].mxu0 %v4177_v38  ;;  %2217 = vmatmul.mubr.bf16.gmra.mrb[92].mxu1 %v4178_v39 }
  0xdf   : > { %2127 = vmatprep.mubr.bf16.mxu0 %v4179_v40  ;;  %2224 = vmatprep.mubr.bf16.mxu1 %v4181_v41 }
  0xe6   : > { %2128 = vmatmul.mubr.bf16.gmra.mrb[96].mxu0 %v4183_v42  ;;  %2225 = vmatmul.mubr.bf16.gmra.mrb[96].mxu1 %v4184_v43  ;;  %v4218_v42 = vld [vmem:[%s4447_s13 + $0x2e8] ss:$36 sps:$4 sm:$0xff]  }
  0xe7   : > { %2135 = vmatprep.mubr.bf16.mxu0 %v4186_v44  ;;  %2232 = vmatprep.mubr.bf16.mxu1 %v4188_v45  ;;  %v4219_v43 = vld [vmem:[%s4447_s13 + $0x188] ss:$36 sps:$4 sm:$0xff]  }
  0xee   : > { %2136 = vmatmul.mubr.bf16.gmra.mrb[100].mxu0 %v4190_v46  ;;  %2233 = vmatmul.mubr.bf16.gmra.mrb[100].mxu1 %v4191_v47 }
  0xef   : > { %2143 = vmatprep.mubr.bf16.mxu0 %v4192_v48  ;;  %2240 = vmatprep.mubr.bf16.mxu1 %v4194_v49  ;;  %v4220_v48 = vld [vmem:[%s4447_s13 + $0x334] ss:$36 sps:$4 sm:$0xff]  }
  0xf0   : > { %v4222_v49 = vld [vmem:[%s4447_s13 + $0x1d0] ss:$36 sps:$4 sm:$0xff]  }
  0xf6   : > { %2144 = vmatmul.mubr.bf16.gmra.mrb[104].mxu0 %v4196_v50  ;;  %2241 = vmatmul.mubr.bf16.gmra.mrb[104].mxu1 %v4197_v51 }
  0xf7   : > { %2151 = vmatprep.mubr.bf16.mxu0 %v4199_v52  ;;  %2248 = vmatprep.mubr.bf16.mxu1 %v4201_v53 }
  0xf9   : > { %v3508_v54 = vpop.f32.mrb[0].mxu1  ;;  %v3436_v55 = vpop.f32.mrb[0].mxu0 }
  0xfa   : > { %v3509_v56 = vpop.f32.mrb[1].mxu1  ;;  %v3437_v57 = vpop.f32.mrb[1].mxu0 }
  0xfb   : > { %v4750_v60 = vadd.f32 %v3509_v56, %v3508_v54  ;;  %v3511_v61 = vpop.f32.mrb[2].mxu1  ;;  %v4752_v62 = vadd.f32 %v3437_v57, %v3436_v55  ;;  %v3439_v63 = vpop.f32.mrb[2].mxu0 }
  0xfc   : > { %v3512_v2 = vpop.f32.mrb[3].mxu1  ;;  %v3440_v3 = vpop.f32.mrb[3].mxu0 }
  0xfd   : > { %v4756_v4 = vadd.f32 %v3512_v2, %v3511_v61  ;;  %v4758_v5 = vadd.f32 %v3440_v3, %v3439_v63  ;;  %v4225_v2 = vld [vmem:[%s4447_s13 + $0x37c] ss:$36 sps:$4 sm:$0xff]  }
  0xfe   : > { %2152 = vmatmul.mubr.bf16.gmra.mrb[108].mxu0 %v4203_v58  ;;  %2249 = vmatmul.mubr.bf16.gmra.mrb[108].mxu1 %v4204_v59  ;;  %v4223_v58 = vld [vmem:[%s4447_s13 + $0x330] ss:$36 sps:$4 sm:$0xff]   ;;  %v4224_v59 = vld [vmem:[%s4447_s13 + $0x218] ss:$36 sps:$4 sm:$0xff]   ;;  %v4227_v3 = vld [vmem:[%s4447_s13 + $0x260] ss:$36 sps:$4 sm:$0xff]  }
  0xff   : > { %2256 = vmatprep.mubr.bf16.mxu1 %v4205_v0  ;;  %3908 = vmatprep.mubr.bf16.mxu0 %v4207_v1 }
 0x101   : > { %v3514_v6 = vpop.f32.mrb[4].mxu1  ;;  %v3442_v7 = vpop.f32.mrb[4].mxu0 }
 0x102   : > { %v3515_v8 = vpop.f32.mrb[5].mxu1  ;;  %v3443_v9 = vpop.f32.mrb[5].mxu0 }
 0x103   : > { %v4762_v12 = vadd.f32 %v3515_v8, %v3514_v6  ;;  %v3517_v13 = vpop.f32.mrb[6].mxu1  ;;  %v4764_v14 = vadd.f32 %v3443_v9, %v3442_v7  ;;  %v3445_v15 = vpop.f32.mrb[6].mxu0 }
 0x104   : > { %v3518_v18 = vpop.f32.mrb[7].mxu1  ;;  %v3446_v19 = vpop.f32.mrb[7].mxu0 }
 0x105   : > { %v4768_v20 = vadd.f32 %v3518_v18, %v3517_v13  ;;  %v4770_v21 = vadd.f32 %v3446_v19, %v3445_v15  ;;  %v4228_v18 = vld [vmem:[%s4447_s13 + $0x378] ss:$36 sps:$4 sm:$0xff]   ;;  %v4229_v19 = vld [vmem:[%s4447_s13 + $0x2a8] ss:$36 sps:$4 sm:$0xff]  }
 0x106   : > { %2257 = vmatmul.mubr.bf16.gmra.mrb[112].mxu1 %v4208_v10  ;;  %3909 = vmatmul.mubr.bf16.vlgmr.msra.gmra.mrb[112].mxu0 %v4209_v11 }
 0x107   : > { %2264 = vmatprep.mubr.bf16.mxu1 %v4210_v16  ;;  %3912 = vmatprep.mubr.bf16.mxu0 %v4212_v17 }
 0x109   : > { %v3520_v22 = vpop.f32.mrb[8].mxu1  ;;  %v3448_v23 = vpop.f32.mrb[8].mxu0 }
 0x10a   : > { %v3521_v24 = vpop.f32.mrb[9].mxu1  ;;  %v3449_v25 = vpop.f32.mrb[9].mxu0 }
 0x10b   : > { %v4774_v28 = vadd.f32 %v3521_v24, %v3520_v22  ;;  %v3523_v29 = vpop.f32.mrb[10].mxu1  ;;  %v4776_v30 = vadd.f32 %v3449_v25, %v3448_v23  ;;  %v3451_v31 = vpop.f32.mrb[10].mxu0  ;;  %v4230_v25 = vld [vmem:[%s4447_s13 + $0x3c4] ss:$36 sps:$4 sm:$0xff]  }
 0x10c   : > { %v3524_v34 = vpop.f32.mrb[11].mxu1  ;;  %v3452_v35 = vpop.f32.mrb[11].mxu0 }
 0x10d   : > { %v4780_v36 = vadd.f32 %v3524_v34, %v3523_v29  ;;  %v4782_v37 = vadd.f32 %v3452_v35, %v3451_v31 }
 0x10e   : > { %2265 = vmatmul.mubr.bf16.gmra.mrb[116].mxu1 %v4213_v26  ;;  %3913 = vmatmul.mubr.bf16.gmra.mrb[116].mxu0 %v4214_v27  ;;  %v4232_v26 = vld [vmem:[%s4447_s13 + $0x2f0] ss:$36 sps:$4 sm:$0xff]  }
 0x10f   : > { %2272 = vmatprep.mubr.bf16.mxu1 %v4215_v32  ;;  %3916 = vmatprep.mubr.bf16.mxu0 %v4217_v33 }
 0x111   : > { %v3526_v38 = vpop.f32.mrb[12].mxu1  ;;  %v3454_v39 = vpop.f32.mrb[12].mxu0 }
 0x112   : > { %v3527_v40 = vpop.f32.mrb[13].mxu1  ;;  %v3455_v41 = vpop.f32.mrb[13].mxu0 }
 0x113   : > { %v4786_v44 = vadd.f32 %v3527_v40, %v3526_v38  ;;  %v3529_v45 = vpop.f32.mrb[14].mxu1  ;;  %v4788_v46 = vadd.f32 %v3455_v41, %v3454_v39  ;;  %v3457_v47 = vpop.f32.mrb[14].mxu0  ;;  %v4233_v40 = vld [vmem:[%s4447_s13 + $0x3c0] ss:$36 sps:$4 sm:$0xff]   ;;  %v4234_v41 = vld [vmem:[%s4447_s13 + $0x338] ss:$36 sps:$4 sm:$0xff]  }
 0x114   : > { %v3530_v50 = vpop.f32.mrb[15].mxu1  ;;  %v3458_v51 = vpop.f32.mrb[15].mxu0 }
 0x115   : > { %v4792_v52 = vadd.f32 %v3530_v50, %v3529_v45  ;;  %v4794_v53 = vadd.f32 %v3458_v51, %v3457_v47  ;;  %v4235_v47 = vld [vmem:[%s4447_s13 + $0x40c] ss:$36 sps:$4 sm:$0xff]  }
 0x116   : > { %2273 = vmatmul.mubr.bf16.gmra.mrb[120].mxu1 %v4218_v42  ;;  %3917 = vmatmul.mubr.bf16.gmra.mrb[120].mxu0 %v4219_v43 }
 0x117   : > { %2280 = vmatprep.mubr.bf16.mxu1 %v4220_v48  ;;  %3920 = vmatprep.mubr.bf16.mxu0 %v4222_v49  ;;  %v4237_v48 = vld [vmem:[%s4447_s13 + $0x380] ss:$36 sps:$4 sm:$0xff]  }
 0x119   : > { %v3548_v54 = vpop.f32.mrb[16].mxu1  ;;  %v3460_v55 = vpop.f32.mrb[16].mxu0 }
 0x11a   : > { %v3549_v56 = vpop.f32.mrb[17].mxu1  ;;  %v3461_v57 = vpop.f32.mrb[17].mxu0 }
 0x11b   : > { %v3550_v61 = vadd.f32 %v3549_v56, %v3548_v54  ;;  %v3551_v63 = vpop.f32.mrb[18].mxu1  ;;  %v4798_v0 = vadd.f32 %v3461_v57, %v3460_v55  ;;  %v3463_v1 = vpop.f32.mrb[18].mxu0 }
 0x11c   : > { %v3552_v6 = vpop.f32.mrb[19].mxu1  ;;  %v3464_v7 = vpop.f32.mrb[19].mxu0 }
 0x11d   : > { %v4803_v8 = vadd.f32 %v3550_v61, %v4752_v62  ;;  %v3553_v9 = vadd.f32 %v3552_v6, %v3551_v63  ;;  %v4805_v10 = vadd.f32 %v3464_v7, %v3463_v1  ;;  %v4238_v61 = vld [vmem:[%s4447_s13 + $0x408] ss:$36 sps:$4 sm:$0xff]   ;;  %v4240_v6 = vld [vmem:[%s4447_s13 + $0x454] ss:$36 sps:$4 sm:$0xff]  }
 0x11e   : > { %2281 = vmatmul.mubr.bf16.gmra.mrb[124].mxu1 %v4223_v58  ;;  %3921 = vmatmul.mubr.bf16.gmra.mrb[124].mxu0 %v4224_v59  ;;  %v4239_v63 = vld [vmem:[%s4447_s13 + $0x3c8] ss:$36 sps:$4 sm:$0xff]   ;;  %v4242_v7 = vld [vmem:[%s4447_s13 + $0x410] ss:$36 sps:$4 sm:$0xff]  }
 0x11f   : > { %v4808_v11 = vadd.f32 %v3553_v9, %v4758_v5  ;;  %2288 = vmatprep.mubr.bf16.mxu1 %v4225_v2  ;;  %3924 = vmatprep.mubr.bf16.mxu0 %v4227_v3 }
 0x121   : > { %v3554_v13 = vpop.f32.mrb[20].mxu1  ;;  %v3466_v15 = vpop.f32.mrb[20].mxu0 }
 0x122   : > { %v3555_v16 = vpop.f32.mrb[21].mxu1  ;;  %v3467_v17 = vpop.f32.mrb[21].mxu0 }
 0x123   : > { %v3556_v62 = vadd.f32 %v3555_v16, %v3554_v13  ;;  %v3557_v22 = vpop.f32.mrb[22].mxu1  ;;  %v4812_v23 = vadd.f32 %v3467_v17, %v3466_v15  ;;  %v3469_v24 = vpop.f32.mrb[22].mxu0 }
 0x124   : > { %v3558_v27 = vpop.f32.mrb[23].mxu1  ;;  %v3470_v5 = vpop.f32.mrb[23].mxu0 }
 0x125   : > { %v4817_v29 = vadd.f32 %v3556_v62, %v4764_v14  ;;  %v3559_v31 = vadd.f32 %v3558_v27, %v3557_v22  ;;  %v4819_v32 = vadd.f32 %v3470_v5, %v3469_v24  ;;  %v4243_v24 = vld [vmem:[%s4447_s13 + $0x450] ss:$36 sps:$4 sm:$0xff]  }
 0x126   : > { %2289 = vmatmul.mubr.bf16.gmra.mrb[128].mxu1 %v4228_v18  ;;  %3925 = vmatmul.mubr.bf16.gmra.mrb[128].mxu0 %v4229_v19 }
 0x127   : > { %v4822_v33 = vadd.f32 %v3559_v31, %v4770_v21  ;;  %2296 = vmatprep.mubr.bf16.mxu1 %v4230_v25  ;;  %3928 = vmatprep.mubr.bf16.mxu0 %v4232_v26  ;;  %v4244_v25 = vld [vmem:[%s4447_s13 + $0x458] ss:$36 sps:$4 sm:$0xff]  }
 0x129   : > { %v3560_v34 = vpop.f32.mrb[24].mxu1  ;;  %v3472_v35 = vpop.f32.mrb[24].mxu0 }
 0x12a   : > { %v3561_v38 = vpop.f32.mrb[25].mxu1  ;;  %v3473_v39 = vpop.f32.mrb[25].mxu0 }
 0x12b   : > { %v3562_v14 = vadd.f32 %v3561_v38, %v3560_v34  ;;  %v3563_v42 = vpop.f32.mrb[26].mxu1  ;;  %v4826_v43 = vadd.f32 %v3473_v39, %v3472_v35  ;;  %v3475_v45 = vpop.f32.mrb[26].mxu0 }
 0x12c   : > { %v3564_v49 = vpop.f32.mrb[27].mxu1  ;;  %v3476_v21 = vpop.f32.mrb[27].mxu0 }
 0x12d   : > { %v4831_v50 = vadd.f32 %v3562_v14, %v4776_v30  ;;  %v3565_v51 = vadd.f32 %v3564_v49, %v3563_v42  ;;  %v4833_v54 = vadd.f32 %v3476_v21, %v3475_v45 }
 0x12e   : > { %2297 = vmatmul.mubr.bf16.gmra.mrb[132].mxu1 %v4233_v40  ;;  %3929 = vmatmul.mubr.bf16.gmra.mrb[132].mxu0 %v4234_v41 }
 0x12f   : > { %v4836_v55 = vadd.f32 %v3565_v51, %v4782_v37  ;;  %2304 = vmatprep.mubr.bf16.mxu1 %v4235_v47  ;;  %3932 = vmatprep.mubr.bf16.mxu0 %v4237_v48 }
 0x131   : > { %v3566_v56 = vpop.f32.mrb[28].mxu1  ;;  %v3478_v57 = vpop.f32.mrb[28].mxu0 }
 0x132   : > { %v3567_v58 = vpop.f32.mrb[29].mxu1  ;;  %v3479_v59 = vpop.f32.mrb[29].mxu0 }
 0x133   : > { %v3568_v30 = vadd.f32 %v3567_v58, %v3566_v56  ;;  %v3569_v1 = vpop.f32.mrb[30].mxu1  ;;  %v4840_v2 = vadd.f32 %v3479_v59, %v3478_v57  ;;  %v3481_v3 = vpop.f32.mrb[30].mxu0 }
 0x134   : > { %v3570_v9 = vpop.f32.mrb[31].mxu1  ;;  %v3482_v37 = vpop.f32.mrb[31].mxu0 }
 0x135   : > { %v4845_v13 = vadd.f32 %v3568_v30, %v4788_v46  ;;  %v3571_v15 = vadd.f32 %v3570_v9, %v3569_v1  ;;  %v4847_v16 = vadd.f32 %v3482_v37, %v3481_v3 }
 0x136   : > { %2305 = vmatmul.mubr.bf16.gmra.mrb[136].mxu1 %v4238_v61  ;;  %3933 = vmatmul.mubr.bf16.gmra.mrb[136].mxu0 %v4239_v63 }
 0x137   : > { %v4850_v17 = vadd.f32 %v3571_v15, %v4794_v53  ;;  %2312 = vmatprep.mubr.bf16.mxu1 %v4240_v6  ;;  %3936 = vmatprep.mubr.bf16.mxu0 %v4242_v7 }
 0x139   : > { %v3572_v18 = vpop.f32.mrb[32].mxu1  ;;  %v3484_v19 = vpop.f32.mrb[32].mxu0 }
 0x13a   : > { %v3573_v62 = vpop.f32.mrb[33].mxu1  ;;  %v3485_v22 = vpop.f32.mrb[33].mxu0 }
 0x13b   : > { %v3574_v26 = vadd.f32 %v3573_v62, %v3572_v18  ;;  %v3575_v27 = vpop.f32.mrb[34].mxu1  ;;  %v3486_v46 = vadd.f32 %v3485_v22, %v3484_v19  ;;  %v3487_v5 = vpop.f32.mrb[34].mxu0 }
 0x13c   : > { %v3576_v31 = vpop.f32.mrb[35].mxu1  ;;  %v3488_v34 = vpop.f32.mrb[35].mxu0 }
 0x13d   : > { %v4855_v35 = vadd.f32 %v3574_v26, %v4798_v0  ;;  %v3577_v38 = vadd.f32 %v3576_v31, %v3575_v27  ;;  %v3489_v53 = vadd.f32 %v3488_v34, %v3487_v5 }
 0x13e   : > { %2313 = vmatmul.mubr.bf16.gmra.mrb[140].mxu1 %v4243_v24  ;;  %3937 = vmatmul.mubr.bf16.gmra.mrb[140].mxu0 %v4244_v25 }
 0x13f   : > { %v4858_v39 = vadd.f32 %v3577_v38, %v4805_v10 }
 0x141   : > { %v3578_v40 = vpop.f32.mrb[36].mxu1  ;;  %v3490_v41 = vpop.f32.mrb[36].mxu0 }
 0x142   : > { %v3579_v14 = vpop.f32.mrb[37].mxu1  ;;  %v3491_v42 = vpop.f32.mrb[37].mxu0 }
 0x143   : > { %v3580_v45 = vadd.f32 %v3579_v14, %v3578_v40  ;;  %v3581_v47 = vpop.f32.mrb[38].mxu1  ;;  %v3492_v48 = vadd.f32 %v3491_v42, %v3490_v41  ;;  %v3493_v49 = vpop.f32.mrb[38].mxu0 }
 0x144   : > { %v3582_v21 = vpop.f32.mrb[39].mxu1  ;;  %v3494_v51 = vpop.f32.mrb[39].mxu0 }
 0x145   : > { %v4861_v0 = vadd.f32 %v3580_v45, %v4812_v23  ;;  %v3583_v56 = vadd.f32 %v3582_v21, %v3581_v47  ;;  %v3495_v57 = vadd.f32 %v3494_v51, %v3493_v49 }
 0x147   : > { %v4864_v58 = vadd.f32 %v3583_v56, %v4819_v32 }
 0x149   : > { %v3584_v10 = vpop.f32.mrb[40].mxu1  ;;  %v3496_v59 = vpop.f32.mrb[40].mxu0 }
 0x14a   : > { %v3585_v61 = vpop.f32.mrb[41].mxu1  ;;  %v3497_v63 = vpop.f32.mrb[41].mxu0 }
 0x14b   : > { %v3586_v30 = vadd.f32 %v3585_v61, %v3584_v10  ;;  %v3587_v1 = vpop.f32.mrb[42].mxu1  ;;  %v4866_v3 = vadd.f32 %v3497_v63, %v3496_v59  ;;  %v3499_v6 = vpop.f32.mrb[42].mxu0 }
 0x14c   : > { %v3588_v7 = vpop.f32.mrb[43].mxu1  ;;  %v3500_v9 = vpop.f32.mrb[43].mxu0 }
 0x14d   : > { %v4869_v37 = vadd.f32 %v3586_v30, %v4826_v43  ;;  %v3589_v23 = vadd.f32 %v3588_v7, %v3587_v1  ;;  %v3501_v15 = vadd.f32 %v3500_v9, %v3499_v6 }
 0x14f   : > { %v4872_v18 = vadd.f32 %v3589_v23, %v4833_v54 }
 0x151   : > { %v3590_v32 = vpop.f32.mrb[44].mxu1  ;;  %v3502_v19 = vpop.f32.mrb[44].mxu0 }
 0x152   : > { %v3591_v62 = vpop.f32.mrb[45].mxu1  ;;  %v3503_v22 = vpop.f32.mrb[45].mxu0 }
 0x153   : > { %v3592_v24 = vadd.f32 %v3591_v62, %v3590_v32  ;;  %v3593_v25 = vpop.f32.mrb[46].mxu1  ;;  %v4874_v26 = vadd.f32 %v3503_v22, %v3502_v19  ;;  %v3505_v27 = vpop.f32.mrb[46].mxu0 }
 0x154   : > { %v3594_v5 = vpop.f32.mrb[47].mxu1  ;;  %v3506_v31 = vpop.f32.mrb[47].mxu0 }
 0x155   : > { %v4877_v34 = vadd.f32 %v3592_v24, %v4840_v2  ;;  %v3595_v43 = vadd.f32 %v3594_v5, %v3593_v25  ;;  %v4879_v38 = vadd.f32 %v3506_v31, %v3505_v27 }
 0x157   : > { %v4882_v54 = vadd.f32 %v3595_v43, %v4847_v16 }
 0x159   : > { %v3596_v40 = vpop.f32.mrb[48].mxu1  ;;  %v3660_v41 = vpop.f32.mrb[48].mxu0 }
 0x15a   : > { %v3597_v14 = vpop.f32.mrb[49].mxu1  ;;  %v3661_v42 = vpop.f32.mrb[49].mxu0 }
 0x15b   : > { %v3598_v45 = vadd.f32 %v3597_v14, %v3596_v40  ;;  %v3662_v47 = vadd.f32 %v3661_v42, %v3660_v41  ;;  %v3599_v49 = vpop.f32.mrb[50].mxu1  ;;  %v3663_v21 = vpop.f32.mrb[50].mxu0 }
 0x15c   : > { %v3600_v51 = vpop.f32.mrb[51].mxu1  ;;  %v3664_v56 = vpop.f32.mrb[51].mxu0 }
 0x15d   : > { %v4884_v10 = vadd.f32 %v3598_v45, %v3486_v46  ;;  %v4887_v2 = vadd.f32 %v3662_v47, %v4803_v8  ;;  %v3601_v59 = vadd.f32 %v3600_v51, %v3599_v49  ;;  %v3665_v61 = vadd.f32 %v3664_v56, %v3663_v21 }
 0x15f   : > { %v4889_v63 = vadd.f32 %v3601_v59, %v3489_v53  ;;  %v4892_v16 = vadd.f32 %v3665_v61, %v4808_v11 }
 0x161   : > { %v3602_v30 = vpop.f32.mrb[52].mxu1  ;;  %v3666_v1 = vpop.f32.mrb[52].mxu0 }
 0x162   : > { %v3603_v6 = vpop.f32.mrb[53].mxu1  ;;  %v3667_v7 = vpop.f32.mrb[53].mxu0 }
 0x163   : > { %v3604_v9 = vadd.f32 %v3603_v6, %v3602_v30  ;;  %v3668_v23 = vadd.f32 %v3667_v7, %v3666_v1  ;;  %v3605_v32 = vpop.f32.mrb[54].mxu1  ;;  %v3669_v19 = vpop.f32.mrb[54].mxu0 }
 0x164   : > { %v3606_v46 = vpop.f32.mrb[55].mxu1  ;;  %v3670_v62 = vpop.f32.mrb[55].mxu0 }
 0x165   : > { %v4894_v22 = vadd.f32 %v3604_v9, %v3492_v48  ;;  %v4897_v8 = vadd.f32 %v3668_v23, %v4817_v29  ;;  %v3607_v53 = vadd.f32 %v3606_v46, %v3605_v32  ;;  %v3671_v24 = vadd.f32 %v3670_v62, %v3669_v19 }
 0x167   : > { %v4899_v25 = vadd.f32 %v3607_v53, %v3495_v57  ;;  %v4902_v11 = vadd.f32 %v3671_v24, %v4822_v33 }
 0x169   : > { %v3608_v27 = vpop.f32.mrb[56].mxu1  ;;  %v3672_v5 = vpop.f32.mrb[56].mxu0 }
 0x16a   : > { %v3609_v31 = vpop.f32.mrb[57].mxu1  ;;  %v3673_v43 = vpop.f32.mrb[57].mxu0 }
 0x16b   : > { %v3610_v40 = vadd.f32 %v3609_v31, %v3608_v27  ;;  %v3674_v41 = vadd.f32 %v3673_v43, %v3672_v5  ;;  %v3611_v14 = vpop.f32.mrb[58].mxu1  ;;  %v3675_v42 = vpop.f32.mrb[58].mxu0 }
 0x16c   : > { %v3612_v48 = vpop.f32.mrb[59].mxu1  ;;  %v3676_v45 = vpop.f32.mrb[59].mxu0 }
 0x16d   : > { %v4905_v29 = vadd.f32 %v3610_v40, %v4866_v3  ;;  %v4908_v47 = vadd.f32 %v3674_v41, %v4831_v50  ;;  %v3613_v57 = vadd.f32 %v3612_v48, %v3611_v14  ;;  %v3677_v49 = vadd.f32 %v3676_v45, %v3675_v42 }
 0x16f   : > { %v4910_v33 = vadd.f32 %v3613_v57, %v3501_v15  ;;  %v4913_v21 = vadd.f32 %v3677_v49, %v4836_v55 }
 0x171   : > { %v3614_v51 = vpop.f32.mrb[60].mxu1  ;;  %v3678_v56 = vpop.f32.mrb[60].mxu0 }
 0x172   : > { %v3615_v59 = vpop.f32.mrb[61].mxu1  ;;  %v3679_v61 = vpop.f32.mrb[61].mxu0 }
 0x173   : > { %v3616_v30 = vadd.f32 %v3615_v59, %v3614_v51  ;;  %v3680_v1 = vadd.f32 %v3679_v61, %v3678_v56  ;;  %v3617_v6 = vpop.f32.mrb[62].mxu1  ;;  %v3681_v7 = vpop.f32.mrb[62].mxu0 }
 0x174   : > { %v3618_v3 = vpop.f32.mrb[63].mxu1  ;;  %v3682_v9 = vpop.f32.mrb[63].mxu0 }
 0x175   : > { %v4916_v50 = vadd.f32 %v3616_v30, %v4874_v26  ;;  %v4919_v23 = vadd.f32 %v3680_v1, %v4845_v13  ;;  %v3619_v15 = vadd.f32 %v3618_v3, %v3617_v6  ;;  %v3683_v32 = vadd.f32 %v3682_v9, %v3681_v7 }
 0x177   : > { %v4922_v55 = vadd.f32 %v3619_v15, %v4879_v38  ;;  %v4925_v19 = vadd.f32 %v3683_v32, %v4850_v17 }
 0x179   : > { %v3620_v46 = vpop.f32.mrb[64].mxu1  ;;  %v3684_v62 = vpop.f32.mrb[64].mxu0 }
 0x17a   : > { %v3621_v53 = vpop.f32.mrb[65].mxu1  ;;  %v3685_v24 = vpop.f32.mrb[65].mxu0 }
 0x17b   : > { %v3622_v27 = vadd.f32 %v3621_v53, %v3620_v46  ;;  %v3686_v5 = vadd.f32 %v3685_v24, %v3684_v62  ;;  %v3623_v31 = vpop.f32.mrb[66].mxu1  ;;  %v3687_v26 = vpop.f32.mrb[66].mxu0 }
 0x17c   : > { %v3624_v43 = vpop.f32.mrb[67].mxu1  ;;  %v3688_v40 = vpop.f32.mrb[67].mxu0 }
 0x17d   : > { %v4928_v13 = vadd.f32 %v3622_v27, %v4750_v60  ;;  %v4931_v41 = vadd.f32 %v3686_v5, %v4855_v35  ;;  %v3625_v38 = vadd.f32 %v3624_v43, %v3623_v31  ;;  %v3689_v14 = vadd.f32 %v3688_v40, %v3687_v26 }
 0x17f   : > { %v4934_v17 = vadd.f32 %v3625_v38, %v4756_v4  ;;  %v4937_v42 = vadd.f32 %v3689_v14, %v4858_v39 }
 0x181   : > { %v3626_v48 = vpop.f32.mrb[68].mxu1  ;;  %v3690_v45 = vpop.f32.mrb[68].mxu0 }
 0x182   : > { %v3627_v57 = vpop.f32.mrb[69].mxu1  ;;  %v3691_v49 = vpop.f32.mrb[69].mxu0 }
 0x183   : > { %v3628_v51 = vadd.f32 %v3627_v57, %v3626_v48  ;;  %v3692_v56 = vadd.f32 %v3691_v49, %v3690_v45  ;;  %v3629_v59 = vpop.f32.mrb[70].mxu1  ;;  %v3693_v60 = vpop.f32.mrb[70].mxu0 }
 0x184   : > { %v3630_v61 = vpop.f32.mrb[71].mxu1  ;;  %v3694_v30 = vpop.f32.mrb[71].mxu0 }
 0x185   : > { %v4940_v35 = vadd.f32 %v3628_v51, %v4762_v12  ;;  %v4943_v1 = vadd.f32 %v3692_v56, %v4861_v0  ;;  %v3631_v4 = vadd.f32 %v3630_v61, %v3629_v59  ;;  %v3695_v6 = vadd.f32 %v3694_v30, %v3693_v60 }
 0x187   : > { %v4946_v39 = vadd.f32 %v3631_v4, %v4768_v20  ;;  %v4949_v7 = vadd.f32 %v3695_v6, %v4864_v58 }
 0x189   : > { %v3632_v3 = vpop.f32.mrb[72].mxu1  ;;  %v3696_v9 = vpop.f32.mrb[72].mxu0 }
 0x18a   : > { %v3633_v15 = vpop.f32.mrb[73].mxu1  ;;  %v3697_v32 = vpop.f32.mrb[73].mxu0 }
 0x18b   : > { %v3634_v46 = vadd.f32 %v3633_v15, %v3632_v3  ;;  %v3698_v62 = vadd.f32 %v3697_v32, %v3696_v9  ;;  %v3635_v53 = vpop.f32.mrb[74].mxu1  ;;  %v3699_v12 = vpop.f32.mrb[74].mxu0 }
 0x18c   : > { %v3636_v24 = vpop.f32.mrb[75].mxu1  ;;  %v3700_v27 = vpop.f32.mrb[75].mxu0 }
 0x18d   : > { %v4952_v0 = vadd.f32 %v3634_v46, %v4774_v28  ;;  %v4955_v5 = vadd.f32 %v3698_v62, %v4869_v37  ;;  %v3637_v20 = vadd.f32 %v3636_v24, %v3635_v53  ;;  %v3701_v31 = vadd.f32 %v3700_v27, %v3699_v12 }
 0x18f   : > { %v4958_v58 = vadd.f32 %v3637_v20, %v4780_v36  ;;  %v4961_v26 = vadd.f32 %v3701_v31, %v4872_v18 }
 0x191   : > { %v3638_v43 = vpop.f32.mrb[76].mxu1  ;;  %v3702_v40 = vpop.f32.mrb[76].mxu0 }
 0x192   : > { %v3639_v38 = vpop.f32.mrb[77].mxu1  ;;  %v3703_v14 = vpop.f32.mrb[77].mxu0 }
 0x193   : > { %v3640_v48 = vadd.f32 %v3639_v38, %v3638_v43  ;;  %v3704_v45 = vadd.f32 %v3703_v14, %v3702_v40  ;;  %v3641_v57 = vpop.f32.mrb[78].mxu1  ;;  %v3705_v28 = vpop.f32.mrb[78].mxu0 }
 0x194   : > { %v3642_v49 = vpop.f32.mrb[79].mxu1  ;;  %v3706_v51 = vpop.f32.mrb[79].mxu0 }
 0x195   : > { %v4964_v37 = vadd.f32 %v3640_v48, %v4786_v44  ;;  %v4967_v56 = vadd.f32 %v3704_v45, %v4877_v34  ;;  %v3643_v36 = vadd.f32 %v3642_v49, %v3641_v57  ;;  %v3707_v59 = vadd.f32 %v3706_v51, %v3705_v28 }
 0x197   : > { %v4970_v18 = vadd.f32 %v3643_v36, %v4792_v52  ;;  %v4973_v60 = vadd.f32 %v3707_v59, %v4882_v54 }
 0x199   : > { %v3708_v61 = vpop.f32.mrb[80].mxu0  ;;  %v3772_v30 = vpop.f32.mrb[80].mxu1 }
 0x19a   : > { %v3709_v4 = vpop.f32.mrb[81].mxu0  ;;  %v3773_v6 = vpop.f32.mrb[81].mxu1 }
 0x19b   : > { %v3710_v3 = vadd.f32 %v3709_v4, %v3708_v61  ;;  %v3774_v9 = vadd.f32 %v3773_v6, %v3772_v30  ;;  %v3711_v15 = vpop.f32.mrb[82].mxu0  ;;  %v3775_v44 = vpop.f32.mrb[82].mxu1 }
 0x19c   : > { %v3712_v32 = vpop.f32.mrb[83].mxu0  ;;  %v3776_v46 = vpop.f32.mrb[83].mxu1 }
 0x19d   : > { %v4976_v34 = vadd.f32 %v3710_v3, %v4884_v10  ;;  %v3713_v62 = vadd.f32 %v3712_v32, %v3711_v15  ;;  %v3777_v53 = vadd.f32 %v3776_v46, %v3775_v44  ;;  %v4979_v52 = vadd.f32 %v3774_v9, %v4887_v2 }
 0x19f   : > { %v4982_v54 = vadd.f32 %v3713_v62, %v4889_v63  ;;  %v4985_v12 = vadd.f32 %v3777_v53, %v4892_v16 }
 0x1a1   : > { %v3714_v24 = vpop.f32.mrb[84].mxu0  ;;  %v3778_v27 = vpop.f32.mrb[84].mxu1 }
 0x1a2   : > { %v3715_v20 = vpop.f32.mrb[85].mxu0  ;;  %v3779_v31 = vpop.f32.mrb[85].mxu1 }
 0x1a3   : > { %v3716_v43 = vadd.f32 %v3715_v20, %v3714_v24  ;;  %v3780_v40 = vadd.f32 %v3779_v31, %v3778_v27  ;;  %v3717_v38 = vpop.f32.mrb[86].mxu0  ;;  %v3781_v10 = vpop.f32.mrb[86].mxu1 }
 0x1a4   : > { %v3718_v14 = vpop.f32.mrb[87].mxu0  ;;  %v3782_v48 = vpop.f32.mrb[87].mxu1 }
 0x1a5   : > { %v4988_v45 = vadd.f32 %v3716_v43, %v4894_v22  ;;  %v3719_v2 = vadd.f32 %v3718_v14, %v3717_v38  ;;  %v3783_v57 = vadd.f32 %v3782_v48, %v3781_v10  ;;  %v4991_v63 = vadd.f32 %v3780_v40, %v4897_v8 }
 0x1a7   : > { %v4994_v16 = vadd.f32 %v3719_v2, %v4899_v25  ;;  %v4997_v28 = vadd.f32 %v3783_v57, %v4902_v11 }
 0x1a9   : > { %v3720_v49 = vpop.f32.mrb[88].mxu0  ;;  %v3784_v51 = vpop.f32.mrb[88].mxu1 }
 0x1aa   : > { %v3721_v36 = vpop.f32.mrb[89].mxu0  ;;  %v3785_v59 = vpop.f32.mrb[89].mxu1 }
 0x1ab   : > { %v3722_v61 = vadd.f32 %v3721_v36, %v3720_v49  ;;  %v3786_v30 = vadd.f32 %v3785_v59, %v3784_v51  ;;  %v3723_v4 = vpop.f32.mrb[90].mxu0  ;;  %v3787_v22 = vpop.f32.mrb[90].mxu1 }
 0x1ac   : > { %v3724_v6 = vpop.f32.mrb[91].mxu0  ;;  %v3788_v3 = vpop.f32.mrb[91].mxu1 }
 0x1ad   : > { %v5000_v9 = vadd.f32 %v3722_v61, %v4905_v29  ;;  %v3725_v8 = vadd.f32 %v3724_v6, %v3723_v4  ;;  %v3789_v15 = vadd.f32 %v3788_v3, %v3787_v22  ;;  %v5003_v25 = vadd.f32 %v3786_v30, %v4908_v47 }
 0x1af   : > { %v5006_v11 = vadd.f32 %v3725_v8, %v4910_v33  ;;  %v5009_v44 = vadd.f32 %v3789_v15, %v4913_v21 }
 0x1b1   : > { %v3726_v32 = vpop.f32.mrb[92].mxu0  ;;  %v3790_v46 = vpop.f32.mrb[92].mxu1 }
 0x1b2   : > { %v3727_v62 = vpop.f32.mrb[93].mxu0  ;;  %v3791_v53 = vpop.f32.mrb[93].mxu1 }
 0x1b3   : > { %v3728_v24 = vadd.f32 %v3727_v62, %v3726_v32  ;;  %v3792_v27 = vadd.f32 %v3791_v53, %v3790_v46  ;;  %v3729_v20 = vpop.f32.mrb[94].mxu0  ;;  %v3793_v29 = vpop.f32.mrb[94].mxu1 }
 0x1b4   : > { %v3730_v31 = vpop.f32.mrb[95].mxu0  ;;  %v3794_v43 = vpop.f32.mrb[95].mxu1 }
 0x1b5   : > { %v5012_v40 = vadd.f32 %v3728_v24, %v4916_v50  ;;  %v3731_v47 = vadd.f32 %v3730_v31, %v3729_v20  ;;  %v3795_v38 = vadd.f32 %v3794_v43, %v3793_v29  ;;  %v5015_v33 = vadd.f32 %v3792_v27, %v4919_v23 }
 0x1b7   : > { %v5018_v21 = vadd.f32 %v3731_v47, %v4922_v55  ;;  %v5021_v10 = vadd.f32 %v3795_v38, %v4925_v19 }
 0x1b9   : > { %v3732_v14 = vpop.f32.mrb[96].mxu0  ;;  %v3796_v48 = vpop.f32.mrb[96].mxu1 }
 0x1ba   : > { %v3733_v2 = vpop.f32.mrb[97].mxu0  ;;  %v3797_v57 = vpop.f32.mrb[97].mxu1 }
 0x1bb   : > { %v3734_v49 = vadd.f32 %v3733_v2, %v3732_v14  ;;  %v3798_v51 = vadd.f32 %v3797_v57, %v3796_v48  ;;  %v3735_v36 = vpop.f32.mrb[98].mxu0  ;;  %v3799_v50 = vpop.f32.mrb[98].mxu1 }
 0x1bc   : > { %v3736_v59 = vpop.f32.mrb[99].mxu0  ;;  %v3800_v61 = vpop.f32.mrb[99].mxu1 }
 0x1bd   : > { %v5024_v30 = vadd.f32 %v3734_v49, %v4928_v13  ;;  %v3737_v23 = vadd.f32 %v3736_v59, %v3735_v36  ;;  %v3801_v4 = vadd.f32 %v3800_v61, %v3799_v50  ;;  %v5027_v55 = vadd.f32 %v3798_v51, %v4931_v41 }
 0x1bf   : > { %v5030_v19 = vadd.f32 %v3737_v23, %v4934_v17  ;;  %v5033_v22 = vadd.f32 %v3801_v4, %v4937_v42 }
 0x1c1   : > { %v3738_v6 = vpop.f32.mrb[100].mxu0  ;;  %v3802_v3 = vpop.f32.mrb[100].mxu1 }
 0x1c2   : > { %v3739_v8 = vpop.f32.mrb[101].mxu0  ;;  %v3803_v15 = vpop.f32.mrb[101].mxu1 }
 0x1c3   : > { %v3740_v32 = vadd.f32 %v3739_v8, %v3738_v6  ;;  %v3804_v46 = vadd.f32 %v3803_v15, %v3802_v3  ;;  %v3741_v62 = vpop.f32.mrb[102].mxu0  ;;  %v3805_v13 = vpop.f32.mrb[102].mxu1 }
 0x1c4   : > { %v3742_v53 = vpop.f32.mrb[103].mxu0  ;;  %v3806_v24 = vpop.f32.mrb[103].mxu1 }
 0x1c5   : > { %v5036_v27 = vadd.f32 %v3740_v32, %v4940_v35  ;;  %v3743_v41 = vadd.f32 %v3742_v53, %v3741_v62  ;;  %v3807_v20 = vadd.f32 %v3806_v24, %v3805_v13  ;;  %v5039_v17 = vadd.f32 %v3804_v46, %v4943_v1 }
 0x1c7   : > { %v5042_v42 = vadd.f32 %v3743_v41, %v4946_v39  ;;  %v5045_v29 = vadd.f32 %v3807_v20, %v4949_v7  ;;  %v5074_v41 = vld [vmem:[%s5361_s2] ss:$0 sm:$0xff] }
 0x1c9   : > { %v3744_v31 = vpop.f32.mrb[104].mxu0  ;;  %v3808_v43 = vpop.f32.mrb[104].mxu1 }
 0x1ca   : > { %v3745_v47 = vpop.f32.mrb[105].mxu0  ;;  %v3809_v38 = vpop.f32.mrb[105].mxu1 }
 0x1cb   : > { %v3746_v14 = vadd.f32 %v3745_v47, %v3744_v31  ;;  %v3810_v48 = vadd.f32 %v3809_v38, %v3808_v43  ;;  %v3747_v2 = vpop.f32.mrb[106].mxu0  ;;  %v3811_v35 = vpop.f32.mrb[106].mxu1 }
 0x1cc   : > { %v3748_v57 = vpop.f32.mrb[107].mxu0  ;;  %v3812_v49 = vpop.f32.mrb[107].mxu1 }
 0x1cd   : > { %v5048_v51 = vadd.f32 %v3746_v14, %v4952_v0  ;;  %v3749_v1 = vadd.f32 %v3748_v57, %v3747_v2  ;;  %v3813_v36 = vadd.f32 %v3812_v49, %v3811_v35  ;;  %v5051_v39 = vadd.f32 %v3810_v48, %v4955_v5 }
 0x1cf   : > { %v5054_v7 = vadd.f32 %v3749_v1, %v4958_v58  ;;  %v5057_v50 = vadd.f32 %v3813_v36, %v4961_v26 }
 0x1d1   : > { %v3750_v59 = vpop.f32.mrb[108].mxu0  ;;  %v3814_v61 = vpop.f32.mrb[108].mxu1 }
 0x1d2   : > { %v3751_v23 = vpop.f32.mrb[109].mxu0  ;;  %v3815_v4 = vpop.f32.mrb[109].mxu1 }
 0x1d3   : > { %v3752_v6 = vadd.f32 %v3751_v23, %v3750_v59  ;;  %v3816_v3 = vadd.f32 %v3815_v4, %v3814_v61  ;;  %v3753_v8 = vpop.f32.mrb[110].mxu0  ;;  %v3817_v0 = vpop.f32.mrb[110].mxu1 }
 0x1d4   : > { %v3754_v15 = vpop.f32.mrb[111].mxu0  ;;  %v3818_v32 = vpop.f32.mrb[111].mxu1 }
 0x1d5   : > { %v5060_v46 = vadd.f32 %v3752_v6, %v4964_v37  ;;  %v3755_v5 = vadd.f32 %v3754_v15, %v3753_v8  ;;  %v3819_v62 = vadd.f32 %v3818_v32, %v3817_v0  ;;  %v5063_v58 = vadd.f32 %v3816_v3, %v4967_v56  ;;  %v5080_v56 = vld [vmem:[%s5362_s3] ss:$0 sm:$0xff] }
 0x1d7   : > { %v5066_v26 = vadd.f32 %v3755_v5, %v4970_v18  ;;  %v5069_v13 = vadd.f32 %v3819_v62, %v4973_v60 }
 0x1d9   : > { %v3820_v53 = vpop.f32.mrb[112].mxu1  ;;  %v3910_v24 = vpop.f32.mrb[112].mxu0 }
 0x1da   : > { %v2364_v37 = vadd.f32 %v3910_v24, %v4991_v63  ;;  %v3821_v20 = vpop.f32.mrb[113].mxu1  ;;  %v2355_v31 = vpop.f32.mrb[113].mxu0 }
 0x1db   : > { %v3822_v18 = vadd.f32 %v3821_v20, %v3820_v53  ;;  %v2356_v60 = vadd.f32 %v2355_v31, %v4979_v52  ;;  %v3823_v43 = vpop.f32.mrb[114].mxu1  ;;  %v3911_v47 = vpop.f32.mrb[114].mxu0 }
 0x1dc   : > { %v2491_v38 = vmul.f32 %v5074_v41, %v2364_v37  ;;  %v2367_v14 = vadd.f32 %v3911_v47, %v4997_v28  ;;  %v3824_v48 = vpop.f32.mrb[115].mxu1  ;;  %v2358_v2 = vpop.f32.mrb[115].mxu0 }
 0x1dd   : > { %v2489_v63 = vmul.f32 %v5074_v41, %v2356_v60  ;;  %v3825_v35 = vadd.f32 %v3824_v48, %v3823_v43  ;;  %v2359_v57 = vadd.f32 %v2358_v2, %v4985_v12  ;;  %v5088_v49 = vadd.f32 %v3822_v18, %v4976_v34 }
 0x1de   : > { %v5091_v1 = vadd.f32 %v5080_v56, %v2491_v38  ;;  %v2492_v52 = vmul.f32 %v5074_v41, %v2367_v14 }
 0x1df   : > { %v5095_v36 = vadd.f32 %v5080_v56, %v2489_v63  ;;  %v2490_v28 = vmul.f32 %v5074_v41, %v2359_v57  ;;  %v5099_v59 = vadd.f32 %v3825_v35, %v4982_v54 }
 0x1e0   : > { %v3229_v61 = vmul.f32 -1.442695, %v5091_v1  ;;  %v5103_v12 = vadd.f32 %v5080_v56, %v2492_v52 }
 0x1e1   : > { %v3227_v34 = vmul.f32 -1.442695, %v5095_v36  ;;  %v5107_v23 = vadd.f32 %v5080_v56, %v2490_v28  ;;  %v3826_v4 = vpop.f32.mrb[116].mxu1  ;;  %v3914_v6 = vpop.f32.mrb[116].mxu0 }
 0x1e2   : > { %4245 = vpow2.f32 %v3229_v61  ;;  %v3230_v3 = vmul.f32 -1.442695, %v5103_v12  ;;  %v2380_v8 = vadd.f32 %v3914_v6, %v5015_v33  ;;  %v3827_v0 = vpop.f32.mrb[117].mxu1  ;;  %v2371_v54 = vpop.f32.mrb[117].mxu0 }
 0x1e3   : > { %4247 = vpow2.f32 %v3227_v34  ;;  %v3228_v15 = vmul.f32 -1.442695, %v5107_v23  ;;  %v3828_v32 = vadd.f32 %v3827_v0, %v3826_v4  ;;  %v2372_v5 = vadd.f32 %v2371_v54, %v5003_v25  ;;  %v3829_v62 = vpop.f32.mrb[118].mxu1  ;;  %v3915_v53 = vpop.f32.mrb[118].mxu0 }
 0x1e4   : > { %4249 = vpow2.f32 %v3230_v3  ;;  %v2495_v24 = vmul.f32 %v5074_v41, %v2380_v8  ;;  %v2383_v37 = vadd.f32 %v3915_v53, %v5021_v10  ;;  %v3830_v20 = vpop.f32.mrb[119].mxu1  ;;  %v2374_v31 = vpop.f32.mrb[119].mxu0 }
 0x1e5   : > { %4251 = vpow2.f32 %v3228_v15  ;;  %v2493_v33 = vmul.f32 %v5074_v41, %v2372_v5  ;;  %v3831_v18 = vadd.f32 %v3830_v20, %v3829_v62  ;;  %v2375_v60 = vadd.f32 %v2374_v31, %v5009_v44 }
 0x1e6   : > { %v5118_v43 = vadd.f32 %v5080_v56, %v2495_v24  ;;  %v2496_v25 = vmul.f32 %v5074_v41, %v2383_v37  ;;  %v5122_v47 = vadd.f32 %v3828_v32, %v4988_v45 }
 0x1e7   : > { %v5125_v38 = vadd.f32 %v5080_v56, %v2493_v33  ;;  %v2494_v10 = vmul.f32 %v5074_v41, %v2375_v60  ;;  %v5129_v14 = vadd.f32 %v3831_v18, %v4994_v16 }
 0x1e8   : > { %v3233_v48 = vmul.f32 -1.442695, %v5118_v43  ;;  %v5133_v44 = vadd.f32 %v5080_v56, %v2496_v25 }
 0x1e9   : > { %v3231_v2 = vmul.f32 -1.442695, %v5125_v38  ;;  %v5137_v63 = vadd.f32 %v5080_v56, %v2494_v10  ;;  %v3832_v45 = vpop.f32.mrb[120].mxu1  ;;  %v3918_v35 = vpop.f32.mrb[120].mxu0 }
 0x1ea   : > { %4253 = vpow2.f32 %v3233_v48  ;;  %v3234_v57 = vmul.f32 -1.442695, %v5133_v44  ;;  %v2396_v52 = vadd.f32 %v3918_v35, %v5039_v17  ;;  %v3833_v28 = vpop.f32.mrb[121].mxu1  ;;  %v2387_v16 = vpop.f32.mrb[121].mxu0 }
 0x1eb   : > { %4255 = vpow2.f32 %v3231_v2  ;;  %v3232_v61 = vmul.f32 -1.442695, %v5137_v63  ;;  %v3834_v34 = vadd.f32 %v3833_v28, %v3832_v45  ;;  %v2388_v4 = vadd.f32 %v2387_v16, %v5027_v55  ;;  %v3835_v6 = vpop.f32.mrb[122].mxu1  ;;  %v3919_v3 = vpop.f32.mrb[122].mxu0 }
 0x1ec   : > { %v4246_v8 = vpop.eup %4245  ;;  %4257 = vpow2.f32 %v3234_v57  ;;  %v2499_v0 = vmul.f32 %v5074_v41, %v2396_v52  ;;  %v2399_v54 = vadd.f32 %v3919_v3, %v5045_v29  ;;  %v3836_v15 = vpop.f32.mrb[123].mxu1 }
 0x1ed   : > { %v2390_v32 = vpop.f32.mrb[123].mxu0  ;;  %v4248_v5 = vpop.eup %4247  ;;  %v2658_v17 = vadd.f32 1.0, %v4246_v8  ;;  %4259 = vpow2.f32 %v3232_v61  ;;  %v2497_v62 = vmul.f32 %v5074_v41, %v2388_v4  ;;  %v3837_v53 = vadd.f32 %v3836_v15, %v3835_v6 }
 0x1ee   : > { %v4250_v24 = vpop.eup %4249  ;;  %v2656_v37 = vadd.f32 1.0, %v4248_v5  ;;  %v5147_v55 = vadd.f32 %v5080_v56, %v2499_v0  ;;  %v2500_v20 = vmul.f32 %v5074_v41, %v2399_v54  ;;  %v2391_v31 = vadd.f32 %v2390_v32, %v5033_v22 }
 0x1ef   : > { %v4252_v33 = vpop.eup %4251  ;;  %4261 = vrcp.f32 %v2658_v17  ;;  %v2659_v29 = vadd.f32 1.0, %v4250_v24  ;;  %v5152_v18 = vadd.f32 %v5080_v56, %v2497_v62  ;;  %v5155_v60 = vadd.f32 %v3834_v34, %v5000_v9 }
 0x1f0   : > { %4263 = vrcp.f32 %v2656_v37  ;;  %v2657_v25 = vadd.f32 1.0, %v4252_v33  ;;  %v3237_v10 = vmul.f32 -1.442695, %v5147_v55  ;;  %v5159_v48 = vadd.f32 %v5080_v56, %v2500_v20 }
 0x1f1   : > { %4265 = vrcp.f32 %v2659_v29  ;;  %v3235_v2 = vmul.f32 -1.442695, %v5152_v18  ;;  %v2498_v22 = vmul.f32 %v5074_v41, %v2391_v31  ;;  %v3838_v45 = vpop.f32.mrb[124].mxu1  ;;  %v3922_v35 = vpop.f32.mrb[124].mxu0  ;;  %v5164_v57 = vadd.f32 %v3837_v53, %v5006_v11 }
 0x1f2   : > { %4267 = vrcp.f32 %v2657_v25  ;;  %v3238_v9 = vmul.f32 -1.442695, %v5159_v48  ;;  %v2412_v52 = vadd.f32 %v3922_v35, %v5063_v58  ;;  %v3839_v28 = vpop.f32.mrb[125].mxu1  ;;  %v2403_v16 = vpop.f32.mrb[125].mxu0 }
 0x1f3   : > { %4269 = vpow2.f32 %v3237_v10  ;;  %v5169_v61 = vadd.f32 %v5080_v56, %v2498_v22  ;;  %v3840_v34 = vadd.f32 %v3839_v28, %v3838_v45  ;;  %v2404_v4 = vadd.f32 %v2403_v16, %v5051_v39  ;;  %v3841_v6 = vpop.f32.mrb[126].mxu1  ;;  %v3923_v3 = vpop.f32.mrb[126].mxu0 }
 0x1f4   : > { %v4254_v8 = vpop.eup %4253  ;;  %4271 = vpow2.f32 %v3235_v2  ;;  %v2503_v11 = vmul.f32 %v5074_v41, %v2412_v52  ;;  %v2415_v0 = vadd.f32 %v3923_v3, %v5069_v13  ;;  %v3842_v54 = vpop.f32.mrb[127].mxu1 }
 0x1f5   : > { %v2406_v15 = vpop.f32.mrb[127].mxu0  ;;  %v4256_v58 = vpop.eup %4255  ;;  %v2662_v32 = vadd.f32 1.0, %v4254_v8  ;;  %4273 = vpow2.f32 %v3238_v9  ;;  %v3236_v5 = vmul.f32 -1.442695, %v5169_v61  ;;  %v2501_v17 = vmul.f32 %v5074_v41, %v2404_v4 }
 0x1f6   : > { %v4258_v62 = vpop.eup %4257  ;;  %v2660_v53 = vadd.f32 1.0, %v4256_v58  ;;  %v5177_v39 = vadd.f32 %v5080_v56, %v2503_v11  ;;  %v2504_v24 = vmul.f32 %v5074_v41, %v2415_v0  ;;  %v5180_v37 = vadd.f32 %v3842_v54, %v3841_v6 }
 0x1f7   : > { %v4260_v20 = vpop.eup %4259  ;;  %4275 = vrcp.f32 %v2662_v32  ;;  %v2663_v13 = vadd.f32 1.0, %v4258_v62  ;;  %v5183_v31 = vadd.f32 %v5080_v56, %v2501_v17  ;;  %v2407_v33 = vadd.f32 %v2406_v15, %v5057_v50 }
 0x1f8   : > { %4277 = vrcp.f32 %v2660_v53  ;;  %v2661_v29 = vadd.f32 1.0, %v4260_v20  ;;  %v3241_v25 = vmul.f32 -1.442695, %v5177_v39  ;;  %v5188_v10 = vadd.f32 %v5080_v56, %v2504_v24 }
 0x1f9   : > { %v4262_v2 = vpop.eup %4261  ;;  %4279 = vrcp.f32 %v2663_v13  ;;  %v3239_v22 = vmul.f32 -1.442695, %v5183_v31  ;;  %v2502_v45 = vmul.f32 %v5074_v41, %v2407_v33  ;;  %v3844_v35 = vpop.f32.mrb[128].mxu1  ;;  %v2283_v52 = vadd.f32 %v3840_v34, %v5012_v40 }
 0x1fa   : > { %v3926_v9 = vpop.f32.mrb[128].mxu0  ;;  %v4264_v28 = vpop.eup %4263  ;;  %v2754_v50 = vmul.f32 %v4262_v2, %v5091_v1  ;;  %4281 = vrcp.f32 %v2661_v29  ;;  %v3242_v16 = vmul.f32 -1.442695, %v5188_v10 }
 0x1fb   : > { %v2428_v4 = vadd.f32 %v3926_v9, %v5122_v47  ;;  %v3845_v6 = vpop.f32.mrb[129].mxu1  ;;  %v2419_v3 = vpop.f32.mrb[129].mxu0  ;;  %v2752_v11 = vmul.f32 %v4264_v28, %v5095_v36  ;;  %4283 = vpow2.f32 %v3236_v5  ;;  %v5199_v0 = vadd.f32 %v5080_v56, %v2502_v45 }
 0x1fc   : > { %v4266_v8 = vpop.eup %4265  ;;  %v5201_v54 = vadd.f32 %v3845_v6, %v3844_v35  ;;  %v3847_v40 = vpop.f32.mrb[130].mxu1  ;;  %4285 = vpow2.f32 %v3241_v25  ;;  %v2420_v47 = vadd.f32 %v2419_v3, %v5088_v49 }
 0x1fd   : > { %v3927_v34 = vpop.f32.mrb[130].mxu0  ;;  %v4268_v1 = vpop.eup %4267  ;;  %v2755_v15 = vmul.f32 %v4266_v8, %v5103_v12  ;;  %v2507_v58 = vmul.f32 %v5074_v41, %v2428_v4  ;;  %4287 = vpow2.f32 %v3239_v22  ;;  %v3240_v5 = vmul.f32 -1.442695, %v5199_v0 }
 0x1fe   : > { %v3848_v32 = vpop.f32.mrb[131].mxu1  ;;  %v2422_v17 = vpop.f32.mrb[131].mxu0  ;;  %v2753_v36 = vmul.f32 %v4268_v1, %v5107_v23  ;;  %v2431_v12 = vadd.f32 %v3927_v34, %v5129_v14  ;;  %4289 = vpow2.f32 %v3242_v16  ;;  %v2505_v25 = vmul.f32 %v5074_v41, %v2420_v47 }
 0x1ff   : > { %v4270_v62 = vpop.eup %4269  ;;  %v3333_v24 = vpack.c.bf16 %v2755_v15, %v2754_v50  ;;  %v5215_v20 = vadd.f32 %v5080_v56, %v2507_v58  ;;  %4291 = vpow2.f32 %v3240_v5  ;;  %v5225_v35 = vadd.f32 %v3848_v32, %v3847_v40 }
 0x200   : > { %v4272_v53 = vpop.eup %4271  ;;  %v2666_v49 = vadd.f32 1.0, %v4270_v62  ;;  %v3328_v33 = vpack.c.bf16 %v2753_v36, %v2752_v11  ;;  %v2508_v14 = vmul.f32 %v5074_v41, %v2431_v12  ;;  %v5223_v45 = vadd.f32 %v5080_v56, %v2505_v25 }
 0x201   : > { %v4274_v13 = vpop.eup %4273  ;;  %v2664_v29 = vadd.f32 1.0, %v4272_v53  ;;  %3405 = vst [vmem:[%s5209_s6 + $0x8] sm:$0xff] %v3333_v24   ;;  %v3245_v2 = vmul.f32 -1.442695, %v5215_v20  ;;  %v2423_v9 = vadd.f32 %v2422_v17, %v5099_v59  ;;  %v3850_v28 = vpop.f32.mrb[132].mxu1 }
 0x202   : > { %4293 = vrcp.f32 %v2666_v49  ;;  %v2667_v23 = vadd.f32 1.0, %v4274_v13  ;;  %v4276_v22 = vpop.eup %4275  ;;  %3329 = vst [vmem:[%s5209_s6] sm:$0xff] %v3328_v33   ;;  %v3930_v50 = vpop.f32.mrb[132].mxu0  ;;  %v5230_v6 = vadd.f32 %v5080_v56, %v2508_v14  ;;  %v3243_v40 = vmul.f32 -1.442695, %v5223_v45 }
 0x203   : > { %4295 = vrcp.f32 %v2664_v29  ;;  %v4278_v16 = vpop.eup %4277  ;;  %v2758_v4 = vmul.f32 %v4276_v22, %v5118_v43  ;;  %v2444_v3 = vadd.f32 %v3930_v50, %v2283_v52  ;;  %v3851_v8 = vpop.f32.mrb[133].mxu1  ;;  %v2506_v59 = vmul.f32 %v5074_v41, %v2423_v9 }
 0x204   : > { %4297 = vrcp.f32 %v2667_v23  ;;  %v2435_v11 = vpop.f32.mrb[133].mxu0  ;;  %v4280_v34 = vpop.eup %4279  ;;  %v2756_v1 = vmul.f32 %v4278_v16, %v5125_v38  ;;  %v3246_v32 = vmul.f32 -1.442695, %v5230_v6  ;;  %v3852_v52 = vadd.f32 %v3851_v8, %v3850_v28 }
 0x205   : > { %4299 = vpow2.f32 %v3245_v2  ;;  %v3853_v15 = vpop.f32.mrb[134].mxu1  ;;  %v3931_v58 = vpop.f32.mrb[134].mxu0  ;;  %v2759_v43 = vmul.f32 %v4280_v34, %v5133_v44  ;;  %v2511_v17 = vmul.f32 %v5074_v41, %v2444_v3  ;;  %v5240_v12 = vadd.f32 %v5080_v56, %v2506_v59 }
 0x206   : > { %v4282_v47 = vpop.eup %4281  ;;  %v3854_v62 = vpop.f32.mrb[135].mxu1  ;;  %4301 = vpow2.f32 %v3243_v40  ;;  %v2436_v53 = vadd.f32 %v2435_v11, %v5155_v60  ;;  %v2286_v22 = vadd.f32 %v5180_v37, %v5018_v21 }
 0x207   : > { %v2438_v36 = vpop.f32.mrb[135].mxu0  ;;  %v4284_v5 = vpop.eup %4283  ;;  %v2757_v38 = vmul.f32 %v4282_v47, %v5137_v63  ;;  %v3343_v49 = vpack.c.bf16 %v2759_v43, %v2758_v4  ;;  %4303 = vpow2.f32 %v3246_v32  ;;  %v5244_v13 = vadd.f32 %v5080_v56, %v2511_v17 }
 0x208   : > { %v4286_v24 = vpop.eup %4285  ;;  %v2665_v44 = vadd.f32 1.0, %v4284_v5  ;;  %v3244_v23 = vmul.f32 -1.442695, %v5240_v12  ;;  %v2509_v63 = vmul.f32 %v5074_v41, %v2436_v53  ;;  %v3855_v16 = vadd.f32 %v3854_v62, %v3853_v15 }
 0x209   : > { %v4288_v33 = vpop.eup %4287  ;;  %v3338_v29 = vpack.c.bf16 %v2757_v38, %v2756_v1  ;;  %v2670_v25 = vadd.f32 1.0, %v4286_v24  ;;  %3407 = vst [vmem:[%s5209_s6 + $0x18] sm:$0xff] %v3343_v49   ;;  %v3249_v60 = vmul.f32 -1.442695, %v5244_v13  ;;  %v3856_v4 = vpop.f32.mrb[136].mxu1  ;;  %v2447_v34 = vadd.f32 %v3931_v58, %v2286_v22 }
 0x20a   : > { %v4290_v2 = vpop.eup %4289  ;;  %4305 = vrcp.f32 %v2665_v44  ;;  %v2668_v14 = vadd.f32 1.0, %v4288_v33  ;;  %v5254_v50 = vadd.f32 %v5080_v56, %v2509_v63  ;;  %v3934_v3 = vpop.f32.mrb[136].mxu0  ;;  %v2439_v1 = vadd.f32 %v2438_v36, %v5164_v57 }
 0x20b   : > { %v4292_v9 = vpop.eup %4291  ;;  %3406 = vst [vmem:[%s5209_s6 + $0x10] sm:$0xff] %v3338_v29   ;;  %4307 = vrcp.f32 %v2670_v25  ;;  %v2671_v28 = vadd.f32 1.0, %v4290_v2  ;;  %v3857_v40 = vpop.f32.mrb[137].mxu1  ;;  %v2299_v43 = vadd.f32 %v3852_v52, %v5036_v27  ;;  %v2512_v58 = vmul.f32 %v5074_v41, %v2447_v34 }
 0x20c   : > { %v4294_v8 = vpop.eup %4293  ;;  %4309 = vrcp.f32 %v2668_v14  ;;  %v2669_v11 = vadd.f32 1.0, %v4292_v9  ;;  %v2451_v59 = vpop.f32.mrb[137].mxu0  ;;  %v3247_v37 = vmul.f32 -1.442695, %v5254_v50  ;;  %v2510_v57 = vmul.f32 %v5074_v41, %v2439_v1 }
 0x20d   : > { %v4296_v47 = vpop.eup %4295  ;;  %v2762_v21 = vmul.f32 %v4294_v8, %v5147_v55  ;;  %4311 = vrcp.f32 %v2671_v28  ;;  %v3859_v32 = vpop.f32.mrb[138].mxu1  ;;  %v2460_v53 = vadd.f32 %v3934_v3, %v2299_v43  ;;  %v3858_v27 = vadd.f32 %v3857_v40, %v3856_v4 }
 0x20e   : > { %v3935_v15 = vpop.f32.mrb[138].mxu0  ;;  %v4298_v17 = vpop.eup %4297  ;;  %v5261_v62 = vmul.f32 %v4296_v47, %v5152_v18  ;;  %4313 = vrcp.f32 %v2669_v11  ;;  %v5267_v24 = vadd.f32 %v5080_v56, %v2512_v58  ;;  %v5270_v18 = vadd.f32 %v5080_v56, %v2510_v57 }
 0x20f   : > { %v3860_v36 = vpop.f32.mrb[139].mxu1  ;;  %v2454_v5 = vpop.f32.mrb[139].mxu0  ;;  %v2763_v55 = vmul.f32 %v4298_v17, %v5159_v48  ;;  %4315 = vpow2.f32 %v3244_v23  ;;  %v2515_v33 = vmul.f32 %v5074_v41, %v2460_v53  ;;  %v2291_v48 = vadd.f32 %v5201_v54, %v5024_v30 }
 0x210   : > { %v4300_v38 = vpop.eup %4299  ;;  %4317 = vpow2.f32 %v3249_v60  ;;  %v3250_v23 = vmul.f32 -1.442695, %v5267_v24  ;;  %v3248_v63 = vmul.f32 -1.442695, %v5270_v18  ;;  %v2302_v22 = vadd.f32 %v3855_v16, %v5042_v42 }
 0x211   : > { %v2674_v52 = vadd.f32 1.0, %v4300_v38  ;;  %v4302_v49 = vpop.eup %4301  ;;  %v3353_v44 = vpack.c.bf16 %v2763_v55, %v2762_v21  ;;  %4319 = vpow2.f32 %v3247_v37  ;;  %v5279_v14 = vadd.f32 %v5080_v56, %v2515_v33  ;;  %v3862_v9 = vpop.f32.mrb[140].mxu1 }
 0x212   : > { %v4304_v29 = vpop.eup %4303  ;;  %v2672_v25 = vadd.f32 1.0, %v4302_v49  ;;  %v2452_v60 = vadd.f32 %v2451_v59, %v2291_v48  ;;  %v3938_v28 = vpop.f32.mrb[140].mxu0  ;;  %v3861_v30 = vadd.f32 %v3860_v36, %v3859_v32  ;;  %v2294_v54 = vadd.f32 %v5225_v35, %v5030_v19 }
 0x213   : > { %4321 = vrcp.f32 %v2674_v52  ;;  %3409 = vst [vmem:[%s5209_s6 + $0x28] sm:$0xff] %v3353_v44   ;;  %v2675_v2 = vadd.f32 1.0, %v4304_v29  ;;  %v3863_v3 = vpop.f32.mrb[141].mxu1  ;;  %v2307_v8 = vadd.f32 %v3858_v27, %v5048_v51  ;;  %v2467_v11 = vpop.f32.mrb[141].mxu0  ;;  %v3253_v40 = vmul.f32 -1.442695, %v5279_v14 }
 0x214   : > { %v4306_v4 = vpop.eup %4305  ;;  %4323 = vrcp.f32 %v2672_v25  ;;  %v2513_v42 = vmul.f32 %v5074_v41, %v2452_v60  ;;  %v3865_v16 = vpop.f32.mrb[142].mxu1  ;;  %v2463_v19 = vadd.f32 %v3935_v15, %v2302_v22  ;;  %v2455_v35 = vadd.f32 %v2454_v5, %v2294_v54 }
 0x215   : > { %v4308_v34 = vpop.eup %4307  ;;  %v2761_v1 = vmul.f32 %v4306_v4, %v5169_v61  ;;  %4325 = vrcp.f32 %v2675_v2  ;;  %v5288_v59 = vpop.f32.mrb[142].mxu0  ;;  %v2468_v38 = vadd.f32 %v2467_v11, %v2307_v8 }
 0x216   : > { %v4310_v47 = vpop.eup %4309  ;;  %v2766_v21 = vmul.f32 %v4308_v34, %v5177_v39  ;;  %4327 = vpow2.f32 %v3250_v23  ;;  %v3866_v51 = vpop.f32.mrb[143].mxu1  ;;  %v5294_v17 = vadd.f32 %v5080_v56, %v2513_v42  ;;  %v2516_v39 = vmul.f32 %v5074_v41, %v2463_v19 }
 0x217   : > { %v2470_v37 = vpop.f32.mrb[143].mxu0  ;;  %v4312_v43 = vpop.eup %4311  ;;  %v3348_v61 = vpack.c.bf16 %v2761_v1, %v5261_v62  ;;  %v2764_v32 = vmul.f32 %v4310_v47, %v5183_v31  ;;  %4329 = vpow2.f32 %v3248_v63  ;;  %v2514_v15 = vmul.f32 %v5074_v41, %v2455_v35 }
 0x218   : > { %v4314_v58 = vpop.eup %4313  ;;  %v2767_v57 = vmul.f32 %v4312_v43, %v5188_v10  ;;  %4331 = vpow2.f32 %v3253_v40  ;;  %v3251_v62 = vmul.f32 -1.442695, %v5294_v17  ;;  %v3864_v31 = vadd.f32 %v3863_v3, %v3862_v9 }
 0x219   : > { %v4316_v36 = vpop.eup %4315  ;;  %3408 = vst [vmem:[%s5209_s6 + $0x20] sm:$0xff] %v3348_v61   ;;  %v2765_v5 = vmul.f32 %v4314_v58, %v5199_v0  ;;  %v5303_v10 = vadd.f32 %v5080_v56, %v2516_v39  ;;  %v5306_v52 = vadd.f32 %v5080_v56, %v2514_v15  ;;  %v2517_v2 = vmul.f32 %v5074_v41, %v2468_v38 }
 0x21a   : > { %v4318_v55 = vpop.eup %4317  ;;  %v3363_v53 = vpack.c.bf16 %v2767_v57, %v2766_v21  ;;  %v2673_v27 = vadd.f32 1.0, %v4316_v36  ;;  %4333 = vpow2.f32 %v3251_v62  ;;  %v2315_v0 = vadd.f32 %v3864_v31, %v5060_v46 }
 0x21b   : > { %v4320_v49 = vpop.eup %4319  ;;  %v3358_v44 = vpack.c.bf16 %v2765_v5, %v2764_v32  ;;  %v2678_v33 = vadd.f32 1.0, %v4318_v55  ;;  %v3254_v29 = vmul.f32 -1.442695, %v5303_v10  ;;  %v3252_v25 = vmul.f32 -1.442695, %v5306_v52 }
 0x21c   : > { %3411 = vst [vmem:[%s5209_s6 + $0x38] sm:$0xff] %v3363_v53   ;;  %4335 = vrcp.f32 %v2673_v27  ;;  %v2676_v23 = vadd.f32 1.0, %v4320_v49  ;;  %v2476_v63 = vadd.f32 %v3938_v28, %v2315_v0  ;;  %v3867_v22 = vadd.f32 %v3866_v51, %v3865_v16 }
 0x21d   : > { %v4322_v48 = vpop.eup %4321  ;;  %3410 = vst [vmem:[%s5209_s6 + $0x30] sm:$0xff] %v3358_v44   ;;  %4337 = vrcp.f32 %v2678_v33  ;;  %v2310_v9 = vadd.f32 %v3861_v30, %v5054_v7  ;;  %v5318_v3 = vadd.f32 %v5080_v56, %v2517_v2 }
 0x21e   : > { %v4324_v60 = vpop.eup %4323  ;;  %v2770_v46 = vmul.f32 %v4322_v48, %v5215_v20  ;;  %4339 = vpow2.f32 %v3254_v29  ;;  %v2519_v54 = vmul.f32 %v5074_v41, %v2476_v63  ;;  %v2318_v28 = vadd.f32 %v3867_v22, %v5066_v26 }
 0x21f   : > { %v4326_v4 = vpop.eup %4325  ;;  %4341 = vpow2.f32 %v3252_v25  ;;  %v2471_v34 = vadd.f32 %v2470_v37, %v2310_v9  ;;  %v3255_v21 = vmul.f32 -1.442695, %v5318_v3  ;;  %v2768_v61 = vmul.f32 %v4324_v60, %v5223_v45 }
 0x220   : > { %v4328_v8 = vpop.eup %4327  ;;  %v2771_v11 = vmul.f32 %v4326_v4, %v5230_v6  ;;  %4343 = vrcp.f32 %v2676_v23  ;;  %v5323_v30 = vadd.f32 %v5080_v56, %v2519_v54  ;;  %v2479_v16 = vadd.f32 %v5288_v59, %v2318_v28 }
 0x221   : > { %v4330_v1 = vpop.eup %4329  ;;  %v2679_v7 = vadd.f32 1.0, %v4328_v8  ;;  %v2518_v47 = vmul.f32 %v5074_v41, %v2471_v34 }
 0x222   : > { %v4332_v20 = vpop.eup %4331  ;;  %v3373_v40 = vpack.c.bf16 %v2771_v11, %v2770_v46  ;;  %v2677_v42 = vadd.f32 1.0, %v4330_v1  ;;  %v3257_v6 = vmul.f32 -1.442695, %v5323_v30  ;;  %v2520_v19 = vmul.f32 %v5074_v41, %v2479_v16 }
 0x223   : > { %4345 = vrcp.f32 %v2679_v7  ;;  %v2682_v26 = vadd.f32 1.0, %v4332_v20  ;;  %v5332_v35 = vadd.f32 %v5080_v56, %v2518_v47 }
 0x224   : > { %3413 = vst [vmem:[%s5209_s6 + $0x48] sm:$0xff] %v3373_v40   ;;  %4347 = vrcp.f32 %v2677_v42  ;;  %v4334_v51 = vpop.eup %4333  ;;  %v2559_v59 = vadd.f32 %v5080_v56, %v2520_v19 }
 0x225   : > { %4349 = vpow2.f32 %v3257_v6  ;;  %v3256_v43 = vmul.f32 -1.442695, %v5332_v35  ;;  %v2680_v58 = vadd.f32 1.0, %v4334_v51 }
 0x226   : > { %v4336_v37 = vpop.eup %4335  ;;  %4351 = vpow2.f32 %v3255_v21  ;;  %v3258_v41 = vmul.f32 -1.442695, %v2559_v59 }
 0x227   : > { %v2769_v32 = vmul.f32 %v4336_v37, %v5240_v12  ;;  %v4338_v57 = vpop.eup %4337  ;;  %4353 = vrcp.f32 %v2682_v26 }
 0x228   : > { %v4340_v39 = vpop.eup %4339  ;;  %4355 = vpow2.f32 %v3256_v43  ;;  %v2774_v31 = vmul.f32 %v4338_v57, %v5244_v13 }
 0x229   : > { %v3368_v15 = vpack.c.bf16 %v2769_v32, %v2768_v61  ;;  %v4342_v36 = vpop.eup %4341  ;;  %v2683_v5 = vadd.f32 1.0, %v4340_v39  ;;  %4357 = vpow2.f32 %v3258_v41 }
 0x22a   : > { %v4344_v62 = vpop.eup %4343  ;;  %4359 = vrcp.f32 %v2680_v58  ;;  %v2681_v56 = vadd.f32 1.0, %v4342_v36 }
 0x22b   : > { %3412 = vst [vmem:[%s5209_s6 + $0x40] sm:$0xff] %v3368_v15   ;;  %4361 = vrcp.f32 %v2683_v5  ;;  %v2772_v55 = vmul.f32 %v4344_v62, %v5254_v50 }
 0x22c   : > { %4363 = vrcp.f32 %v2681_v56 }
 0x22d   : > { %v4346_v45 = vpop.eup %4345 }
 0x22e   : > { %v4348_v12 = vpop.eup %4347  ;;  %v2775_v38 = vmul.f32 %v4346_v45, %v5267_v24 }
 0x22f   : > { %v2773_v53 = vmul.f32 %v4348_v12, %v5270_v18  ;;  %v4350_v27 = vpop.eup %4349 }
 0x230   : > { %v3383_v49 = vpack.c.bf16 %v2775_v38, %v2774_v31  ;;  %v4352_v44 = vpop.eup %4351  ;;  %v2686_v0 = vadd.f32 1.0, %v4350_v27 }
 0x231   : > { %v3378_v33 = vpack.c.bf16 %v2773_v53, %v2772_v55  ;;  %v4354_v48 = vpop.eup %4353  ;;  %v2684_v29 = vadd.f32 1.0, %v4352_v44 }
 0x232   : > { %3415 = vst [vmem:[%s5209_s6 + $0x58] sm:$0xff] %v3383_v49   ;;  %v4356_v25 = vpop.eup %4355  ;;  %v2778_v2 = vmul.f32 %v4354_v48, %v5279_v14 }
 0x233   : > { %3414 = vst [vmem:[%s5209_s6 + $0x50] sm:$0xff] %v3378_v33   ;;  %v4358_v23 = vpop.eup %4357  ;;  %4365 = vrcp.f32 %v2684_v29  ;;  %v2685_v13 = vadd.f32 1.0, %v4356_v25 }
 0x234   : > { %v4360_v24 = vpop.eup %4359  ;;  %4367 = vrcp.f32 %v2686_v0  ;;  %v2687_v50 = vadd.f32 1.0, %v4358_v23 }
 0x235   : > { %v4362_v63 = vpop.eup %4361  ;;  %4369 = vrcp.f32 %v2685_v13  ;;  %v2776_v22 = vmul.f32 %v4360_v24, %v5294_v17 }
 0x236   : > { %v4364_v18 = vpop.eup %4363  ;;  %v2779_v60 = vmul.f32 %v4362_v63, %v5303_v10  ;;  %4371 = vrcp.f32 %v2687_v50 }
 0x237   : > { %v2777_v9 = vmul.f32 %v4364_v18, %v5306_v52 }
 0x238   : > { %v3393_v4 = vpack.c.bf16 %v2779_v60, %v2778_v2 }
 0x239   : > { %v3388_v46 = vpack.c.bf16 %v2777_v9, %v2776_v22 }
 0x23a   : > { %3417 = vst [vmem:[%s5209_s6 + $0x68] sm:$0xff] %v3393_v4  }
 0x23b   : > { %3416 = vst [vmem:[%s5209_s6 + $0x60] sm:$0xff] %v3388_v46  }
 0x23d   : > { %v4366_v54 = vpop.eup %4365 }
 0x23e   : > { %v4368_v8 = vpop.eup %4367  ;;  %v2780_v34 = vmul.f32 %v4366_v54, %v5318_v3 }
 0x23f   : > { %v4370_v11 = vpop.eup %4369  ;;  %v2782_v10 = vmul.f32 %v4368_v8, %v5323_v30 }
 0x240   : > { %v4372_v28 = vpop.eup %4371  ;;  %v2781_v14 = vmul.f32 %v4370_v11, %v5332_v35 }
 0x241   : > { %v2783_v1 = vmul.f32 %v4372_v28, %v2559_v59 }
 0x242   : > { %v3398_v17 = vpack.c.bf16 %v2781_v14, %v2780_v34 }
 0x243   : > { %v3403_v7 = vpack.c.bf16 %v2783_v1, %v2782_v10 }
 0x244   : > { %3418 = vst [vmem:[%s5209_s6 + $0x70] sm:$0xff] %v3398_v17  }
 0x245   : > { %3419 = vst [vmem:[%s5209_s6 + $0x78] sm:$0xff] %v3403_v7  }
 0x246 PF: > { %s14_s15 = sadd.s32 1, %s4379_s15  }
 0x247   : > { %p11_p4 = scmp.ge.s32.totalorder %s14_s15, 5  }
 0x249   :  { %13 = sbr.rel (!%p11_p4) target bundleno = 1 (0x1), region = 66 }

// kernel: rtmdet_head_forward.9
= control target key start
LH: loop header
LB: loop body
LE: loop exit
PB: predicated region body
PF: predicated region fallthrough
CT: control target
= control target key end

     0   :  { %s1736_s12 = smov 0   ;;  %s2523_s0 = inlined_call_operand.vmem [shape: bf16[768,128], index: 0, kind: input, shape index: {}]   ;;  %s2524_s1 = inlined_call_operand.vmem [shape: bf16[128,256], index: 1, kind: input, shape index: {}]   ;;  %s2525_s2 = inlined_call_operand.vmem [shape: f32[1,256], index: 2, kind: input, shape index: {}]   ;;  %s2526_s3 = inlined_call_operand.vmem [shape: f32[768,256], index: 3, kind: output, shape index: {}]  }
   0x1 LB: > { %s1469_s13 = sadd.s32 4294967295, %s1713_s12   ;;  %p1473_p0 = scmp.ge.s32.totalorder %s1713_s12, 1  ;;  %s1713_s12 = sphi %s1736_s12, %s13_s12  }
   0x2   : > { %p138_p1 = scmp.lt.s32.totalorder %s1713_s12, 4 }
   0x4   : > { %p139_p2 = pnand %p1473_p0, %p138_p1 }
   0x6   : > { %142 = sbr.rel (%p139_p2) target bundleno = 649 (0x289), region = 32 }
   0xd   : > { %v1539_v0 = vld [vmem:[%s2524_s1 + $0x4] ss:$8 sps:$4 sm:$0xff]   ;;  %s1474_s16 = sshll.u32 %s1469_s13, 5  ;;  %v1541_v1 = vld [vmem:[%s2524_s1] ss:$8 sps:$4 sm:$0xff]   ;;  %v1715_v2 = vmov 0   ;;  %v227_v33 = vlaneseq }
   0xe   : > { %445 = vmatprep.mubr.bf16.mxu0 %v1715_v2  ;;  %525 = vmatprep.mubr.bf16.mxu1 %v1715_v2  ;;  %p164_p3 = scmp.lt.s32.totalorder %s1474_s16, 95  ;;  %v1542_v3 = vld [vmem:[%s2524_s1 + $0x14] ss:$8 sps:$4 sm:$0xff]   ;;  %v1544_v4 = vld [vmem:[%s2524_s1 + $0x10] ss:$8 sps:$4 sm:$0xff]  }
   0xf   : > { %413 = vmatprep.subr.bf16.mxu0 %v1539_v0  ;;  %1514 = vmatprep.subr.bf16.mxu1 %v1539_v0  ;;  %v1545_v5 = vld [vmem:[%s2524_s1 + $0x24] ss:$8 sps:$4 sm:$0xff]   ;;  %v1547_v6 = vld [vmem:[%s2524_s1 + $0x20] ss:$8 sps:$4 sm:$0xff]   ;;  %v1548_v7 = vld [vmem:[%s2524_s1 + $0x34] ss:$8 sps:$4 sm:$0xff]  }
  0x10   : > { %414 = vmatpush1.bf16.msra.mxu0 %v1541_v1  ;;  %1522 = vmatpush1.bf16.msra.mxu1 %v1541_v1  ;;  %s2561_s16 = smov (!%p164_p3, %s1474_s16), 95  ;;  %v1550_v8 = vld [vmem:[%s2524_s1 + $0x30] ss:$8 sps:$4 sm:$0xff]   ;;  %v1551_v9 = vld [vmem:[%s2524_s1 + $0x44] ss:$8 sps:$4 sm:$0xff]   ;;  %v228_v34 = vshrl.u32 %v227_v33, 7 }
  0x11   : > { %415 = vmatprep.subr.bf16.mxu0 %v1542_v3  ;;  %1515 = vmatprep.subr.bf16.mxu1 %v1542_v3  ;;  %s1475_s25 = sshll.u32 %s2561_s16, 2  ;;  %v1553_v10 = vld [vmem:[%s2524_s1 + $0x40] ss:$8 sps:$4 sm:$0xff]   ;;  %v1554_v11 = vld [vmem:[%s2524_s1 + $0x54] ss:$8 sps:$4 sm:$0xff]   ;;  %v1835_v38 = vand.u32 127, %v227_v33 }
  0x12   : > { %s1773_s5 = scalar_lea.vmem %s2523_s0, %s1475_s25  ;;  %v1556_v12 = vld [vmem:[%s2524_s1 + $0x50] ss:$8 sps:$4 sm:$0xff]   ;;  %v1557_v13 = vld [vmem:[%s2524_s1 + $0x64] ss:$8 sps:$4 sm:$0xff]   ;;  %v1559_v14 = vld [vmem:[%s2524_s1 + $0x60] ss:$8 sps:$4 sm:$0xff]  }
  0x13   : > { %v1560_v15 = vld [vmem:[%s2524_s1 + $0x74] ss:$8 sps:$4 sm:$0xff]   ;;  %v1562_v16 = vld [vmem:[%s2524_s1 + $0x70] ss:$8 sps:$4 sm:$0xff]   ;;  %v1563_v17 = vld [vmem:[%s1773_s5] sm:$0xff]   ;;  %v229_v35 = vsub.s32 0, %v228_v34 }
  0x14   : > { %416 = vmatpush1.bf16.msra.mxu0 %v1544_v4  ;;  %1523 = vmatpush1.bf16.msra.mxu1 %v1544_v4  ;;  %v1564_v18 = vld [vmem:[%s1773_s5 + $0x40] sm:$0xff]   ;;  %v1565_v19 = vld [vmem:[%s1773_s5 + $0x8] sm:$0xff]   ;;  %v1567_v21 = vld [vmem:[%s1773_s5 + $0x10] sm:$0xff]   ;;  %v233_v37 = vsub.s32 1, %v228_v34  ;;  %s1513_s28 = sshll.u32 %s2561_s16, 4  ;;  %vm609_vm0 = vcmp.lt.s32.totalorder %v1835_v38, 16 }
  0x15   : > { %417 = vmatprep.subr.bf16.mxu0 %v1545_v5  ;;  %1516 = vmatprep.subr.bf16.mxu1 %v1545_v5  ;;  %v1566_v20 = vld [vmem:[%s1773_s5 + $0x48] sm:$0xff]   ;;  %v1568_v22 = vld [vmem:[%s1773_s5 + $0x50] sm:$0xff]   ;;  %v1569_v23 = vld [vmem:[%s1773_s5 + $0x18] sm:$0xff]   ;;  %s1846_s4 = scalar_lea.vmem %s2526_s3, %s1513_s28 }
  0x16   : > { %v1570_v24 = vld [vmem:[%s1773_s5 + $0x58] sm:$0xff]   ;;  %v1571_v25 = vld [vmem:[%s1773_s5 + $0x20] sm:$0xff]   ;;  %v1573_v27 = vld [vmem:[%s1773_s5 + $0x28] sm:$0xff]  }
  0x17   : > { %v1572_v26 = vld [vmem:[%s1773_s5 + $0x60] sm:$0xff]   ;;  %v1574_v28 = vld [vmem:[%s1773_s5 + $0x68] sm:$0xff]   ;;  %v1575_v29 = vld [vmem:[%s1773_s5 + $0x30] sm:$0xff]  }
  0x18   : > { %418 = vmatpush1.bf16.msra.mxu0 %v1547_v6  ;;  %1524 = vmatpush1.bf16.msra.mxu1 %v1547_v6  ;;  %v1576_v30 = vld [vmem:[%s1773_s5 + $0x70] sm:$0xff]   ;;  %v1577_v31 = vld [vmem:[%s1773_s5 + $0x38] sm:$0xff]   ;;  %v225_v36 = vld [vmem:[%s2525_s2] sm:$0x3] }
  0x19   : > { %419 = vmatprep.subr.bf16.mxu0 %v1548_v7  ;;  %1517 = vmatprep.subr.bf16.mxu1 %v1548_v7  ;;  %v1578_v32 = vld [vmem:[%s1773_s5 + $0x78] sm:$0xff]   ;;  %v1837_v39 = vrot.slane %v225_v36, %v229_v35  ;;  %v1840_v40 = vrot.slane %v225_v36, %v233_v37 }
  0x1c   : > { %420 = vmatpush1.bf16.msra.mxu0 %v1550_v8  ;;  %1525 = vmatpush1.bf16.msra.mxu1 %v1550_v8 }
  0x1d   : > { %421 = vmatprep.subr.bf16.mxu0 %v1551_v9  ;;  %1518 = vmatprep.subr.bf16.mxu1 %v1551_v9 }
  0x20   : > { %422 = vmatpush1.bf16.msra.mxu0 %v1553_v10  ;;  %1526 = vmatpush1.bf16.msra.mxu1 %v1553_v10 }
  0x21   : > { %423 = vmatprep.subr.bf16.mxu0 %v1554_v11  ;;  %1519 = vmatprep.subr.bf16.mxu1 %v1554_v11 }
  0x24   : > { %424 = vmatpush1.bf16.msra.mxu0 %v1556_v12  ;;  %1527 = vmatpush1.bf16.msra.mxu1 %v1556_v12 }
  0x25   : > { %425 = vmatprep.subr.bf16.mxu0 %v1557_v13  ;;  %1520 = vmatprep.subr.bf16.mxu1 %v1557_v13 }
  0x28   : > { %426 = vmatpush1.bf16.msra.mxu0 %v1559_v14  ;;  %1528 = vmatpush1.bf16.msra.mxu1 %v1559_v14 }
  0x29   : > { %427 = vmatprep.subr.bf16.mxu0 %v1560_v15  ;;  %1521 = vmatprep.subr.bf16.mxu1 %v1560_v15 }
  0x2c   : > { %428 = vmatpush1.bf16.msra.mxu0 %v1562_v16  ;;  %1529 = vmatpush1.bf16.msra.mxu1 %v1562_v16 }
  0x2f   : > { %446 = vmatmul.mubr.bf16.vlgmr.msra.gmra.mrb[0].mxu0 %v1563_v17  ;;  %526 = vmatmul.mubr.bf16.vlgmr.msra.gmra.mrb[0].mxu1 %v1564_v18 }
  0x30   : > { %455 = vmatprep.mubr.bf16.mxu0 %v1715_v2  ;;  %535 = vmatprep.mubr.bf16.mxu1 %v1715_v2 }
  0x37   : > { %456 = vmatmul.mubr.bf16.gmra.mrb[4].mxu0 %v1565_v19  ;;  %536 = vmatmul.mubr.bf16.gmra.mrb[4].mxu1 %v1566_v20 }
  0x38   : > { %465 = vmatprep.mubr.bf16.mxu0 %v1715_v2  ;;  %545 = vmatprep.mubr.bf16.mxu1 %v1715_v2 }
  0x3f   : > { %466 = vmatmul.mubr.bf16.gmra.mrb[8].mxu0 %v1567_v21  ;;  %546 = vmatmul.mubr.bf16.gmra.mrb[8].mxu1 %v1568_v22 }
  0x40   : > { %475 = vmatprep.mubr.bf16.mxu0 %v1715_v2  ;;  %555 = vmatprep.mubr.bf16.mxu1 %v1715_v2 }
  0x47   : > { %476 = vmatmul.mubr.bf16.gmra.mrb[12].mxu0 %v1569_v23  ;;  %556 = vmatmul.mubr.bf16.gmra.mrb[12].mxu1 %v1570_v24 }
  0x48   : > { %485 = vmatprep.mubr.bf16.mxu0 %v1715_v2  ;;  %565 = vmatprep.mubr.bf16.mxu1 %v1715_v2 }
  0x4f   : > { %486 = vmatmul.mubr.bf16.gmra.mrb[16].mxu0 %v1571_v25  ;;  %566 = vmatmul.mubr.bf16.gmra.mrb[16].mxu1 %v1572_v26 }
  0x50   : > { %495 = vmatprep.mubr.bf16.mxu0 %v1715_v2  ;;  %575 = vmatprep.mubr.bf16.mxu1 %v1715_v2 }
  0x57   : > { %496 = vmatmul.mubr.bf16.gmra.mrb[20].mxu0 %v1573_v27  ;;  %576 = vmatmul.mubr.bf16.gmra.mrb[20].mxu1 %v1574_v28 }
  0x58   : > { %505 = vmatprep.mubr.bf16.mxu0 %v1715_v2  ;;  %585 = vmatprep.mubr.bf16.mxu1 %v1715_v2 }
  0x5f   : > { %506 = vmatmul.mubr.bf16.gmra.mrb[24].mxu0 %v1575_v29  ;;  %586 = vmatmul.mubr.bf16.gmra.mrb[24].mxu1 %v1576_v30 }
  0x60   : > { %515 = vmatprep.mubr.bf16.mxu0 %v1715_v2  ;;  %595 = vmatprep.mubr.bf16.mxu1 %v1715_v2 }
  0x67   : > { %516 = vmatmul.mubr.bf16.gmra.mrb[28].mxu0 %v1577_v31  ;;  %596 = vmatmul.mubr.bf16.gmra.mrb[28].mxu1 %v1578_v32 }
 0x102   : > { %v447_v41 = vpop.f32.mrb[0].mxu0  ;;  %v527_v42 = vpop.f32.mrb[0].mxu1 }
 0x103   : > { %v1849_v43 = vadd.f32 %v447_v41, %v1837_v39  ;;  %v1852_v44 = vadd.f32 %v527_v42, %v1837_v39  ;;  %v449_v45 = vpop.f32.mrb[1].mxu0  ;;  %v529_v46 = vpop.f32.mrb[1].mxu1 }
 0x104   : > { %v450_v47 = vadd.f32 %v449_v45, %v1840_v40  ;;  %v530_v48 = vadd.f32 %v529_v46, %v1840_v40  ;;  %v451_v49 = vpop.f32.mrb[2].mxu0  ;;  %v531_v50 = vpop.f32.mrb[2].mxu1 }
 0x105   : > { %v1857_v51 = vadd.f32 %v531_v50, %v1837_v39  ;;  %v453_v52 = vpop.f32.mrb[3].mxu0  ;;  %v533_v53 = vpop.f32.mrb[3].mxu1  ;;  %v611_v54 = vsel %vm609_vm0, %v1849_v43, -1e+30  ;;  %v643_v55 = vsel %vm609_vm0, %v1852_v44, -1e+30  ;;  %v1870_v59 = vadd.f32 %v451_v49, %v1837_v39 }
 0x106   : > { %1348 = vst [vmem:[%s1846_s4 + $0x8] sm:$0xff] %v450_v47  ;;  %1380 = vst [vmem:[%s1846_s4 + $0x108] sm:$0xff] %v530_v48  ;;  %v454_v56 = vadd.f32 %v453_v52, %v1840_v40  ;;  %v534_v57 = vadd.f32 %v533_v53, %v1840_v40  ;;  %v675_v58 = vmax.f32 %v611_v54, -1e+30  ;;  %v723_v62 = vmax.f32 %v643_v55, -1e+30 }
 0x107   : > { %v645_v60 = vsel %vm609_vm0, %v1857_v51, -1e+30  ;;  %v613_v4 = vsel %vm609_vm0, %v1870_v59, -1e+30 }
 0x108   : > { %1350 = vst [vmem:[%s1846_s4 + $0x18] sm:$0xff] %v454_v56  ;;  %1382 = vst [vmem:[%s1846_s4 + $0x118] sm:$0xff] %v534_v57  ;;  %676 = vmax.xlane.f32.xlu0 %v675_v58  ;;  %v726_v61 = vmax.f32 %v645_v60, -1e+30  ;;  %v678_v18 = vmax.f32 %v613_v4, -1e+30 }
 0x10a   : > { %727 = vmax.xlane.f32.xlu1 %v726_v61  ;;  %v457_v63 = vpop.f32.mrb[4].mxu0  ;;  %v537_v0 = vpop.f32.mrb[4].mxu1 }
 0x10b   : > { %v1878_v1 = vadd.f32 %v457_v63, %v1837_v39  ;;  %v459_v2 = vpop.f32.mrb[5].mxu0  ;;  %v1881_v3 = vadd.f32 %v537_v0, %v1837_v39  ;;  %v539_v5 = vpop.f32.mrb[5].mxu1 }
 0x10c   : > { %v460_v6 = vadd.f32 %v459_v2, %v1840_v40  ;;  %724 = vmax.xlane.f32.xlu0 %v723_v62  ;;  %v461_v7 = vpop.f32.mrb[6].mxu0  ;;  %v540_v8 = vadd.f32 %v539_v5, %v1840_v40  ;;  %v541_v9 = vpop.f32.mrb[6].mxu1 }
 0x10d   : > { %v1889_v10 = vadd.f32 %v461_v7, %v1837_v39  ;;  %v463_v11 = vpop.f32.mrb[7].mxu0  ;;  %v615_v12 = vsel %vm609_vm0, %v1878_v1, -1e+30  ;;  %v1895_v13 = vadd.f32 %v541_v9, %v1837_v39  ;;  %v543_v14 = vpop.f32.mrb[7].mxu1  ;;  %v647_v15 = vsel %vm609_vm0, %v1881_v3, -1e+30 }
 0x10e   : > { %1352 = vst [vmem:[%s1846_s4 + $0x28] sm:$0xff] %v460_v6  ;;  %v464_v16 = vadd.f32 %v463_v11, %v1840_v40  ;;  %v681_v17 = vmax.f32 %v615_v12, -1e+30  ;;  %1384 = vst [vmem:[%s1846_s4 + $0x128] sm:$0xff] %v540_v8  ;;  %v544_v19 = vadd.f32 %v543_v14, %v1840_v40  ;;  %v729_v22 = vmax.f32 %v647_v15, -1e+30 }
 0x10f   : > { %v617_v20 = vsel %vm609_vm0, %v1889_v10, -1e+30  ;;  %v649_v23 = vsel %vm609_vm0, %v1895_v13, -1e+30 }
 0x110   : > { %1354 = vst [vmem:[%s1846_s4 + $0x38] sm:$0xff] %v464_v16  ;;  %682 = vmax.xlane.f32.xlu1 %v681_v17  ;;  %679 = vmax.xlane.f32.xlu0 %v678_v18  ;;  %1386 = vst [vmem:[%s1846_s4 + $0x138] sm:$0xff] %v544_v19  ;;  %v684_v21 = vmax.f32 %v617_v20, -1e+30  ;;  %v732_v32 = vmax.f32 %v649_v23, -1e+30 }
 0x112   : > { %v467_v24 = vpop.f32.mrb[8].mxu0  ;;  %v547_v25 = vpop.f32.mrb[8].mxu1 }
 0x113   : > { %v1913_v26 = vadd.f32 %v467_v24, %v1837_v39  ;;  %v469_v27 = vpop.f32.mrb[9].mxu0  ;;  %v1916_v28 = vadd.f32 %v547_v25, %v1837_v39  ;;  %v549_v29 = vpop.f32.mrb[9].mxu1 }
 0x114   : > { %685 = vmax.xlane.f32.xlu1 %v684_v21  ;;  %730 = vmax.xlane.f32.xlu0 %v729_v22  ;;  %v470_v30 = vadd.f32 %v469_v27, %v1840_v40  ;;  %v471_v31 = vpop.f32.mrb[10].mxu0  ;;  %v550_v33 = vadd.f32 %v549_v29, %v1840_v40  ;;  %v551_v34 = vpop.f32.mrb[10].mxu1 }
 0x115   : > { %v1921_v35 = vadd.f32 %v471_v31, %v1837_v39  ;;  %v473_v36 = vpop.f32.mrb[11].mxu0  ;;  %v619_v37 = vsel %vm609_vm0, %v1913_v26, -1e+30  ;;  %v1927_v41 = vadd.f32 %v551_v34, %v1837_v39  ;;  %v553_v42 = vpop.f32.mrb[11].mxu1  ;;  %v651_v45 = vsel %vm609_vm0, %v1916_v28, -1e+30 }
 0x116   : > { %1356 = vst [vmem:[%s1846_s4 + $0x48] sm:$0xff] %v470_v30  ;;  %v474_v46 = vadd.f32 %v473_v36, %v1840_v40  ;;  %v687_v47 = vmax.f32 %v619_v37, -1e+30  ;;  %1388 = vst [vmem:[%s1846_s4 + $0x148] sm:$0xff] %v550_v33  ;;  %v554_v48 = vadd.f32 %v553_v42, %v1840_v40  ;;  %v735_v52 = vmax.f32 %v651_v45, -1e+30 }
 0x117   : > { %v621_v49 = vsel %vm609_vm0, %v1921_v35, -1e+30  ;;  %v653_v53 = vsel %vm609_vm0, %v1927_v41, -1e+30 }
 0x118   : > { %1358 = vst [vmem:[%s1846_s4 + $0x58] sm:$0xff] %v474_v46  ;;  %733 = vmax.xlane.f32.xlu1 %v732_v32  ;;  %688 = vmax.xlane.f32.xlu0 %v687_v47  ;;  %1390 = vst [vmem:[%s1846_s4 + $0x158] sm:$0xff] %v554_v48  ;;  %v690_v50 = vmax.f32 %v621_v49, -1e+30  ;;  %v738_v63 = vmax.f32 %v653_v53, -1e+30 }
 0x11a   : > { %v477_v54 = vpop.f32.mrb[12].mxu0  ;;  %v557_v55 = vpop.f32.mrb[12].mxu1 }
 0x11b   : > { %v1945_v56 = vadd.f32 %v477_v54, %v1837_v39  ;;  %v479_v57 = vpop.f32.mrb[13].mxu0  ;;  %v1948_v58 = vadd.f32 %v557_v55, %v1837_v39  ;;  %v559_v60 = vpop.f32.mrb[13].mxu1 }
 0x11c   : > { %691 = vmax.xlane.f32.xlu1 %v690_v50  ;;  %736 = vmax.xlane.f32.xlu0 %v735_v52  ;;  %v480_v61 = vadd.f32 %v479_v57, %v1840_v40  ;;  %v481_v62 = vpop.f32.mrb[14].mxu0  ;;  %v560_v0 = vadd.f32 %v559_v60, %v1840_v40  ;;  %v561_v2 = vpop.f32.mrb[14].mxu1 }
 0x11d   : > { %v1953_v4 = vadd.f32 %v481_v62, %v1837_v39  ;;  %v483_v5 = vpop.f32.mrb[15].mxu0  ;;  %v623_v6 = vsel %vm609_vm0, %v1945_v56, -1e+30  ;;  %v1959_v7 = vadd.f32 %v561_v2, %v1837_v39  ;;  %v563_v8 = vpop.f32.mrb[15].mxu1  ;;  %v655_v9 = vsel %vm609_vm0, %v1948_v58, -1e+30 }
 0x11e   : > { %1360 = vst [vmem:[%s1846_s4 + $0x68] sm:$0xff] %v480_v61  ;;  %v484_v11 = vadd.f32 %v483_v5, %v1840_v40  ;;  %v693_v12 = vmax.f32 %v623_v6, -1e+30  ;;  %1392 = vst [vmem:[%s1846_s4 + $0x168] sm:$0xff] %v560_v0  ;;  %v564_v14 = vadd.f32 %v563_v8, %v1840_v40  ;;  %v741_v17 = vmax.f32 %v655_v9, -1e+30 }
 0x11f   : > { %v625_v15 = vsel %vm609_vm0, %v1953_v4, -1e+30  ;;  %v657_v18 = vsel %vm609_vm0, %v1959_v7, -1e+30 }
 0x120   : > { %1362 = vst [vmem:[%s1846_s4 + $0x78] sm:$0xff] %v484_v11  ;;  %739 = vmax.xlane.f32.xlu1 %v738_v63  ;;  %694 = vmax.xlane.f32.xlu0 %v693_v12  ;;  %1394 = vst [vmem:[%s1846_s4 + $0x178] sm:$0xff] %v564_v14  ;;  %v696_v16 = vmax.f32 %v625_v15, -1e+30  ;;  %v744_v29 = vmax.f32 %v657_v18, -1e+30 }
 0x122   : > { %v487_v19 = vpop.f32.mrb[16].mxu0  ;;  %v567_v20 = vpop.f32.mrb[16].mxu1 }
 0x123   : > { %v1977_v21 = vadd.f32 %v487_v19, %v1837_v39  ;;  %v489_v22 = vpop.f32.mrb[17].mxu0  ;;  %v1980_v23 = vadd.f32 %v567_v20, %v1837_v39  ;;  %v569_v24 = vpop.f32.mrb[17].mxu1 }
 0x124   : > { %697 = vmax.xlane.f32.xlu1 %v696_v16  ;;  %742 = vmax.xlane.f32.xlu0 %v741_v17  ;;  %v490_v25 = vadd.f32 %v489_v22, %v1840_v40  ;;  %v491_v27 = vpop.f32.mrb[18].mxu0  ;;  %v570_v30 = vadd.f32 %v569_v24, %v1840_v40  ;;  %v571_v31 = vpop.f32.mrb[18].mxu1 }
 0x125   : > { %v1985_v32 = vadd.f32 %v491_v27, %v1837_v39  ;;  %v493_v33 = vpop.f32.mrb[19].mxu0  ;;  %v627_v34 = vsel %vm609_vm0, %v1977_v21, -1e+30  ;;  %v1991_v36 = vadd.f32 %v571_v31, %v1837_v39  ;;  %v573_v37 = vpop.f32.mrb[19].mxu1  ;;  %v659_v42 = vsel %vm609_vm0, %v1980_v23, -1e+30 }
 0x126   : > { %1364 = vst [vmem:[%s1846_s4 + $0x88] sm:$0xff] %v490_v25  ;;  %v494_v45 = vadd.f32 %v493_v33, %v1840_v40  ;;  %v699_v46 = vmax.f32 %v627_v34, -1e+30  ;;  %1396 = vst [vmem:[%s1846_s4 + $0x188] sm:$0xff] %v570_v30  ;;  %v574_v47 = vadd.f32 %v573_v37, %v1840_v40  ;;  %v747_v50 = vmax.f32 %v659_v42, -1e+30 }
 0x127   : > { %v629_v48 = vsel %vm609_vm0, %v1985_v32, -1e+30  ;;  %v661_v52 = vsel %vm609_vm0, %v1991_v36, -1e+30 }
 0x128   : > { %1366 = vst [vmem:[%s1846_s4 + $0x98] sm:$0xff] %v494_v45  ;;  %745 = vmax.xlane.f32.xlu1 %v744_v29  ;;  %700 = vmax.xlane.f32.xlu0 %v699_v46  ;;  %1398 = vst [vmem:[%s1846_s4 + $0x198] sm:$0xff] %v574_v47  ;;  %v702_v49 = vmax.f32 %v629_v48, -1e+30  ;;  %v750_v0 = vmax.f32 %v661_v52, -1e+30 }
 0x12a   : > { %v497_v53 = vpop.f32.mrb[20].mxu0  ;;  %v577_v54 = vpop.f32.mrb[20].mxu1 }
 0x12b   : > { %v2009_v55 = vadd.f32 %v497_v53, %v1837_v39  ;;  %v499_v57 = vpop.f32.mrb[21].mxu0  ;;  %v2012_v60 = vadd.f32 %v577_v54, %v1837_v39  ;;  %v579_v61 = vpop.f32.mrb[21].mxu1 }
 0x12c   : > { %703 = vmax.xlane.f32.xlu1 %v702_v49  ;;  %748 = vmax.xlane.f32.xlu0 %v747_v50  ;;  %v500_v62 = vadd.f32 %v499_v57, %v1840_v40  ;;  %v501_v63 = vpop.f32.mrb[22].mxu0  ;;  %v580_v2 = vadd.f32 %v579_v61, %v1840_v40  ;;  %v581_v5 = vpop.f32.mrb[22].mxu1 }
 0x12d   : > { %v2017_v6 = vadd.f32 %v501_v63, %v1837_v39  ;;  %v503_v8 = vpop.f32.mrb[23].mxu0  ;;  %v631_v9 = vsel %vm609_vm0, %v2009_v55, -1e+30  ;;  %v2023_v11 = vadd.f32 %v581_v5, %v1837_v39  ;;  %v583_v12 = vpop.f32.mrb[23].mxu1  ;;  %v663_v14 = vsel %vm609_vm0, %v2012_v60, -1e+30 }
 0x12e   : > { %1368 = vst [vmem:[%s1846_s4 + $0xa8] sm:$0xff] %v500_v62  ;;  %v504_v15 = vadd.f32 %v503_v8, %v1840_v40  ;;  %v705_v16 = vmax.f32 %v631_v9, -1e+30  ;;  %1400 = vst [vmem:[%s1846_s4 + $0x1a8] sm:$0xff] %v580_v2  ;;  %v584_v17 = vadd.f32 %v583_v12, %v1840_v40  ;;  %v753_v20 = vmax.f32 %v663_v14, -1e+30 }
 0x12f   : > { %2538 = vst [vmem:[#allocation2_spill] sm:$0xff] %v2023_v11  ;;  %v633_v18 = vsel %vm609_vm0, %v2017_v6, -1e+30  ;;  %v665_v22 = vsel %vm609_vm0, %v2023_v11, -1e+30 }
 0x130   : > { %1370 = vst [vmem:[%s1846_s4 + $0xb8] sm:$0xff] %v504_v15  ;;  %751 = vmax.xlane.f32.xlu1 %v750_v0  ;;  %706 = vmax.xlane.f32.xlu0 %v705_v16  ;;  %1402 = vst [vmem:[%s1846_s4 + $0x1b8] sm:$0xff] %v584_v17  ;;  %v708_v19 = vmax.f32 %v633_v18, -1e+30  ;;  %v756_v37 = vmax.f32 %v665_v22, -1e+30 }
 0x132   : > { %v507_v24 = vpop.f32.mrb[24].mxu0  ;;  %v587_v25 = vpop.f32.mrb[24].mxu1 }
 0x133   : > { %v2041_v27 = vadd.f32 %v507_v24, %v1837_v39  ;;  %v509_v29 = vpop.f32.mrb[25].mxu0  ;;  %v2044_v30 = vadd.f32 %v587_v25, %v1837_v39  ;;  %v589_v31 = vpop.f32.mrb[25].mxu1 }
 0x134   : > { %709 = vmax.xlane.f32.xlu1 %v708_v19  ;;  %754 = vmax.xlane.f32.xlu0 %v753_v20  ;;  %v510_v33 = vadd.f32 %v509_v29, %v1840_v40  ;;  %v511_v34 = vpop.f32.mrb[26].mxu0  ;;  %v590_v42 = vadd.f32 %v589_v31, %v1840_v40  ;;  %v591_v45 = vpop.f32.mrb[26].mxu1 }
 0x135   : > { %2539 = vst [vmem:[#allocation3_spill] sm:$0xff] %v2044_v30  ;;  %v2049_v46 = vadd.f32 %v511_v34, %v1837_v39  ;;  %v513_v47 = vpop.f32.mrb[27].mxu0  ;;  %v635_v48 = vsel %vm609_vm0, %v2041_v27, -1e+30  ;;  %v2055_v49 = vadd.f32 %v591_v45, %v1837_v39  ;;  %v593_v50 = vpop.f32.mrb[27].mxu1 }
 0x136   : > { %v667_v52 = vsel %vm609_vm0, %v2044_v30, -1e+30  ;;  %1372 = vst [vmem:[%s1846_s4 + $0xc8] sm:$0xff] %v510_v33  ;;  %v514_v53 = vadd.f32 %v513_v47, %v1840_v40  ;;  %v711_v54 = vmax.f32 %v635_v48, -1e+30  ;;  %1404 = vst [vmem:[%s1846_s4 + $0x1c8] sm:$0xff] %v590_v42  ;;  %v594_v57 = vadd.f32 %v593_v50, %v1840_v40 }
 0x137   : > { %2540 = vst [vmem:[#allocation4_spill] sm:$0xff] %v2049_v46  ;;  %2541 = vst [vmem:[#allocation5_spill] sm:$0xff] %v2055_v49  ;;  %v637_v61 = vsel %vm609_vm0, %v2049_v46, -1e+30  ;;  %v759_v63 = vmax.f32 %v667_v52, -1e+30 }
 0x138   : > { %1374 = vst [vmem:[%s1846_s4 + $0xd8] sm:$0xff] %v514_v53  ;;  %757 = vmax.xlane.f32.xlu1 %v756_v37  ;;  %712 = vmax.xlane.f32.xlu0 %v711_v54  ;;  %1406 = vst [vmem:[%s1846_s4 + $0x1d8] sm:$0xff] %v594_v57  ;;  %v714_v62 = vmax.f32 %v637_v61, -1e+30  ;;  %v669_v0 = vsel %vm609_vm0, %v2055_v49, -1e+30 }
 0x139   : > { %v762_v17 = vmax.f32 %v669_v0, -1e+30 }
 0x13a   : > { %v517_v2 = vpop.f32.mrb[28].mxu0  ;;  %v597_v5 = vpop.f32.mrb[28].mxu1 }
 0x13b   : > { %v2073_v8 = vadd.f32 %v517_v2, %v1837_v39  ;;  %v519_v9 = vpop.f32.mrb[29].mxu0  ;;  %v2076_v12 = vadd.f32 %v597_v5, %v1837_v39  ;;  %v599_v14 = vpop.f32.mrb[29].mxu1 }
 0x13c   : > { %715 = vmax.xlane.f32.xlu1 %v714_v62  ;;  %760 = vmax.xlane.f32.xlu0 %v759_v63  ;;  %v520_v15 = vadd.f32 %v519_v9, %v1840_v40  ;;  %v521_v16 = vpop.f32.mrb[30].mxu0  ;;  %v600_v18 = vadd.f32 %v599_v14, %v1840_v40  ;;  %v601_v19 = vpop.f32.mrb[30].mxu1 }
 0x13d   : > { %2542 = vst [vmem:[#allocation6_spill] sm:$0xff] %v2073_v8  ;;  %2543 = vst [vmem:[#allocation7_spill] sm:$0xff] %v2076_v12  ;;  %v2081_v20 = vadd.f32 %v521_v16, %v1837_v39  ;;  %v523_v22 = vpop.f32.mrb[31].mxu0  ;;  %v639_v24 = vsel %vm609_vm0, %v2073_v8, -1e+30  ;;  %v2087_v25 = vadd.f32 %v601_v19, %v1837_v39  ;;  %v603_v29 = vpop.f32.mrb[31].mxu1 }
 0x13e   : > { %v671_v31 = vsel %vm609_vm0, %v2076_v12, -1e+30  ;;  %1376 = vst [vmem:[%s1846_s4 + $0xe8] sm:$0xff] %v520_v15  ;;  %v524_v33 = vadd.f32 %v523_v22, %v1840_v40  ;;  %v717_v34 = vmax.f32 %v639_v24, -1e+30  ;;  %1408 = vst [vmem:[%s1846_s4 + $0x1e8] sm:$0xff] %v600_v18  ;;  %v604_v37 = vadd.f32 %v603_v29, %v1840_v40 }
 0x13f   : > { %2544 = vst [vmem:[#allocation8_spill] sm:$0xff] %v2081_v20  ;;  %2545 = vst [vmem:[#allocation9_spill] sm:$0xff] %v2087_v25  ;;  %v641_v42 = vsel %vm609_vm0, %v2081_v20, -1e+30  ;;  %v765_v45 = vmax.f32 %v671_v31, -1e+30 }
 0x140   : > { %1378 = vst [vmem:[%s1846_s4 + $0xf8] sm:$0xff] %v524_v33  ;;  %763 = vmax.xlane.f32.xlu1 %v762_v17  ;;  %718 = vmax.xlane.f32.xlu0 %v717_v34  ;;  %1410 = vst [vmem:[%s1846_s4 + $0x1f8] sm:$0xff] %v604_v37  ;;  %v720_v39 = vmax.f32 %v641_v42, -1e+30  ;;  %v673_v47 = vsel %vm609_vm0, %v2087_v25, -1e+30 }
 0x141   : > { %v768_v48 = vmax.f32 %v673_v47, -1e+30 }
 0x144   : > { %721 = vmax.xlane.f32.xlu1 %v720_v39  ;;  %766 = vmax.xlane.f32.xlu0 %v765_v45 }
 0x148   : > { %769 = vmax.xlane.f32.xlu1 %v768_v48 }
 0x195   : > { %v677_v50 = vpop.xlane.xlu0 %676 }
 0x196   : > { %v771_v40 = vsub.f32 %v1849_v43, %v677_v50 }
 0x197   : > { %v728_v52 = vpop.xlane.xlu1 %727 }
 0x198   : > { %v835_v53 = vsel %vm609_vm0, %v771_v40, 0.0  ;;  %v805_v61 = vsub.f32 %v1857_v51, %v728_v52 }
 0x199   : > { %v899_v54 = vmul.f32 1.442695, %v835_v53  ;;  %v725_v57 = vpop.xlane.xlu0 %724 }
 0x19a   : > { %v803_v62 = vsub.f32 %v1852_v44, %v725_v57  ;;  %v869_v9 = vsel %vm609_vm0, %v805_v61, 0.0 }
 0x19b   : > { %1579 = vpow2.f32 %v899_v54  ;;  %v967_v18 = vmul.f32 1.442695, %v869_v9 }
 0x19c   : > { %v867_v63 = vsel %vm609_vm0, %v803_v62, 0.0 }
 0x19d   : > { %v963_v0 = vmul.f32 1.442695, %v867_v63  ;;  %v683_v2 = vpop.xlane.xlu1 %682  ;;  %v680_v5 = vpop.xlane.xlu0 %679 }
 0x19e   : > { %v775_v14 = vsub.f32 %v1878_v1, %v683_v2  ;;  %v773_v15 = vsub.f32 %v1870_v59, %v680_v5 }
 0x19f   : > { %1581 = vpow2.f32 %v963_v0 }
 0x1a0   : > { %v839_v16 = vsel %vm609_vm0, %v775_v14, 0.0  ;;  %v837_v17 = vsel %vm609_vm0, %v773_v15, 0.0 }
 0x1a1   : > { %v907_v19 = vmul.f32 1.442695, %v839_v16  ;;  %v903_v22 = vmul.f32 1.442695, %v837_v17  ;;  %v686_v24 = vpop.xlane.xlu1 %685  ;;  %v731_v29 = vpop.xlane.xlu0 %730 }
 0x1a2   : > { %v777_v31 = vsub.f32 %v1889_v10, %v686_v24  ;;  %v807_v33 = vsub.f32 %v1881_v3, %v731_v29 }
 0x1a3   : > { %1583 = vpow2.f32 %v907_v19 }
 0x1a4   : > { %1585 = vpow2.f32 %v903_v22  ;;  %v841_v34 = vsel %vm609_vm0, %v777_v31, 0.0  ;;  %v871_v37 = vsel %vm609_vm0, %v807_v33, 0.0 }
 0x1a5   : > { %v2125_v42 = vpop.eup %1579  ;;  %1587 = vpow2.f32 %v967_v18  ;;  %v971_v39 = vmul.f32 1.442695, %v871_v37  ;;  %v734_v45 = vpop.xlane.xlu1 %733  ;;  %v911_v48 = vmul.f32 1.442695, %v841_v34 }
 0x1a6   : > { %v689_v47 = vpop.xlane.xlu0 %688  ;;  %v809_v50 = vsub.f32 %v1895_v13, %v734_v45  ;;  %v1027_v52 = vsel %vm609_vm0, %v2125_v42, 0.0 }
 0x1a7   : > { %v779_v40 = vsub.f32 %v1913_v26, %v689_v47  ;;  %1092 = vadd.xlane.f32.xlu0 %v1027_v52  ;;  %1589 = vpow2.f32 %v971_v39 }
 0x1a8   : > { %v873_v53 = vsel %vm609_vm0, %v809_v50, 0.0  ;;  %1591 = vpow2.f32 %v911_v48 }
 0x1a9   : > { %v843_v54 = vsel %vm609_vm0, %v779_v40, 0.0  ;;  %v2136_v57 = vpop.eup %1581  ;;  %v975_v61 = vmul.f32 1.442695, %v873_v53  ;;  %v692_v63 = vpop.xlane.xlu1 %691 }
 0x1aa   : > { %v915_v62 = vmul.f32 1.442695, %v843_v54  ;;  %v737_v0 = vpop.xlane.xlu0 %736  ;;  %v781_v2 = vsub.f32 %v1921_v35, %v692_v63  ;;  %v1059_v9 = vsel %vm609_vm0, %v2136_v57, 0.0 }
 0x1ab   : > { %v811_v5 = vsub.f32 %v1916_v28, %v737_v0  ;;  %1140 = vadd.xlane.f32.xlu0 %v1059_v9 }
 0x1ac   : > { %1593 = vpow2.f32 %v915_v62  ;;  %v845_v14 = vsel %vm609_vm0, %v781_v2, 0.0 }
 0x1ad   : > { %v875_v15 = vsel %vm609_vm0, %v811_v5, 0.0  ;;  %v2147_v16 = vpop.eup %1583  ;;  %1595 = vpow2.f32 %v975_v61  ;;  %v740_v18 = vpop.xlane.xlu1 %739  ;;  %v919_v24 = vmul.f32 1.442695, %v845_v14 }
 0x1ae   : > { %v979_v17 = vmul.f32 1.442695, %v875_v15  ;;  %v695_v19 = vpop.xlane.xlu0 %694  ;;  %v2149_v22 = vpop.eup %1585  ;;  %v813_v29 = vsub.f32 %v1927_v41, %v740_v18  ;;  %v1031_v33 = vsel %vm609_vm0, %v2147_v16, 0.0 }
 0x1af   : > { %v783_v31 = vsub.f32 %v1945_v56, %v695_v19  ;;  %v2156_v34 = vpop.eup %1587  ;;  %1098 = vadd.xlane.f32.xlu0 %v1031_v33  ;;  %v1029_v37 = vsel %vm609_vm0, %v2149_v22, 0.0 }
 0x1b0   : > { %1597 = vpow2.f32 %v979_v17  ;;  %v877_v39 = vsel %vm609_vm0, %v813_v29, 0.0  ;;  %1095 = vadd.xlane.f32.xlu1 %v1029_v37  ;;  %v1061_v61 = vsel %vm609_vm0, %v2156_v34, 0.0 }
 0x1b1   : > { %v847_v45 = vsel %vm609_vm0, %v783_v31, 0.0  ;;  %v698_v48 = vpop.xlane.xlu1 %697  ;;  %v2165_v40 = vpop.eup %1589  ;;  %1599 = vpow2.f32 %v919_v24  ;;  %v983_v52 = vmul.f32 1.442695, %v877_v39 }
 0x1b2   : > { %v923_v47 = vmul.f32 1.442695, %v847_v45  ;;  %v743_v50 = vpop.xlane.xlu0 %742  ;;  %v785_v53 = vsub.f32 %v1953_v4, %v698_v48  ;;  %v1063_v62 = vsel %vm609_vm0, %v2165_v40, 0.0  ;;  %v2175_v63 = vpop.eup %1591 }
 0x1b3   : > { %v815_v54 = vsub.f32 %v1948_v58, %v743_v50  ;;  %1146 = vadd.xlane.f32.xlu0 %v1063_v62  ;;  %v1033_v29 = vsel %vm609_vm0, %v2175_v63, 0.0 }
 0x1b4   : > { %1601 = vpow2.f32 %v923_v47  ;;  %v849_v0 = vsel %vm609_vm0, %v785_v53, 0.0  ;;  %1143 = vadd.xlane.f32.xlu1 %v1061_v61 }
 0x1b5   : > { %v879_v2 = vsel %vm609_vm0, %v815_v54, 0.0  ;;  %v746_v9 = vpop.xlane.xlu1 %745  ;;  %1603 = vpow2.f32 %v983_v52  ;;  %v927_v17 = vmul.f32 1.442695, %v849_v0 }
 0x1b6   : > { %v987_v5 = vmul.f32 1.442695, %v879_v2  ;;  %v701_v14 = vpop.xlane.xlu0 %700  ;;  %v2181_v15 = vpop.eup %1593  ;;  %v817_v18 = vsub.f32 %v1959_v7, %v746_v9 }
 0x1b7   : > { %v787_v19 = vsub.f32 %v1977_v21, %v701_v14  ;;  %v2185_v24 = vpop.eup %1595  ;;  %v1035_v31 = vsel %vm609_vm0, %v2181_v15, 0.0 }
 0x1b8   : > { %1605 = vpow2.f32 %v987_v5  ;;  %v881_v33 = vsel %vm609_vm0, %v817_v18, 0.0  ;;  %1101 = vadd.xlane.f32.xlu1 %v1033_v29  ;;  %1104 = vadd.xlane.f32.xlu0 %v1035_v31  ;;  %v1065_v54 = vsel %vm609_vm0, %v2185_v24, 0.0 }
 0x1b9   : > { %v851_v37 = vsel %vm609_vm0, %v787_v19, 0.0  ;;  %v704_v45 = vpop.xlane.xlu1 %703  ;;  %1607 = vpow2.f32 %v927_v17  ;;  %v991_v50 = vmul.f32 1.442695, %v881_v33 }
 0x1ba   : > { %v931_v39 = vmul.f32 1.442695, %v851_v37  ;;  %v749_v47 = vpop.xlane.xlu0 %748  ;;  %v2197_v48 = vpop.eup %1597  ;;  %v789_v52 = vsub.f32 %v1985_v32, %v704_v45 }
 0x1bb   : > { %v819_v53 = vsub.f32 %v1980_v23, %v749_v47  ;;  %v1067_v61 = vsel %vm609_vm0, %v2197_v48, 0.0  ;;  %v2207_v62 = vpop.eup %1599 }
 0x1bc   : > { %1609 = vpow2.f32 %v931_v39  ;;  %v853_v0 = vsel %vm609_vm0, %v789_v52, 0.0  ;;  %1149 = vadd.xlane.f32.xlu1 %v1065_v54  ;;  %1152 = vadd.xlane.f32.xlu0 %v1067_v61  ;;  %v1037_v31 = vsel %vm609_vm0, %v2207_v62, 0.0 }
 0x1bd   : > { %v883_v2 = vsel %vm609_vm0, %v819_v53, 0.0  ;;  %v752_v9 = vpop.xlane.xlu1 %751  ;;  %1611 = vpow2.f32 %v991_v50  ;;  %v935_v18 = vmul.f32 1.442695, %v853_v0 }
 0x1be   : > { %v995_v5 = vmul.f32 1.442695, %v883_v2  ;;  %v707_v14 = vpop.xlane.xlu0 %706  ;;  %v2213_v17 = vpop.eup %1601  ;;  %v821_v19 = vsub.f32 %v1991_v36, %v752_v9 }
 0x1bf   : > { %v791_v29 = vsub.f32 %v2009_v55, %v707_v14  ;;  %v1039_v33 = vsel %vm609_vm0, %v2213_v17, 0.0  ;;  %v2223_v37 = vpop.eup %1603 }
 0x1c0   : > { %1613 = vpow2.f32 %v995_v5  ;;  %v885_v39 = vsel %vm609_vm0, %v821_v19, 0.0  ;;  %1107 = vadd.xlane.f32.xlu1 %v1037_v31  ;;  %1110 = vadd.xlane.f32.xlu0 %v1039_v33  ;;  %v1069_v2 = vsel %vm609_vm0, %v2223_v37, 0.0 }
 0x1c1   : > { %v855_v45 = vsel %vm609_vm0, %v791_v29, 0.0  ;;  %v710_v50 = vpop.xlane.xlu1 %709  ;;  %1615 = vpow2.f32 %v935_v18  ;;  %v999_v54 = vmul.f32 1.442695, %v885_v39 }
 0x1c2   : > { %v939_v47 = vmul.f32 1.442695, %v855_v45  ;;  %v755_v52 = vpop.xlane.xlu0 %754  ;;  %v2229_v53 = vpop.eup %1605  ;;  %v793_v61 = vsub.f32 %v2017_v6, %v710_v50 }
 0x1c3   : > { %v823_v0 = vsub.f32 %v2012_v60, %v755_v52  ;;  %v1071_v5 = vsel %vm609_vm0, %v2229_v53, 0.0  ;;  %v2239_v9 = vpop.eup %1607 }
 0x1c4   : > { %1617 = vpow2.f32 %v939_v47  ;;  %v857_v14 = vsel %vm609_vm0, %v793_v61, 0.0  ;;  %1155 = vadd.xlane.f32.xlu1 %v1069_v2  ;;  %1158 = vadd.xlane.f32.xlu0 %v1071_v5  ;;  %v1041_v47 = vsel %vm609_vm0, %v2239_v9, 0.0 }
 0x1c5   : > { %v887_v18 = vsel %vm609_vm0, %v823_v0, 0.0  ;;  %v758_v29 = vpop.xlane.xlu1 %757  ;;  %1619 = vpow2.f32 %v999_v54  ;;  %v943_v39 = vmul.f32 1.442695, %v857_v14 }
 0x1c6   : > { %v1003_v19 = vmul.f32 1.442695, %v887_v18  ;;  %v713_v31 = vpop.xlane.xlu0 %712  ;;  %v2245_v33 = vpop.eup %1609  ;;  %v825_v45 = vsub.f32 %v2023_v11, %v758_v29 }
 0x1c7   : > { %v795_v50 = vsub.f32 %v2041_v27, %v713_v31  ;;  %v1043_v52 = vsel %vm609_vm0, %v2245_v33, 0.0  ;;  %v2255_v61 = vpop.eup %1611 }
 0x1c8   : > { %1621 = vpow2.f32 %v1003_v19  ;;  %v889_v0 = vsel %vm609_vm0, %v825_v45, 0.0  ;;  %1113 = vadd.xlane.f32.xlu1 %v1041_v47  ;;  %1116 = vadd.xlane.f32.xlu0 %v1043_v52  ;;  %v1073_v19 = vsel %vm609_vm0, %v2255_v61, 0.0 }
 0x1c9   : > { %v859_v54 = vsel %vm609_vm0, %v795_v50, 0.0  ;;  %v716_v5 = vpop.xlane.xlu1 %715  ;;  %1623 = vpow2.f32 %v943_v39  ;;  %v1007_v29 = vmul.f32 1.442695, %v889_v0 }
 0x1ca   : > { %v947_v2 = vmul.f32 1.442695, %v859_v54  ;;  %v761_v14 = vpop.xlane.xlu0 %760  ;;  %v2261_v18 = vpop.eup %1613  ;;  %v797_v31 = vsub.f32 %v2049_v46, %v716_v5 }
 0x1cb   : > { %v827_v11 = vsub.f32 %v2044_v30, %v761_v14  ;;  %v1075_v45 = vsel %vm609_vm0, %v2261_v18, 0.0  ;;  %v2271_v50 = vpop.eup %1615 }
 0x1cc   : > { %1625 = vpow2.f32 %v947_v2  ;;  %v861_v47 = vsel %vm609_vm0, %v797_v31, 0.0  ;;  %1161 = vadd.xlane.f32.xlu1 %v1073_v19  ;;  %1164 = vadd.xlane.f32.xlu0 %v1075_v45  ;;  %v1045_v2 = vsel %vm609_vm0, %v2271_v50, 0.0 }
 0x1cd   : > { %v891_v39 = vsel %vm609_vm0, %v827_v11, 0.0  ;;  %v764_v0 = vpop.xlane.xlu1 %763  ;;  %1627 = vpow2.f32 %v1007_v29  ;;  %v951_v14 = vmul.f32 1.442695, %v861_v47 }
 0x1ce   : > { %v1011_v52 = vmul.f32 1.442695, %v891_v39  ;;  %v719_v54 = vpop.xlane.xlu0 %718  ;;  %v2277_v5 = vpop.eup %1617  ;;  %v829_v46 = vsub.f32 %v2055_v49, %v764_v0 }
 0x1cf   : > { %v799_v30 = vsub.f32 %v2073_v8, %v719_v54  ;;  %v1047_v11 = vsel %vm609_vm0, %v2277_v5, 0.0  ;;  %v2287_v31 = vpop.eup %1619 }
 0x1d0   : > { %1629 = vpow2.f32 %v1011_v52  ;;  %v893_v19 = vsel %vm609_vm0, %v829_v46, 0.0  ;;  %1119 = vadd.xlane.f32.xlu1 %v1045_v2  ;;  %1122 = vadd.xlane.f32.xlu0 %v1047_v11  ;;  %v1077_v46 = vsel %vm609_vm0, %v2287_v31, 0.0 }
 0x1d1   : > { %v863_v29 = vsel %vm609_vm0, %v799_v30, 0.0  ;;  %v722_v47 = vpop.xlane.xlu1 %721  ;;  %1631 = vpow2.f32 %v951_v14  ;;  %v1015_v54 = vmul.f32 1.442695, %v893_v19 }
 0x1d2   : > { %v955_v45 = vmul.f32 1.442695, %v863_v29  ;;  %v767_v39 = vpop.xlane.xlu0 %766  ;;  %v2293_v0 = vpop.eup %1621  ;;  %v801_v49 = vsub.f32 %v2081_v20, %v722_v47 }
 0x1d3   : > { %v831_v8 = vsub.f32 %v2076_v12, %v767_v39  ;;  %v1079_v30 = vsel %vm609_vm0, %v2293_v0, 0.0  ;;  %v2303_v52 = vpop.eup %1623 }
 0x1d4   : > { %1633 = vpow2.f32 %v955_v45  ;;  %v865_v2 = vsel %vm609_vm0, %v801_v49, 0.0  ;;  %1167 = vadd.xlane.f32.xlu1 %v1077_v46  ;;  %1170 = vadd.xlane.f32.xlu0 %v1079_v30  ;;  %v1049_v45 = vsel %vm609_vm0, %v2303_v52, 0.0 }
 0x1d5   : > { %v895_v14 = vsel %vm609_vm0, %v831_v8, 0.0  ;;  %v770_v19 = vpop.xlane.xlu1 %769  ;;  %1635 = vpow2.f32 %v1015_v54  ;;  %v959_v47 = vmul.f32 1.442695, %v865_v2 }
 0x1d6   : > { %v1019_v11 = vmul.f32 1.442695, %v895_v14  ;;  %v2309_v29 = vpop.eup %1625  ;;  %v833_v39 = vsub.f32 %v2087_v25, %v770_v19 }
 0x1d7   : > { %v1051_v49 = vsel %vm609_vm0, %v2309_v29, 0.0  ;;  %v2318_v20 = vpop.eup %1627 }
 0x1d8   : > { %1637 = vpow2.f32 %v1019_v11  ;;  %v897_v8 = vsel %vm609_vm0, %v833_v39, 0.0  ;;  %1125 = vadd.xlane.f32.xlu1 %v1049_v45  ;;  %1128 = vadd.xlane.f32.xlu0 %v1051_v49  ;;  %v1081_v30 = vsel %vm609_vm0, %v2318_v20, 0.0 }
 0x1d9   : > { %1639 = vpow2.f32 %v959_v47  ;;  %v1023_v46 = vmul.f32 1.442695, %v897_v8 }
 0x1da   : > { %v2322_v54 = vpop.eup %1629 }
 0x1db   : > { %v1083_v2 = vsel %vm609_vm0, %v2322_v54, 0.0  ;;  %v2330_v14 = vpop.eup %1631  ;;  %1641 = vpow2.f32 %v1023_v46 }
 0x1dc   : > { %1173 = vadd.xlane.f32.xlu1 %v1081_v30  ;;  %1176 = vadd.xlane.f32.xlu0 %v1083_v2  ;;  %v1053_v19 = vsel %vm609_vm0, %v2330_v14, 0.0 }
 0x1de   : > { %v2332_v11 = vpop.eup %1633 }
 0x1df   : > { %v1055_v47 = vsel %vm609_vm0, %v2332_v11, 0.0  ;;  %v2340_v39 = vpop.eup %1635 }
 0x1e0   : > { %1131 = vadd.xlane.f32.xlu1 %v1053_v19  ;;  %1134 = vadd.xlane.f32.xlu0 %v1055_v47  ;;  %v1085_v49 = vsel %vm609_vm0, %v2340_v39, 0.0 }
 0x1e2   : > { %v2342_v45 = vpop.eup %1637 }
 0x1e3   : > { %2546 = vst [vmem:[#allocation10_spill] sm:$0xff] %v2342_v45  ;;  %v1087_v8 = vsel %vm609_vm0, %v2342_v45, 0.0  ;;  %v2350_v46 = vpop.eup %1639 }
 0x1e4   : > { %2547 = vst [vmem:[#allocation11_spill] sm:$0xff] %v2350_v46  ;;  %1179 = vadd.xlane.f32.xlu1 %v1085_v49  ;;  %1182 = vadd.xlane.f32.xlu0 %v1087_v8  ;;  %v1057_v30 = vsel %vm609_vm0, %v2350_v46, 0.0 }
 0x1e5   : > { %v2355_v2 = vpop.eup %1641 }
 0x1e6   : > { %2548 = vst [vmem:[#allocation12_spill] sm:$0xff] %v2355_v2  ;;  %v1089_v19 = vsel %vm609_vm0, %v2355_v2, 0.0 }
 0x1e8   : > { %1137 = vadd.xlane.f32.xlu1 %v1057_v30 }
 0x1ec   : > { %1185 = vadd.xlane.f32.xlu1 %v1089_v19 }
 0x234   : > { %v1093_v47 = vpop.xlane.xlu0 %1092 }
 0x235   : > { %1643 = vrcp.f32 %v1093_v47 }
 0x238   : > { %v1141_v25 = vpop.xlane.xlu0 %1140 }
 0x239   : > { %1645 = vrcp.f32 %v1141_v25 }
 0x23c   : > { %v1099_v12 = vpop.xlane.xlu0 %1098 }
 0x23d   : > { %v1096_v49 = vpop.xlane.xlu1 %1095  ;;  %1647 = vrcp.f32 %v1099_v12 }
 0x23e   : > { %1649 = vrcp.f32 %v1096_v49 }
 0x23f   : > { %v1644_v8 = vpop.eup %1643 }
 0x240   : > { %v1188_v46 = vmul.f32 %v1644_v8, %v2125_v42  ;;  %v1147_v30 = vpop.xlane.xlu0 %1146 }
 0x241   : > { %v1144_v45 = vpop.xlane.xlu1 %1143 }
 0x242   : > { %v1283_v2 = vsel %vm609_vm0, %v1188_v46, %v1849_v43  ;;  %1651 = vrcp.f32 %v1144_v45 }
 0x243   : > { %v1646_v19 = vpop.eup %1645  ;;  %1347 = vst [vmem:[%s1846_s4] sm:$0xff] %v1283_v2  ;;  %1653 = vrcp.f32 %v1147_v30 }
 0x244   : > { %v1236_v25 = vmul.f32 %v1646_v19, %v2136_v57 }
 0x245   : > { %v1102_v47 = vpop.xlane.xlu1 %1101  ;;  %v1105_v12 = vpop.xlane.xlu0 %1104 }
 0x246   : > { %v1315_v49 = vsel %vm609_vm0, %v1236_v25, %v1852_v44  ;;  %1655 = vrcp.f32 %v1102_v47 }
 0x247   : > { %v1648_v42 = vpop.eup %1647  ;;  %1379 = vst [vmem:[%s1846_s4 + $0x100] sm:$0xff] %v1315_v49  ;;  %1657 = vrcp.f32 %v1105_v12 }
 0x248   : > { %v1650_v8 = vpop.eup %1649  ;;  %v1194_v43 = vmul.f32 %v1648_v42, %v2147_v16 }
 0x249   : > { %v1191_v45 = vmul.f32 %v1650_v8, %v2149_v22  ;;  %v1150_v46 = vpop.xlane.xlu1 %1149  ;;  %v1153_v2 = vpop.xlane.xlu0 %1152 }
 0x24a   : > { %v1287_v57 = vsel %vm609_vm0, %v1194_v43, %v1878_v1  ;;  %1659 = vrcp.f32 %v1150_v46 }
 0x24b   : > { %v1285_v44 = vsel %vm609_vm0, %v1191_v45, %v1870_v59  ;;  %1351 = vst [vmem:[%s1846_s4 + $0x20] sm:$0xff] %v1287_v57  ;;  %1661 = vrcp.f32 %v1153_v2 }
 0x24c   : > { %v1652_v30 = vpop.eup %1651  ;;  %1349 = vst [vmem:[%s1846_s4 + $0x10] sm:$0xff] %v1285_v44 }
 0x24d   : > { %v1654_v16 = vpop.eup %1653  ;;  %v1239_v22 = vmul.f32 %v1652_v30, %v2156_v34  ;;  %v1108_v19 = vpop.xlane.xlu1 %1107 }
 0x24e   : > { %v1111_v25 = vpop.xlane.xlu0 %1110  ;;  %v1242_v47 = vmul.f32 %v1654_v16, %v2165_v40  ;;  %1663 = vrcp.f32 %v1108_v19 }
 0x24f   : > { %v1317_v1 = vsel %vm609_vm0, %v1239_v22, %v1857_v51  ;;  %1665 = vrcp.f32 %v1111_v25 }
 0x250   : > { %v1656_v59 = vpop.eup %1655  ;;  %1381 = vst [vmem:[%s1846_s4 + $0x110] sm:$0xff] %v1317_v1  ;;  %v1319_v12 = vsel %vm609_vm0, %v1242_v47, %v1881_v3 }
 0x251   : > { %v1658_v49 = vpop.eup %1657  ;;  %1383 = vst [vmem:[%s1846_s4 + $0x120] sm:$0xff] %v1319_v12  ;;  %v1197_v34 = vmul.f32 %v1656_v59, %v2175_v63  ;;  %v1156_v42 = vpop.xlane.xlu1 %1155 }
 0x252   : > { %v1159_v40 = vpop.xlane.xlu0 %1158  ;;  %v1200_v8 = vmul.f32 %v1658_v49, %v2181_v15  ;;  %1667 = vrcp.f32 %v1156_v42 }
 0x253   : > { %v1289_v51 = vsel %vm609_vm0, %v1197_v34, %v1889_v10  ;;  %1669 = vrcp.f32 %v1159_v40 }
 0x254   : > { %v1660_v43 = vpop.eup %1659  ;;  %1353 = vst [vmem:[%s1846_s4 + $0x30] sm:$0xff] %v1289_v51  ;;  %v1291_v3 = vsel %vm609_vm0, %v1200_v8, %v1913_v26 }
 0x255   : > { %v1662_v45 = vpop.eup %1661  ;;  %1355 = vst [vmem:[%s1846_s4 + $0x40] sm:$0xff] %v1291_v3  ;;  %v1245_v63 = vmul.f32 %v1660_v43, %v2185_v24  ;;  %v1114_v46 = vpop.xlane.xlu1 %1113 }
 0x256   : > { %v1117_v15 = vpop.xlane.xlu0 %1116  ;;  %v1248_v2 = vmul.f32 %v1662_v45, %v2197_v48  ;;  %1671 = vrcp.f32 %v1114_v46 }
 0x257   : > { %v1321_v10 = vsel %vm609_vm0, %v1245_v63, %v1895_v13  ;;  %1673 = vrcp.f32 %v1117_v15 }
 0x258   : > { %v1664_v57 = vpop.eup %1663  ;;  %1385 = vst [vmem:[%s1846_s4 + $0x130] sm:$0xff] %v1321_v10  ;;  %v1323_v26 = vsel %vm609_vm0, %v1248_v2, %v1916_v28 }
 0x259   : > { %v1666_v44 = vpop.eup %1665  ;;  %1387 = vst [vmem:[%s1846_s4 + $0x140] sm:$0xff] %v1323_v26  ;;  %v1203_v24 = vmul.f32 %v1664_v57, %v2207_v62  ;;  %v1162_v30 = vpop.xlane.xlu1 %1161 }
 0x25a   : > { %v1165_v48 = vpop.xlane.xlu0 %1164  ;;  %v1206_v16 = vmul.f32 %v1666_v44, %v2213_v17  ;;  %1675 = vrcp.f32 %v1162_v30 }
 0x25b   : > { %v1293_v13 = vsel %vm609_vm0, %v1203_v24, %v1921_v35  ;;  %1677 = vrcp.f32 %v1165_v48 }
 0x25c   : > { %v1668_v22 = vpop.eup %1667  ;;  %1357 = vst [vmem:[%s1846_s4 + $0x50] sm:$0xff] %v1293_v13  ;;  %v1295_v28 = vsel %vm609_vm0, %v1206_v16, %v1945_v56  ;;  %v2549_v16 = vld [vmem:[#allocation2_spill] sm:$0xff] }
 0x25d   : > { %v1670_v19 = vpop.eup %1669  ;;  %1359 = vst [vmem:[%s1846_s4 + $0x60] sm:$0xff] %v1295_v28  ;;  %v1251_v62 = vmul.f32 %v1668_v22, %v2223_v37  ;;  %v1120_v25 = vpop.xlane.xlu1 %1119  ;;  %v2550_v22 = vld [vmem:[#allocation3_spill] sm:$0xff] }
 0x25e   : > { %v1123_v17 = vpop.xlane.xlu0 %1122  ;;  %v1254_v47 = vmul.f32 %v1670_v19, %v2229_v53  ;;  %1679 = vrcp.f32 %v1120_v25 }
 0x25f   : > { %v1325_v35 = vsel %vm609_vm0, %v1251_v62, %v1927_v41  ;;  %1681 = vrcp.f32 %v1123_v17  ;;  %v2551_v62 = vld [vmem:[#allocation4_spill] sm:$0xff] }
 0x260   : > { %v1672_v1 = vpop.eup %1671  ;;  %1389 = vst [vmem:[%s1846_s4 + $0x150] sm:$0xff] %v1325_v35  ;;  %v1327_v56 = vsel %vm609_vm0, %v1254_v47, %v1948_v58  ;;  %v2552_v47 = vld [vmem:[#allocation6_spill] sm:$0xff] }
 0x261   : > { %v1674_v59 = vpop.eup %1673  ;;  %1391 = vst [vmem:[%s1846_s4 + $0x160] sm:$0xff] %v1327_v56  ;;  %v1209_v37 = vmul.f32 %v1672_v1, %v2239_v9  ;;  %v1168_v12 = vpop.xlane.xlu1 %1167  ;;  %v2553_v56 = vld [vmem:[#allocation10_spill] sm:$0xff] }
 0x262   : > { %v1171_v53 = vpop.xlane.xlu0 %1170  ;;  %v1212_v49 = vmul.f32 %v1674_v59, %v2245_v33  ;;  %1683 = vrcp.f32 %v1168_v12 }
 0x263   : > { %v1297_v41 = vsel %vm609_vm0, %v1209_v37, %v1953_v4  ;;  %1685 = vrcp.f32 %v1171_v53  ;;  %v2555_v53 = vld [vmem:[#allocation7_spill] sm:$0xff] }
 0x264   : > { %v1676_v34 = vpop.eup %1675  ;;  %1361 = vst [vmem:[%s1846_s4 + $0x70] sm:$0xff] %v1297_v41  ;;  %v1299_v58 = vsel %vm609_vm0, %v1212_v49, %v1977_v21  ;;  %v2556_v41 = vld [vmem:[#allocation11_spill] sm:$0xff] }
 0x265   : > { %v1678_v42 = vpop.eup %1677  ;;  %1363 = vst [vmem:[%s1846_s4 + $0x80] sm:$0xff] %v1299_v58  ;;  %v1257_v9 = vmul.f32 %v1676_v34, %v2255_v61  ;;  %v1126_v40 = vpop.xlane.xlu1 %1125  ;;  %v2557_v58 = vld [vmem:[#allocation8_spill] sm:$0xff] }
 0x266   : > { %v1129_v33 = vpop.xlane.xlu0 %1128  ;;  %v1260_v8 = vmul.f32 %v1678_v42, %v2261_v18  ;;  %1687 = vrcp.f32 %v1126_v40 }
 0x267   : > { %v1329_v4 = vsel %vm609_vm0, %v1257_v9, %v1959_v7  ;;  %1689 = vrcp.f32 %v1129_v33  ;;  %v2558_v9 = vld [vmem:[#allocation12_spill] sm:$0xff]  ;;  %v2559_v33 = vld [vmem:[#allocation9_spill] sm:$0xff] }
 0x268   : > { %v1680_v51 = vpop.eup %1679  ;;  %1393 = vst [vmem:[%s1846_s4 + $0x170] sm:$0xff] %v1329_v4  ;;  %v1331_v21 = vsel %vm609_vm0, %v1260_v8, %v1980_v23 }
 0x269   : > { %v1682_v43 = vpop.eup %1681  ;;  %1395 = vst [vmem:[%s1846_s4 + $0x180] sm:$0xff] %v1331_v21  ;;  %v1215_v61 = vmul.f32 %v1680_v51, %v2271_v50  ;;  %v1174_v3 = vpop.xlane.xlu1 %1173 }
 0x26a   : > { %v1177_v18 = vpop.xlane.xlu0 %1176  ;;  %v1218_v45 = vmul.f32 %v1682_v43, %v2277_v5  ;;  %1691 = vrcp.f32 %v1174_v3 }
 0x26b   : > { %v1301_v7 = vsel %vm609_vm0, %v1215_v61, %v1985_v32  ;;  %1693 = vrcp.f32 %v1177_v18 }
 0x26c   : > { %v1684_v63 = vpop.eup %1683  ;;  %1365 = vst [vmem:[%s1846_s4 + $0x90] sm:$0xff] %v1301_v7  ;;  %v1303_v23 = vsel %vm609_vm0, %v1218_v45, %v2009_v55 }
 0x26d   : > { %v1686_v46 = vpop.eup %1685  ;;  %1367 = vst [vmem:[%s1846_s4 + $0xa0] sm:$0xff] %v1303_v23  ;;  %v1263_v50 = vmul.f32 %v1684_v63, %v2287_v31  ;;  %v1132_v15 = vpop.xlane.xlu1 %1131 }
 0x26e   : > { %v1135_v5 = vpop.xlane.xlu0 %1134  ;;  %v1266_v2 = vmul.f32 %v1686_v46, %v2293_v0  ;;  %1695 = vrcp.f32 %v1132_v15 }
 0x26f   : > { %v1333_v32 = vsel %vm609_vm0, %v1263_v50, %v1991_v36  ;;  %1697 = vrcp.f32 %v1135_v5 }
 0x270   : > { %v1688_v10 = vpop.eup %1687  ;;  %1397 = vst [vmem:[%s1846_s4 + $0x190] sm:$0xff] %v1333_v32  ;;  %v1335_v55 = vsel %vm609_vm0, %v1266_v2, %v2012_v60 }
 0x271   : > { %v1690_v57 = vpop.eup %1689  ;;  %1399 = vst [vmem:[%s1846_s4 + $0x1a0] sm:$0xff] %v1335_v55  ;;  %v1221_v31 = vmul.f32 %v1688_v10, %v2303_v52  ;;  %v1180_v26 = vpop.xlane.xlu1 %1179 }
 0x272   : > { %v1183_v0 = vpop.xlane.xlu0 %1182  ;;  %v1224_v44 = vmul.f32 %v1690_v57, %v2309_v29  ;;  %1699 = vrcp.f32 %v1180_v26 }
 0x273   : > { %v1305_v36 = vsel %vm609_vm0, %v1221_v31, %v2017_v6  ;;  %1701 = vrcp.f32 %v1183_v0 }
 0x274   : > { %v1692_v24 = vpop.eup %1691  ;;  %1369 = vst [vmem:[%s1846_s4 + $0xb0] sm:$0xff] %v1305_v36  ;;  %v1307_v60 = vsel %vm609_vm0, %v1224_v44, %v2041_v27 }
 0x275   : > { %v1694_v30 = vpop.eup %1693  ;;  %1371 = vst [vmem:[%s1846_s4 + $0xc0] sm:$0xff] %v1307_v60  ;;  %v1269_v52 = vmul.f32 %v1692_v24, %v2318_v20  ;;  %v1138_v48 = vpop.xlane.xlu1 %1137 }
 0x276   : > { %v1272_v29 = vmul.f32 %v1694_v30, %v2322_v54  ;;  %1703 = vrcp.f32 %v1138_v48 }
 0x277   : > { %v1337_v6 = vsel %vm609_vm0, %v1269_v52, %v2549_v16 }
 0x278   : > { %v1696_v13 = vpop.eup %1695  ;;  %1401 = vst [vmem:[%s1846_s4 + $0x1b0] sm:$0xff] %v1337_v6  ;;  %v1339_v27 = vsel %vm609_vm0, %v1272_v29, %v2550_v22 }
 0x279   : > { %v1698_v28 = vpop.eup %1697  ;;  %1403 = vst [vmem:[%s1846_s4 + $0x1c0] sm:$0xff] %v1339_v27  ;;  %v1227_v20 = vmul.f32 %v1696_v13, %v2330_v14  ;;  %v1186_v19 = vpop.xlane.xlu1 %1185 }
 0x27a   : > { %v1230_v54 = vmul.f32 %v1698_v28, %v2332_v11  ;;  %1705 = vrcp.f32 %v1186_v19  ;;  %v2554_v11 = vld [vmem:[#allocation5_spill] sm:$0xff] }
 0x27b   : > { %v1309_v25 = vsel %vm609_vm0, %v1227_v20, %v2551_v62 }
 0x27c   : > { %v1700_v17 = vpop.eup %1699  ;;  %1373 = vst [vmem:[%s1846_s4 + $0xd0] sm:$0xff] %v1309_v25  ;;  %v1311_v35 = vsel %vm609_vm0, %v1230_v54, %v2552_v47 }
 0x27d   : > { %v1702_v1 = vpop.eup %1701  ;;  %1375 = vst [vmem:[%s1846_s4 + $0xe0] sm:$0xff] %v1311_v35  ;;  %v1275_v14 = vmul.f32 %v1700_v17, %v2340_v39 }
 0x27e   : > { %v1278_v59 = vmul.f32 %v1702_v1, %v2553_v56 }
 0x27f   : > { %v1341_v37 = vsel %vm609_vm0, %v1275_v14, %v2554_v11 }
 0x280   : > { %v1704_v12 = vpop.eup %1703  ;;  %1405 = vst [vmem:[%s1846_s4 + $0x1d0] sm:$0xff] %v1341_v37  ;;  %v1343_v49 = vsel %vm609_vm0, %v1278_v59, %v2555_v53 }
 0x281   : > { %1407 = vst [vmem:[%s1846_s4 + $0x1e0] sm:$0xff] %v1343_v49  ;;  %v1233_v34 = vmul.f32 %v1704_v12, %v2556_v41 }
 0x283   : > { %v1313_v42 = vsel %vm609_vm0, %v1233_v34, %v2557_v58 }
 0x284   : > { %v1706_v39 = vpop.eup %1705  ;;  %1377 = vst [vmem:[%s1846_s4 + $0xf0] sm:$0xff] %v1313_v42 }
 0x285   : > { %v1281_v40 = vmul.f32 %v1706_v39, %v2558_v9 }
 0x287   : > { %v1345_v8 = vsel %vm609_vm0, %v1281_v40, %v2559_v33 }
 0x288   : > { %1409 = vst [vmem:[%s1846_s4 + $0x1f0] sm:$0xff] %v1345_v8 }
 0x289 PF: > { %s13_s12 = sadd.s32 1, %s1713_s12  }
 0x28a   : > { %p10_p4 = scmp.ge.s32.totalorder %s13_s12, 5  }
 0x28c   :  { %12 = sbr.rel (!%p10_p4) target bundleno = 1 (0x1), region = 62 }

// kernel: rtmdet_head_forward.7
= control target key start
LH: loop header
LB: loop body
LE: loop exit
PB: predicated region body
PF: predicated region fallthrough
CT: control target
= control target key end

     0   :  { %s2197_s15 = smov 0   ;;  %s2653_s0 = inlined_call_operand.vmem [shape: bf16[768,384], index: 0, kind: input, shape index: {}]   ;;  %s2654_s1 = inlined_call_operand.vmem [shape: bf16[384,32], index: 1, kind: input, shape index: {}]   ;;  %s2655_s2 = inlined_call_operand.vmem [shape: f32[1,32], index: 2, kind: input, shape index: {}]   ;;  %s2656_s3 = inlined_call_operand.vmem [shape: f32[1,32], index: 3, kind: input, shape index: {}]   ;;  %s2657_s4 = inlined_call_operand.vmem [shape: bf16[768,32], index: 4, kind: output, shape index: {}]  }
   0x1 LB: > { %s1558_s16 = sadd.s32 4294967295, %s2170_s15   ;;  %p1562_p0 = scmp.ge.s32.totalorder %s2170_s15, 1  ;;  %s2170_s15 = sphi %s2197_s15, %s14_s15  }
   0x2   : > { %p164_p1 = scmp.lt.s32.totalorder %s2170_s15, 4 }
   0x4   : > { %p165_p2 = pnand %p1562_p0, %p164_p1 }
   0x5   : > { %v1948_v0 = vld [vmem:[%s2654_s1 + $0x40] sm:$0xff] (!%p165_p2)   ;;  %s1563_s19 = sshll.u32 (!%p165_p2), %s1558_s16, 5  ;;  %v1950_v2 = vld [vmem:[%s2654_s1 + $0x48] sm:$0xff] (!%p165_p2)   ;;  %v1952_v4 = vld [vmem:[%s2654_s1 + $0x50] sm:$0xff] (!%p165_p2)   ;;  %vm1469_vm0 = vcmask (!%p165_p2), 257024  }
   0x6   : > { %168 = sbr.rel (%p165_p2) target bundleno = 394 (0x18a), region = 36  ;;  %v1949_v1 = vld [vmem:[%s2654_s1] sm:$0xff] (!%p165_p2)   ;;  %1739 = vmatprep.subr.bf16.mxu0 (!%p165_p2), %v1948_v0  ;;  %1923 = vmatprep.subr.bf16.mxu1 (!%p165_p2), %v1948_v0  ;;  %p192_p3 = scmp.lt.s32.totalorder (!%p165_p2), %s1563_s19, 95  ;;  %v1951_v3 = vld [vmem:[%s2654_s1 + $0x8] sm:$0xff] (!%p165_p2)   ;;  %v1953_v5 = vld [vmem:[%s2654_s1 + $0x10] sm:$0xff] (!%p165_p2)  }
   0x7   : > { %1740 = vmatpush3.bf16.msra.mxu0 (!%p165_p2), %v1949_v1  ;;  %1931 = vmatpush3.bf16.msra.mxu1 (!%p165_p2), %v1949_v1  ;;  %v1954_v6 = vld [vmem:[%s2654_s1 + $0x58] sm:$0xff] (!%p165_p2)   ;;  %v1956_v8 = vld [vmem:[%s2654_s1 + $0x60] sm:$0xff] (!%p165_p2)   ;;  %v1958_v10 = vld [vmem:[%s2654_s1 + $0x68] sm:$0xff] (!%p165_p2)  }
   0x8   : > { %1741 = vmatprep.subr.bf16.mxu0 (!%p165_p2), %v1950_v2  ;;  %1924 = vmatprep.subr.bf16.mxu1 (!%p165_p2), %v1950_v2  ;;  %v1955_v7 = vld [vmem:[%s2654_s1 + $0x18] sm:$0xff] (!%p165_p2)   ;;  %v1957_v9 = vld [vmem:[%s2654_s1 + $0x20] sm:$0xff] (!%p165_p2)   ;;  %v1959_v13 = vld [vmem:[%s2654_s1 + $0x28] sm:$0xff] (!%p165_p2)  }
   0x9   : > { %v1960_v14 = vld [vmem:[%s2654_s1 + $0x70] sm:$0xff] (!%p165_p2)   ;;  %v1962_v16 = vld [vmem:[%s2654_s1 + $0x78] sm:$0xff] (!%p165_p2)   ;;  %v1970_v18 = vld [vmem:[%s2654_s1 + $0x80] sm:$0xff] (!%p165_p2)  }
   0xa   : > { %v1961_v15 = vld [vmem:[%s2654_s1 + $0x30] sm:$0xff] (!%p165_p2)   ;;  %v1963_v17 = vld [vmem:[%s2654_s1 + $0x38] sm:$0xff] (!%p165_p2)   ;;  %v1971_v22 = vld [vmem:[%s2654_s1 + $0x88] sm:$0xff] (!%p165_p2)  }
   0xb   : > { %1742 = vmatpush3.bf16.msra.mxu0 (!%p165_p2), %v1951_v3  ;;  %1932 = vmatpush3.bf16.msra.mxu1 (!%p165_p2), %v1951_v3  ;;  %v1978_v25 = vld [vmem:[%s2654_s1 + $0x90] sm:$0xff] (!%p165_p2)   ;;  %v1979_v27 = vld [vmem:[%s2654_s1 + $0x98] sm:$0xff] (!%p165_p2)   ;;  %v1986_v30 = vld [vmem:[%s2654_s1 + $0xa0] sm:$0xff] (!%p165_p2)  }
   0xc   : > { %1743 = vmatprep.subr.bf16.mxu0 (!%p165_p2), %v1952_v4  ;;  %1925 = vmatprep.subr.bf16.mxu1 (!%p165_p2), %v1952_v4  ;;  %v1987_v33 = vld [vmem:[%s2654_s1 + $0xa8] sm:$0xff] (!%p165_p2)   ;;  %v1994_v36 = vld [vmem:[%s2654_s1 + $0xb0] sm:$0xff] (!%p165_p2)   ;;  %v1995_v40 = vld [vmem:[%s2654_s1 + $0xb8] sm:$0xff] (!%p165_p2)  }
   0xd   : > { %s2659_s19 = smov (!%p192_p3, %s1563_s19), 95 }
   0xe   : > { %s1939_s6 = smul.u32 12, %s2659_s19  ;;  %s1566_s26 = sshll.u32 %s2659_s19, 2 }
   0xf   : > { %1744 = vmatpush3.bf16.msra.mxu0 %v1953_v5  ;;  %1933 = vmatpush3.bf16.msra.mxu1 %v1953_v5  ;;  %s2440_s28 = scalar_lea.vmem %s2657_s4, %s1566_s26 }
  0x10   : > { %1745 = vmatprep.subr.bf16.mxu0 %v1954_v6  ;;  %1926 = vmatprep.subr.bf16.mxu1 %v1954_v6  ;;  %s2238_s13 = scalar_lea.vmem %s2653_s0, %s1939_s6 }
  0x11   : > { %v1966_v11 = vld [vmem:[%s2238_s13 + $0x4] ss:$12 sps:$4 sm:$0xff]   ;;  %v1964_v19 = vld [vmem:[%s2238_s13] ss:$12 sps:$4 sm:$0xff]   ;;  %v1972_v21 = vld [vmem:[%s2238_s13 + $0x1c] ss:$12 sps:$4 sm:$0xff]  }
  0x12   : > { %v1969_v12 = vld [vmem:[%s2238_s13 + $0x124] ss:$12 sps:$4 sm:$0xff]   ;;  %749 = vmatprep.mubr.bf16.mxu0 %v1966_v11  ;;  %v1967_v20 = vld [vmem:[%s2238_s13 + $0x120] ss:$12 sps:$4 sm:$0xff]   ;;  %v1974_v23 = vld [vmem:[%s2238_s13 + $0x13c] ss:$12 sps:$4 sm:$0xff]  }
  0x13   : > { %1746 = vmatpush3.bf16.msra.mxu0 %v1955_v7  ;;  %1934 = vmatpush3.bf16.msra.mxu1 %v1955_v7  ;;  %v1976_v24 = vld [vmem:[%s2238_s13 + $0x18] ss:$12 sps:$4 sm:$0xff]   ;;  %v1980_v28 = vld [vmem:[%s2238_s13 + $0x34] ss:$12 sps:$4 sm:$0xff]   ;;  %v1984_v31 = vld [vmem:[%s2238_s13 + $0x30] ss:$12 sps:$4 sm:$0xff]  }
  0x14   : > { %1747 = vmatprep.subr.bf16.mxu0 %v1956_v8  ;;  %1927 = vmatprep.subr.bf16.mxu1 %v1956_v8  ;;  %v1977_v26 = vld [vmem:[%s2238_s13 + $0x138] ss:$12 sps:$4 sm:$0xff]   ;;  %v1982_v29 = vld [vmem:[%s2238_s13 + $0x154] ss:$12 sps:$4 sm:$0xff]   ;;  %v1985_v32 = vld [vmem:[%s2238_s13 + $0x150] ss:$12 sps:$4 sm:$0xff]  }
  0x15   : > { %845 = vmatprep.mubr.bf16.mxu1 %v1969_v12  ;;  %v1988_v34 = vld [vmem:[%s2238_s13 + $0x4c] ss:$12 sps:$4 sm:$0xff]   ;;  %v1992_v37 = vld [vmem:[%s2238_s13 + $0x48] ss:$12 sps:$4 sm:$0xff]   ;;  %v1996_v39 = vld [vmem:[%s2238_s13 + $0x64] ss:$12 sps:$4 sm:$0xff]  }
  0x16   : > { %v1990_v35 = vld [vmem:[%s2238_s13 + $0x16c] ss:$12 sps:$4 sm:$0xff]   ;;  %v1993_v38 = vld [vmem:[%s2238_s13 + $0x168] ss:$12 sps:$4 sm:$0xff]   ;;  %v2005_v47 = vld [vmem:[%s2238_s13 + $0x50] ss:$12 sps:$4 sm:$0xff]  }
  0x17   : > { %1748 = vmatpush3.bf16.msra.mxu0 %v1957_v9  ;;  %1935 = vmatpush3.bf16.msra.mxu1 %v1957_v9  ;;  %v1998_v41 = vld [vmem:[%s2238_s13 + $0x8] ss:$12 sps:$4 sm:$0xff]   ;;  %v1999_v42 = vld [vmem:[%s2238_s13 + $0x60] ss:$12 sps:$4 sm:$0xff]   ;;  %v2003_v45 = vld [vmem:[%s2238_s13 + $0x38] ss:$12 sps:$4 sm:$0xff]  }
  0x18   : > { %1749 = vmatprep.subr.bf16.mxu0 %v1958_v10  ;;  %1928 = vmatprep.subr.bf16.mxu1 %v1958_v10  ;;  %v2000_v43 = vld [vmem:[%s2238_s13 + $0x20] ss:$12 sps:$4 sm:$0xff]   ;;  %v2001_v44 = vld [vmem:[%s2238_s13 + $0x7c] ss:$12 sps:$4 sm:$0xff]   ;;  %v2004_v46 = vld [vmem:[%s2238_s13 + $0x78] ss:$12 sps:$4 sm:$0xff]  }
  0x19   : > { %v2006_v48 = vld [vmem:[%s2238_s13 + $0x94] ss:$12 sps:$4 sm:$0xff]   ;;  %v2009_v50 = vld [vmem:[%s2238_s13 + $0x90] ss:$12 sps:$4 sm:$0xff]   ;;  %v2011_v52 = vld [vmem:[%s2238_s13 + $0xac] ss:$12 sps:$4 sm:$0xff]  }
  0x1a   : > { %v2008_v49 = vld [vmem:[%s2238_s13 + $0x68] ss:$12 sps:$4 sm:$0xff]   ;;  %v2010_v51 = vld [vmem:[%s2238_s13 + $0x80] ss:$12 sps:$4 sm:$0xff]   ;;  %v2013_v53 = vld [vmem:[%s2238_s13 + $0x98] ss:$12 sps:$4 sm:$0xff]  }
  0x1b   : > { %1750 = vmatpush3.bf16.msra.mxu0 %v1959_v13  ;;  %1936 = vmatpush3.bf16.msra.mxu1 %v1959_v13  ;;  %v2014_v54 = vld [vmem:[%s2238_s13 + $0xa8] ss:$12 sps:$4 sm:$0xff]   ;;  %v2015_v55 = vld [vmem:[%s2238_s13 + $0xb0] ss:$12 sps:$4 sm:$0xff]   ;;  %v2019_v58 = vld [vmem:[%s2238_s13 + $0xc0] ss:$12 sps:$4 sm:$0xff]  }
  0x1c   : > { %1751 = vmatprep.subr.bf16.mxu0 %v1960_v14  ;;  %1929 = vmatprep.subr.bf16.mxu1 %v1960_v14  ;;  %v2016_v56 = vld [vmem:[%s2238_s13 + $0xc4] ss:$12 sps:$4 sm:$0xff]   ;;  %v2018_v57 = vld [vmem:[%s2238_s13 + $0xc8] ss:$12 sps:$4 sm:$0xff]   ;;  %v2020_v59 = vld [vmem:[%s2238_s13 + $0xe0] ss:$12 sps:$4 sm:$0xff]  }
  0x1d   : > { %v2021_v60 = vld [vmem:[%s2238_s13 + $0xdc] ss:$12 sps:$4 sm:$0xff]   ;;  %v2023_v61 = vld [vmem:[%s2238_s13 + $0xf8] ss:$12 sps:$4 sm:$0xff]   ;;  %v2026_v0 = vld [vmem:[%s2238_s13 + $0xf4] ss:$12 sps:$4 sm:$0xff]  }
  0x1e   : > { %v2024_v62 = vld [vmem:[%s2238_s13 + $0xd8] ss:$12 sps:$4 sm:$0xff]   ;;  %v2025_v63 = vld [vmem:[%s2238_s13 + $0x110] ss:$12 sps:$4 sm:$0xff]   ;;  %v2028_v1 = vld [vmem:[%s2238_s13 + $0x128] ss:$12 sps:$4 sm:$0xff]  }
  0x1f   : > { %1752 = vmatpush3.bf16.msra.mxu0 %v1961_v15  ;;  %1937 = vmatpush3.bf16.msra.mxu1 %v1961_v15  ;;  %v2029_v2 = vld [vmem:[%s2238_s13 + $0xf0] ss:$12 sps:$4 sm:$0xff]   ;;  %v2030_v3 = vld [vmem:[%s2238_s13 + $0x140] ss:$12 sps:$4 sm:$0xff]   ;;  %v2033_v5 = vld [vmem:[%s2238_s13 + $0x158] ss:$12 sps:$4 sm:$0xff]  }
  0x20   : > { %1753 = vmatprep.subr.bf16.mxu0 %v1962_v16  ;;  %1930 = vmatprep.subr.bf16.mxu1 %v1962_v16  ;;  %v2031_v4 = vld [vmem:[%s2238_s13 + $0x10c] ss:$12 sps:$4 sm:$0xff]   ;;  %v2034_v6 = vld [vmem:[%s2238_s13 + $0x108] ss:$12 sps:$4 sm:$0xff]   ;;  %v2035_v7 = vld [vmem:[%s2238_s13 + $0x170] ss:$12 sps:$4 sm:$0xff]  }
  0x23   : > { %1754 = vmatpush3.bf16.msra.mxu0 %v1963_v17  ;;  %1938 = vmatpush3.bf16.msra.mxu1 %v1963_v17 }
  0x24   : > { %1875 = vmatprep.subr.bf16.mxu1 %v1970_v18 }
  0x26   : > { %750 = vmatmul.mubr.bf16.vlgmr.msra.gmra.mrb[0].mxu0 %v1964_v19  ;;  %846 = vmatmul.mubr.bf16.vlgmr.msra.gmra.mrb[0].mxu1 %v1967_v20 }
  0x27   : > { %1876 = vmatpush3.bf16.msra.mxu1 %v1970_v18  ;;  %757 = vmatprep.mubr.bf16.mxu0 %v1972_v21 }
  0x28   : > { %1877 = vmatprep.subr.bf16.mxu1 %v1971_v22  ;;  %853 = vmatprep.mubr.bf16.mxu1 %v1974_v23 }
  0x2b   : > { %1878 = vmatpush3.bf16.msra.mxu1 %v1971_v22 }
  0x2c   : > { %1879 = vmatprep.subr.bf16.mxu1 %v1978_v25 }
  0x2e   : > { %758 = vmatmul.mubr.bf16.gmra.mrb[4].mxu0 %v1976_v24  ;;  %854 = vmatmul.mubr.bf16.gmra.mrb[4].mxu1 %v1977_v26 }
  0x2f   : > { %1880 = vmatpush3.bf16.msra.mxu1 %v1978_v25  ;;  %765 = vmatprep.mubr.bf16.mxu0 %v1980_v28 }
  0x30   : > { %1881 = vmatprep.subr.bf16.mxu1 %v1979_v27  ;;  %861 = vmatprep.mubr.bf16.mxu1 %v1982_v29 }
  0x33   : > { %1882 = vmatpush3.bf16.msra.mxu1 %v1979_v27 }
  0x34   : > { %1883 = vmatprep.subr.bf16.mxu1 %v1986_v30 }
  0x36   : > { %766 = vmatmul.mubr.bf16.gmra.mrb[8].mxu0 %v1984_v31  ;;  %862 = vmatmul.mubr.bf16.gmra.mrb[8].mxu1 %v1985_v32 }
  0x37   : > { %1884 = vmatpush3.bf16.msra.mxu1 %v1986_v30  ;;  %773 = vmatprep.mubr.bf16.mxu0 %v1988_v34 }
  0x38   : > { %1885 = vmatprep.subr.bf16.mxu1 %v1987_v33  ;;  %869 = vmatprep.mubr.bf16.mxu1 %v1990_v35 }
  0x3b   : > { %1886 = vmatpush3.bf16.msra.mxu1 %v1987_v33 }
  0x3c   : > { %1887 = vmatprep.subr.bf16.mxu1 %v1994_v36 }
  0x3e   : > { %774 = vmatmul.mubr.bf16.gmra.mrb[12].mxu0 %v1992_v37  ;;  %870 = vmatmul.mubr.bf16.gmra.mrb[12].mxu1 %v1993_v38 }
  0x3f   : > { %1888 = vmatpush3.bf16.msra.mxu1 %v1994_v36  ;;  %781 = vmatprep.mubr.bf16.mxu0 %v1996_v39 }
  0x40   : > { %1889 = vmatprep.subr.bf16.mxu1 %v1995_v40  ;;  %1891 = vmatprep.mubr.bf16.mxu1 %v1998_v41 }
  0x43   : > { %1890 = vmatpush3.bf16.msra.mxu1 %v1995_v40 }
  0x46   : > { %782 = vmatmul.mubr.bf16.gmra.mrb[16].mxu0 %v1999_v42  ;;  %1892 = vmatmul.mubr.bf16.vlgmr.msra.gmra.mrb[16].mxu1 %v2000_v43 }
  0x47   : > { %789 = vmatprep.mubr.bf16.mxu0 %v2001_v44  ;;  %1895 = vmatprep.mubr.bf16.mxu1 %v2003_v45 }
  0x4e   : > { %790 = vmatmul.mubr.bf16.gmra.mrb[20].mxu0 %v2004_v46  ;;  %1896 = vmatmul.mubr.bf16.gmra.mrb[20].mxu1 %v2005_v47 }
  0x4f   : > { %797 = vmatprep.mubr.bf16.mxu0 %v2006_v48  ;;  %1899 = vmatprep.mubr.bf16.mxu1 %v2008_v49 }
  0x56   : > { %798 = vmatmul.mubr.bf16.gmra.mrb[24].mxu0 %v2009_v50  ;;  %1900 = vmatmul.mubr.bf16.gmra.mrb[24].mxu1 %v2010_v51 }
  0x57   : > { %805 = vmatprep.mubr.bf16.mxu0 %v2011_v52  ;;  %1903 = vmatprep.mubr.bf16.mxu1 %v2013_v53 }
  0x5e   : > { %806 = vmatmul.mubr.bf16.gmra.mrb[28].mxu0 %v2014_v54  ;;  %1904 = vmatmul.mubr.bf16.gmra.mrb[28].mxu1 %v2015_v55 }
  0x5f   : > { %813 = vmatprep.mubr.bf16.mxu0 %v2016_v56  ;;  %1907 = vmatprep.mubr.bf16.mxu1 %v2018_v57 }
  0x66   : > { %814 = vmatmul.mubr.bf16.gmra.mrb[32].mxu0 %v2019_v58  ;;  %1908 = vmatmul.mubr.bf16.gmra.mrb[32].mxu1 %v2020_v59  ;;  %v2352_v58 = vld [vmem:[%s2655_s2] ss:$0 sm:$0xff] }
  0x67   : > { %821 = vmatprep.mubr.bf16.mxu0 %v2021_v60  ;;  %1911 = vmatprep.mubr.bf16.mxu1 %v2023_v61 }
  0x6e   : > { %822 = vmatmul.mubr.bf16.gmra.mrb[36].mxu0 %v2024_v62  ;;  %1912 = vmatmul.mubr.bf16.gmra.mrb[36].mxu1 %v2025_v63  ;;  %v2357_v62 = vld [vmem:[%s2656_s3] ss:$0 sm:$0xff] }
  0x6f   : > { %829 = vmatprep.mubr.bf16.mxu0 %v2026_v0  ;;  %1915 = vmatprep.mubr.bf16.mxu1 %v2028_v1 }
  0x76   : > { %830 = vmatmul.mubr.bf16.gmra.mrb[40].mxu0 %v2029_v2  ;;  %1916 = vmatmul.mubr.bf16.gmra.mrb[40].mxu1 %v2030_v3 }
  0x77   : > { %837 = vmatprep.mubr.bf16.mxu0 %v2031_v4  ;;  %1919 = vmatprep.mubr.bf16.mxu1 %v2033_v5 }
  0x7e   : > { %838 = vmatmul.mubr.bf16.gmra.mrb[44].mxu0 %v2034_v6  ;;  %1920 = vmatmul.mubr.bf16.gmra.mrb[44].mxu1 %v2035_v7 }
  0xf9   : > { %v1755_v8 = vpop.f32.mrb[0].mxu0  ;;  %v1827_v9 = vpop.f32.mrb[0].mxu1 }
  0xfa   : > { %v1756_v10 = vpop.f32.mrb[1].mxu0  ;;  %v1828_v11 = vpop.f32.mrb[1].mxu1 }
  0xfb   : > { %v1757_v12 = vadd.f32 %v1756_v10, %v1755_v8  ;;  %v2333_v13 = vadd.f32 %v1828_v11, %v1827_v9  ;;  %v1758_v14 = vpop.f32.mrb[2].mxu0  ;;  %v1830_v15 = vpop.f32.mrb[2].mxu1 }
  0xfc   : > { %v1759_v16 = vpop.f32.mrb[3].mxu0  ;;  %v1831_v17 = vpop.f32.mrb[3].mxu1 }
  0xfd   : > { %v1760_v18 = vadd.f32 %v1759_v16, %v1758_v14  ;;  %v2335_v19 = vadd.f32 %v1831_v17, %v1830_v15 }
 0x101   : > { %v1761_v20 = vpop.f32.mrb[4].mxu0  ;;  %v1833_v21 = vpop.f32.mrb[4].mxu1 }
 0x102   : > { %v1762_v22 = vpop.f32.mrb[5].mxu0  ;;  %v1834_v23 = vpop.f32.mrb[5].mxu1 }
 0x103   : > { %v1763_v24 = vadd.f32 %v1762_v22, %v1761_v20  ;;  %v2337_v25 = vadd.f32 %v1834_v23, %v1833_v21  ;;  %v1764_v26 = vpop.f32.mrb[6].mxu0  ;;  %v1836_v27 = vpop.f32.mrb[6].mxu1 }
 0x104   : > { %v1765_v28 = vpop.f32.mrb[7].mxu0  ;;  %v1837_v29 = vpop.f32.mrb[7].mxu1 }
 0x105   : > { %v1766_v30 = vadd.f32 %v1765_v28, %v1764_v26  ;;  %v2339_v31 = vadd.f32 %v1837_v29, %v1836_v27 }
 0x109   : > { %v1767_v32 = vpop.f32.mrb[8].mxu0  ;;  %v1839_v33 = vpop.f32.mrb[8].mxu1 }
 0x10a   : > { %v1768_v34 = vpop.f32.mrb[9].mxu0  ;;  %v1840_v35 = vpop.f32.mrb[9].mxu1 }
 0x10b   : > { %v1769_v36 = vadd.f32 %v1768_v34, %v1767_v32  ;;  %v2341_v37 = vadd.f32 %v1840_v35, %v1839_v33  ;;  %v1770_v38 = vpop.f32.mrb[10].mxu0  ;;  %v1842_v39 = vpop.f32.mrb[10].mxu1 }
 0x10c   : > { %v1771_v40 = vpop.f32.mrb[11].mxu0  ;;  %v1843_v41 = vpop.f32.mrb[11].mxu1 }
 0x10d   : > { %v1772_v42 = vadd.f32 %v1771_v40, %v1770_v38  ;;  %v2343_v43 = vadd.f32 %v1843_v41, %v1842_v39 }
 0x111   : > { %v1773_v44 = vpop.f32.mrb[12].mxu0  ;;  %v1845_v45 = vpop.f32.mrb[12].mxu1 }
 0x112   : > { %v1774_v46 = vpop.f32.mrb[13].mxu0  ;;  %v1846_v47 = vpop.f32.mrb[13].mxu1 }
 0x113   : > { %v1775_v48 = vadd.f32 %v1774_v46, %v1773_v44  ;;  %v2345_v49 = vadd.f32 %v1846_v47, %v1845_v45  ;;  %v1776_v50 = vpop.f32.mrb[14].mxu0  ;;  %v1848_v51 = vpop.f32.mrb[14].mxu1 }
 0x114   : > { %v1777_v52 = vpop.f32.mrb[15].mxu0  ;;  %v1849_v53 = vpop.f32.mrb[15].mxu1 }
 0x115   : > { %v1778_v54 = vadd.f32 %v1777_v52, %v1776_v50  ;;  %v2347_v55 = vadd.f32 %v1849_v53, %v1848_v51 }
 0x119   : > { %v1779_v56 = vpop.f32.mrb[16].mxu0  ;;  %v1893_v57 = vpop.f32.mrb[16].mxu1 }
 0x11a   : > { %v921_v59 = vadd.f32 %v1893_v57, %v1763_v24  ;;  %v1780_v60 = vpop.f32.mrb[17].mxu0  ;;  %v912_v61 = vpop.f32.mrb[17].mxu1 }
 0x11b   : > { %v1781_v63 = vadd.f32 %v1780_v60, %v1779_v56  ;;  %v913_v0 = vadd.f32 %v1757_v12, %v912_v61  ;;  %v1782_v1 = vpop.f32.mrb[18].mxu0  ;;  %v1894_v2 = vpop.f32.mrb[18].mxu1 }
 0x11c   : > { %v1048_v3 = vmul.f32 %v2352_v58, %v921_v59  ;;  %v924_v4 = vadd.f32 %v1894_v2, %v1766_v30  ;;  %v1783_v5 = vpop.f32.mrb[19].mxu0  ;;  %v915_v6 = vpop.f32.mrb[19].mxu1 }
 0x11d   : > { %v1046_v7 = vmul.f32 %v2352_v58, %v913_v0  ;;  %v2361_v8 = vadd.f32 %v1783_v5, %v1782_v1  ;;  %v916_v9 = vadd.f32 %v1760_v18, %v915_v6 }
 0x11e   : > { %v2364_v10 = vadd.f32 %v2357_v62, %v1048_v3  ;;  %v1049_v11 = vmul.f32 %v2352_v58, %v924_v4 }
 0x11f   : > { %v2368_v14 = vadd.f32 %v2357_v62, %v1046_v7  ;;  %v1047_v12 = vmul.f32 %v2352_v58, %v916_v9 }
 0x120   : > { %v1643_v15 = vmul.f32 -1.442695, %v2364_v10  ;;  %v2373_v16 = vadd.f32 %v2357_v62, %v1049_v11 }
 0x121   : > { %v1641_v17 = vmul.f32 -1.442695, %v2368_v14  ;;  %v2377_v20 = vadd.f32 %v2357_v62, %v1047_v12  ;;  %v1785_v18 = vpop.f32.mrb[20].mxu0  ;;  %v1897_v21 = vpop.f32.mrb[20].mxu1 }
 0x122   : > { %2036 = vpow2.f32 %v1643_v15  ;;  %v1644_v22 = vmul.f32 -1.442695, %v2373_v16  ;;  %v937_v23 = vadd.f32 %v1897_v21, %v1775_v48  ;;  %v1786_v24 = vpop.f32.mrb[21].mxu0  ;;  %v928_v26 = vpop.f32.mrb[21].mxu1 }
 0x123   : > { %2038 = vpow2.f32 %v1641_v17  ;;  %v1642_v27 = vmul.f32 -1.442695, %v2377_v20  ;;  %v1787_v28 = vadd.f32 %v1786_v24, %v1785_v18  ;;  %v929_v29 = vadd.f32 %v1769_v36, %v928_v26  ;;  %v1788_v30 = vpop.f32.mrb[22].mxu0  ;;  %v1898_v32 = vpop.f32.mrb[22].mxu1 }
 0x124   : > { %2040 = vpow2.f32 %v1644_v22  ;;  %v1052_v33 = vmul.f32 %v2352_v58, %v937_v23  ;;  %v940_v34 = vadd.f32 %v1898_v32, %v1778_v54  ;;  %v1789_v35 = vpop.f32.mrb[23].mxu0  ;;  %v931_v38 = vpop.f32.mrb[23].mxu1 }
 0x125   : > { %2042 = vpow2.f32 %v1642_v27  ;;  %v1050_v39 = vmul.f32 %v2352_v58, %v929_v29  ;;  %v1790_v40 = vadd.f32 %v1789_v35, %v1788_v30  ;;  %v932_v41 = vadd.f32 %v1772_v42, %v931_v38 }
 0x126   : > { %v2384_v44 = vadd.f32 %v2357_v62, %v1052_v33  ;;  %v1053_v45 = vmul.f32 %v2352_v58, %v940_v34 }
 0x127   : > { %v2388_v36 = vadd.f32 %v2357_v62, %v1050_v39  ;;  %v1051_v46 = vmul.f32 %v2352_v58, %v932_v41 }
 0x128   : > { %v1647_v47 = vmul.f32 -1.442695, %v2384_v44  ;;  %v2393_v48 = vadd.f32 %v2357_v62, %v1053_v45 }
 0x129   : > { %v1645_v50 = vmul.f32 -1.442695, %v2388_v36  ;;  %v2397_v51 = vadd.f32 %v2357_v62, %v1051_v46  ;;  %v1791_v42 = vpop.f32.mrb[24].mxu0  ;;  %v1901_v52 = vpop.f32.mrb[24].mxu1 }
 0x12a   : > { %2044 = vpow2.f32 %v1647_v47  ;;  %v1648_v53 = vmul.f32 -1.442695, %v2393_v48  ;;  %v953_v54 = vadd.f32 %v1901_v52, %v1787_v28  ;;  %v1792_v56 = vpop.f32.mrb[25].mxu0  ;;  %v944_v57 = vpop.f32.mrb[25].mxu1 }
 0x12b   : > { %2046 = vpow2.f32 %v1645_v50  ;;  %v1646_v59 = vmul.f32 -1.442695, %v2397_v51  ;;  %v1793_v60 = vadd.f32 %v1792_v56, %v1791_v42  ;;  %v945_v61 = vadd.f32 %v1781_v63, %v944_v57  ;;  %v1794_v0 = vpop.f32.mrb[26].mxu0  ;;  %v1902_v1 = vpop.f32.mrb[26].mxu1 }
 0x12c   : > { %v2037_v2 = vpop.eup %2036  ;;  %2048 = vpow2.f32 %v1648_v53  ;;  %v1056_v3 = vmul.f32 %v2352_v58, %v953_v54  ;;  %v956_v4 = vadd.f32 %v1902_v1, %v1790_v40  ;;  %v1795_v5 = vpop.f32.mrb[27].mxu0 }
 0x12d   : > { %v947_v6 = vpop.f32.mrb[27].mxu1  ;;  %v2039_v7 = vpop.eup %2038  ;;  %v1215_v9 = vadd.f32 1.0, %v2037_v2  ;;  %2050 = vpow2.f32 %v1646_v59  ;;  %v1054_v11 = vmul.f32 %v2352_v58, %v945_v61  ;;  %v1796_v12 = vadd.f32 %v1795_v5, %v1794_v0 }
 0x12e   : > { %v2041_v15 = vpop.eup %2040  ;;  %v1213_v17 = vadd.f32 1.0, %v2039_v7  ;;  %v2404_v18 = vadd.f32 %v2357_v62, %v1056_v3  ;;  %v1057_v63 = vmul.f32 %v2352_v58, %v956_v4  ;;  %v948_v21 = vadd.f32 %v2361_v8, %v947_v6 }
 0x12f   : > { %v2043_v22 = vpop.eup %2042  ;;  %2052 = vrcp.f32 %v1215_v9  ;;  %v1216_v23 = vadd.f32 1.0, %v2041_v15  ;;  %v2409_v24 = vadd.f32 %v2357_v62, %v1054_v11 }
 0x130   : > { %2054 = vrcp.f32 %v1213_v17  ;;  %v1214_v26 = vadd.f32 1.0, %v2043_v22  ;;  %v1651_v27 = vmul.f32 -1.442695, %v2404_v18  ;;  %v2413_v28 = vadd.f32 %v2357_v62, %v1057_v63 }
 0x131   : > { %2056 = vrcp.f32 %v1216_v23  ;;  %v1649_v29 = vmul.f32 -1.442695, %v2409_v24  ;;  %v1055_v30 = vmul.f32 %v2352_v58, %v948_v21  ;;  %v1797_v32 = vpop.f32.mrb[28].mxu0  ;;  %v1905_v8 = vpop.f32.mrb[28].mxu1 }
 0x132   : > { %2058 = vrcp.f32 %v1214_v26  ;;  %v1652_v33 = vmul.f32 -1.442695, %v2413_v28  ;;  %v1798_v34 = vpop.f32.mrb[29].mxu0  ;;  %v960_v35 = vpop.f32.mrb[29].mxu1 }
 0x133   : > { %2060 = vpow2.f32 %v1651_v27  ;;  %v2419_v38 = vadd.f32 %v2357_v62, %v1055_v30  ;;  %v1799_v39 = vadd.f32 %v1798_v34, %v1797_v32  ;;  %v961_v40 = vadd.f32 %v1793_v60, %v960_v35  ;;  %v1800_v41 = vpop.f32.mrb[30].mxu0  ;;  %v1906_v45 = vpop.f32.mrb[30].mxu1 }
 0x134   : > { %v2045_v46 = vpop.eup %2044  ;;  %2062 = vpow2.f32 %v1649_v29  ;;  %v1801_v47 = vpop.f32.mrb[31].mxu0 }
 0x135   : > { %v963_v50 = vpop.f32.mrb[31].mxu1  ;;  %v2047_v42 = vpop.eup %2046  ;;  %v1219_v52 = vadd.f32 1.0, %v2045_v46  ;;  %2064 = vpow2.f32 %v1652_v33  ;;  %v969_v53 = vadd.f32 %v1905_v8, %v1799_v39  ;;  %v1058_v57 = vmul.f32 %v2352_v58, %v961_v40 }
 0x136   : > { %v2049_v54 = vpop.eup %2048  ;;  %v1217_v56 = vadd.f32 1.0, %v2047_v42  ;;  %v1802_v59 = vadd.f32 %v1801_v47, %v1800_v41  ;;  %v964_v61 = vadd.f32 %v1796_v12, %v963_v50  ;;  %v1650_v1 = vmul.f32 -1.442695, %v2419_v38 }
 0x137   : > { %v2051_v0 = vpop.eup %2050  ;;  %2066 = vrcp.f32 %v1219_v52  ;;  %v1220_v60 = vadd.f32 1.0, %v2049_v54  ;;  %v1060_v2 = vmul.f32 %v2352_v58, %v969_v53  ;;  %v2426_v4 = vadd.f32 %v2357_v62, %v1058_v57 }
 0x138   : > { %2068 = vrcp.f32 %v1217_v56  ;;  %v1218_v3 = vadd.f32 1.0, %v2051_v0  ;;  %v972_v5 = vadd.f32 %v1906_v45, %v1802_v59  ;;  %v1059_v9 = vmul.f32 %v2352_v58, %v964_v61 }
 0x139   : > { %v2053_v6 = vpop.eup %2052  ;;  %2070 = vrcp.f32 %v1220_v60  ;;  %v2429_v7 = vadd.f32 %v2357_v62, %v1060_v2  ;;  %v1803_v11 = vpop.f32.mrb[32].mxu0  ;;  %v1653_v63 = vmul.f32 -1.442695, %v2426_v4 }
 0x13a   : > { %v2432_v12 = vpop.f32.mrb[32].mxu1  ;;  %v2055_v15 = vpop.eup %2054  ;;  %v1311_v17 = vmul.f32 %v2053_v6, %v2364_v10  ;;  %2072 = vrcp.f32 %v1218_v3  ;;  %v1061_v21 = vmul.f32 %v2352_v58, %v972_v5  ;;  %v2445_v10 = vadd.f32 %v2357_v62, %v1059_v9 }
 0x13b   : > { %v1804_v22 = vpop.f32.mrb[33].mxu0  ;;  %v976_v23 = vpop.f32.mrb[33].mxu1  ;;  %v1309_v27 = vmul.f32 %v2055_v15, %v2368_v14  ;;  %2074 = vpow2.f32 %v1650_v1  ;;  %v1655_v29 = vmul.f32 -1.442695, %v2429_v7 }
 0x13c   : > { %v2057_v26 = vpop.eup %2056  ;;  %v1806_v30 = vpop.f32.mrb[34].mxu0  ;;  %v1709_v33 = vpack.c.bf16 %v1311_v17, %v1311_v17  ;;  %2076 = vpow2.f32 %v1653_v63  ;;  %v2451_v35 = vadd.f32 %v2357_v62, %v1061_v21  ;;  %v1654_v46 = vmul.f32 -1.442695, %v2445_v10 }
 0x13d   : > { %v2447_v32 = vpop.f32.mrb[34].mxu1  ;;  %v2059_v8 = vpop.eup %2058  ;;  %v1312_v34 = vmul.f32 %v2057_v26, %v2373_v16  ;;  %v1707_v41 = vpack.c.bf16 %v1309_v27, %v1309_v27  ;;  %2078 = vpow2.f32 %v1655_v29  ;;  %v1805_v52 = vadd.f32 %v1804_v22, %v1803_v11 }
 0x13e   : > { %v1807_v14 = vpop.f32.mrb[35].mxu0  ;;  %v979_v39 = vpop.f32.mrb[35].mxu1  ;;  %v1310_v45 = vmul.f32 %v2059_v8, %v2377_v20  ;;  %1472 = vst.msk [vmem:[%s2440_s28 + $0x8] sm:$0xf] %vm1469_vm0, %v1709_v33  ;;  %v1656_v42 = vmul.f32 -1.442695, %v2451_v35  ;;  %2080 = vpow2.f32 %v1654_v46 }
 0x13f   : > { %v2061_v40 = vpop.eup %2060  ;;  %v1710_v16 = vpack.c.bf16 %v1312_v34, %v1312_v34  ;;  %1470 = vst.msk [vmem:[%s2440_s28] sm:$0xf] %vm1469_vm0, %v1707_v41  ;;  %v1808_v57 = vadd.f32 %v1807_v14, %v1806_v30  ;;  %v977_v59 = vadd.f32 %v1805_v52, %v976_v23 }
 0x140   : > { %v2063_v47 = vpop.eup %2062  ;;  %v1223_v50 = vadd.f32 1.0, %v2061_v40  ;;  %v1708_v54 = vpack.c.bf16 %v1310_v45, %v1310_v45 }
 0x141   : > { %v2065_v53 = vpop.eup %2064  ;;  %v1221_v56 = vadd.f32 1.0, %v2063_v47  ;;  %1473 = vst.msk [vmem:[%s2440_s28 + $0xc] sm:$0xf] %vm1469_vm0, %v1710_v16  ;;  %v980_v0 = vadd.f32 %v1808_v57, %v979_v39  ;;  %v1809_v60 = vpop.f32.mrb[36].mxu0  ;;  %v1062_v5 = vmul.f32 %v2352_v58, %v977_v59 }
 0x142   : > { %2082 = vrcp.f32 %v1223_v50  ;;  %v1224_v20 = vadd.f32 1.0, %v2065_v53  ;;  %v2067_v61 = vpop.eup %2066  ;;  %1471 = vst.msk [vmem:[%s2440_s28 + $0x4] sm:$0xf] %vm1469_vm0, %v1708_v54  ;;  %v2464_v1 = vpop.f32.mrb[36].mxu1 }
 0x143   : > { %2084 = vrcp.f32 %v1221_v56  ;;  %v2069_v2 = vpop.eup %2068  ;;  %v1315_v3 = vmul.f32 %v2067_v61, %v2384_v44  ;;  %v1810_v6 = vpop.f32.mrb[37].mxu0  ;;  %v1063_v17 = vmul.f32 %v2352_v58, %v980_v0  ;;  %v2476_v27 = vadd.f32 %v2357_v62, %v1062_v5 }
 0x144   : > { %2086 = vrcp.f32 %v1224_v20  ;;  %v2468_v9 = vpop.f32.mrb[37].mxu1  ;;  %v2071_v11 = vpop.eup %2070  ;;  %v1313_v15 = vmul.f32 %v2069_v2, %v2388_v36  ;;  %v1811_v63 = vadd.f32 %v1810_v6, %v1809_v60 }
 0x145   : > { %2088 = vpow2.f32 %v1656_v42  ;;  %v1812_v21 = vpop.f32.mrb[38].mxu0  ;;  %v2472_v22 = vpop.f32.mrb[38].mxu1  ;;  %v1713_v26 = vpack.c.bf16 %v1315_v3, %v1315_v3  ;;  %v1316_v44 = vmul.f32 %v2071_v11, %v2393_v48  ;;  %v2482_v34 = vadd.f32 %v2357_v62, %v1063_v17 }
 0x146   : > { %v2073_v23 = vpop.eup %2072  ;;  %v1813_v29 = vpop.f32.mrb[39].mxu0  ;;  %v1711_v8 = vpack.c.bf16 %v1313_v15, %v1313_v15  ;;  %v985_v14 = vadd.f32 %v2432_v12, %v1811_v63  ;;  %v1657_v16 = vmul.f32 -1.442695, %v2476_v27 }
 0x147   : > { %v2478_v30 = vpop.f32.mrb[39].mxu1  ;;  %v2075_v36 = vpop.eup %2074  ;;  %v1314_v33 = vmul.f32 %v2073_v23, %v2397_v51  ;;  %1476 = vst.msk [vmem:[%s2440_s28 + $0x18] sm:$0xf] %vm1469_vm0, %v1713_v26  ;;  %v1714_v48 = vpack.c.bf16 %v1316_v44, %v1316_v44  ;;  %v1814_v41 = vadd.f32 %v1813_v29, %v1812_v21  ;;  %v1658_v52 = vmul.f32 -1.442695, %v2482_v34 }
 0x148   : > { %v2077_v39 = vpop.eup %2076  ;;  %v1222_v40 = vadd.f32 1.0, %v2075_v36  ;;  %1474 = vst.msk [vmem:[%s2440_s28 + $0x10] sm:$0xf] %vm1469_vm0, %v1711_v8  ;;  %v1064_v51 = vmul.f32 %v2352_v58, %v985_v14 }
 0x149   : > { %v2079_v45 = vpop.eup %2078  ;;  %v1712_v46 = vpack.c.bf16 %v1314_v33, %v1314_v33  ;;  %v1225_v47 = vadd.f32 1.0, %v2077_v39  ;;  %1477 = vst.msk [vmem:[%s2440_s28 + $0x1c] sm:$0xf] %vm1469_vm0, %v1714_v48  ;;  %v988_v50 = vadd.f32 %v2447_v32, %v1814_v41  ;;  %v1815_v54 = vpop.f32.mrb[40].mxu0 }
 0x14a   : > { %2090 = vrcp.f32 %v1222_v40  ;;  %v1227_v12 = vadd.f32 1.0, %v2079_v45  ;;  %v2081_v42 = vpop.eup %2080  ;;  %v2498_v53 = vadd.f32 %v2357_v62, %v1064_v51  ;;  %v1917_v56 = vpop.f32.mrb[40].mxu1 }
 0x14b   : > { %1475 = vst.msk [vmem:[%s2440_s28 + $0x14] sm:$0xf] %vm1469_vm0, %v1712_v46  ;;  %2092 = vrcp.f32 %v1225_v47  ;;  %v1226_v20 = vadd.f32 1.0, %v2081_v42  ;;  %v1065_v59 = vmul.f32 %v2352_v58, %v988_v50  ;;  %v1017_v61 = vadd.f32 %v1917_v56, %v2337_v25  ;;  %v1816_v0 = vpop.f32.mrb[41].mxu0  ;;  %v1008_v32 = vpop.f32.mrb[41].mxu1 }
 0x14c   : > { %v2083_v57 = vpop.eup %2082  ;;  %2094 = vrcp.f32 %v1227_v12  ;;  %v1659_v3 = vmul.f32 -1.442695, %v2498_v53  ;;  %v1817_v5 = vadd.f32 %v1816_v0, %v1815_v54  ;;  %v1818_v6 = vpop.f32.mrb[42].mxu0  ;;  %v1009_v48 = vadd.f32 %v2333_v13, %v1008_v32 }
 0x14d   : > { %v2085_v60 = vpop.eup %2084  ;;  %v1319_v2 = vmul.f32 %v2083_v57, %v2404_v18  ;;  %2096 = vpow2.f32 %v1657_v16  ;;  %v1918_v11 = vpop.f32.mrb[42].mxu1  ;;  %v2506_v63 = vadd.f32 %v2357_v62, %v1065_v59  ;;  %v1072_v25 = vmul.f32 %v2352_v58, %v1017_v61 }
 0x14e   : > { %v2087_v15 = vpop.eup %2086  ;;  %v1317_v17 = vmul.f32 %v2085_v60, %v2409_v24  ;;  %2098 = vrcp.f32 %v1226_v20  ;;  %v1819_v21 = vpop.f32.mrb[43].mxu0  ;;  %v993_v29 = vadd.f32 %v1817_v5, %v2468_v9  ;;  %v1070_v46 = vmul.f32 %v2352_v58, %v1009_v48 }
 0x14f   : > { %v1011_v23 = vpop.f32.mrb[43].mxu1  ;;  %v2089_v18 = vpop.eup %2088  ;;  %v1717_v26 = vpack.c.bf16 %v1319_v2, %v1319_v2  ;;  %v1320_v44 = vmul.f32 %v2087_v15, %v2413_v28  ;;  %2100 = vpow2.f32 %v1658_v52  ;;  %v1660_v24 = vmul.f32 -1.442695, %v2506_v63 }
 0x150   : > { %v1715_v36 = vpack.c.bf16 %v1317_v17, %v1317_v17  ;;  %v1228_v8 = vadd.f32 1.0, %v2089_v18  ;;  %2102 = vpow2.f32 %v1659_v3  ;;  %v2515_v14 = vadd.f32 %v2357_v62, %v1072_v25 }
 0x151   : > { %1480 = vst.msk [vmem:[%s2440_s28 + $0x28] sm:$0xf] %vm1469_vm0, %v1717_v26  ;;  %v1718_v33 = vpack.c.bf16 %v1320_v44, %v1320_v44  ;;  %v1066_v39 = vmul.f32 %v2352_v58, %v993_v29  ;;  %v1020_v28 = vadd.f32 %v1918_v11, %v2339_v31  ;;  %v1820_v9 = vadd.f32 %v1819_v21, %v1818_v6  ;;  %v1821_v47 = vpop.f32.mrb[44].mxu0  ;;  %v1921_v13 = vpop.f32.mrb[44].mxu1 }
 0x152   : > { %1478 = vst.msk [vmem:[%s2440_s28 + $0x20] sm:$0xf] %vm1469_vm0, %v1715_v36  ;;  %2104 = vrcp.f32 %v1228_v8  ;;  %v1012_v40 = vadd.f32 %v2335_v19, %v1011_v23  ;;  %v1667_v41 = vmul.f32 -1.442695, %v2515_v14  ;;  %v1033_v19 = vadd.f32 %v1921_v13, %v2345_v49  ;;  %v1822_v50 = vpop.f32.mrb[45].mxu0  ;;  %v1024_v42 = vpop.f32.mrb[45].mxu1 }
 0x153   : > { %1481 = vst.msk [vmem:[%s2440_s28 + $0x2c] sm:$0xf] %vm1469_vm0, %v1718_v33  ;;  %2106 = vpow2.f32 %v1660_v24  ;;  %v2527_v45 = vadd.f32 %v2357_v62, %v1066_v39  ;;  %v1073_v51 = vmul.f32 %v2352_v58, %v1020_v28  ;;  %v996_v31 = vadd.f32 %v1820_v9, %v2478_v30  ;;  %v1824_v20 = vpop.f32.mrb[46].mxu0  ;;  %v1922_v59 = vpop.f32.mrb[46].mxu1 }
 0x154   : > { %v2091_v16 = vpop.eup %2090  ;;  %v1071_v12 = vmul.f32 %v2352_v58, %v1012_v40  ;;  %2108 = vpow2.f32 %v1667_v41  ;;  %v2537_v57 = vadd.f32 %v2357_v62, %v1070_v46  ;;  %v1027_v60 = vpop.f32.mrb[47].mxu1  ;;  %v1076_v36 = vmul.f32 %v2352_v58, %v1033_v19 }
 0x155   : > { %v2093_v52 = vpop.eup %2092  ;;  %v1318_v54 = vmul.f32 %v2091_v16, %v2419_v38  ;;  %v1661_v56 = vmul.f32 -1.442695, %v2527_v45  ;;  %v2541_v0 = vadd.f32 %v2357_v62, %v1073_v51  ;;  %v1067_v49 = vmul.f32 %v2352_v58, %v996_v31  ;;  %v1825_v38 = vpop.f32.mrb[47].mxu0 }
 0x156   : > { %v2095_v61 = vpop.eup %2094  ;;  %v1321_v30 = vmul.f32 %v2093_v52, %v2426_v4  ;;  %v2545_v32 = vadd.f32 %v2357_v62, %v1071_v12  ;;  %v1665_v6 = vmul.f32 -1.442695, %v2537_v57  ;;  %v1823_v33 = vadd.f32 %v1822_v50, %v1821_v47 }
 0x157   : > { %v2097_v2 = vpop.eup %2096  ;;  %v1716_v3 = vpack.c.bf16 %v1318_v54, %v1318_v54  ;;  %v1323_v5 = vmul.f32 %v2095_v61, %v2429_v7  ;;  %2110 = vpow2.f32 %v1661_v56  ;;  %v1668_v17 = vmul.f32 -1.442695, %v2541_v0 }
 0x158   : > { %v2099_v4 = vpop.eup %2098  ;;  %v1719_v11 = vpack.c.bf16 %v1321_v30, %v1321_v30  ;;  %v1229_v15 = vadd.f32 1.0, %v2097_v2  ;;  %v2551_v25 = vadd.f32 %v2357_v62, %v1067_v49  ;;  %2112 = vpow2.f32 %v1665_v6 }
 0x159   : > { %v2101_v21 = vpop.eup %2100  ;;  %1479 = vst.msk [vmem:[%s2440_s28 + $0x24] sm:$0xf] %vm1469_vm0, %v1716_v3  ;;  %v1721_v23 = vpack.c.bf16 %v1323_v5, %v1323_v5  ;;  %v1322_v18 = vmul.f32 %v2099_v4, %v2445_v10  ;;  %v1666_v7 = vmul.f32 -1.442695, %v2545_v32  ;;  %v2564_v39 = vadd.f32 %v2357_v62, %v1076_v36 }
 0x15a   : > { %v2103_v26 = vpop.eup %2102  ;;  %1482 = vst.msk [vmem:[%s2440_s28 + $0x30] sm:$0xf] %vm1469_vm0, %v1719_v11  ;;  %2114 = vrcp.f32 %v1229_v15  ;;  %v1230_v44 = vadd.f32 1.0, %v2101_v21  ;;  %v1662_v29 = vmul.f32 -1.442695, %v2551_v25  ;;  %v1025_v48 = vadd.f32 %v2341_v37, %v1024_v42 }
 0x15b   : > { %1484 = vst.msk [vmem:[%s2440_s28 + $0x38] sm:$0xf] %vm1469_vm0, %v1721_v23  ;;  %v1720_v8 = vpack.c.bf16 %v1322_v18, %v1322_v18  ;;  %v1231_v24 = vadd.f32 1.0, %v2103_v26  ;;  %2116 = vpow2.f32 %v1668_v17  ;;  %v1036_v28 = vadd.f32 %v1922_v59, %v2347_v55 }
 0x15c   : > { %v2105_v10 = vpop.eup %2104  ;;  %2118 = vrcp.f32 %v1230_v44  ;;  %v1001_v41 = vadd.f32 %v2464_v1, %v1823_v33  ;;  %v1826_v46 = vadd.f32 %v1825_v38, %v1824_v20  ;;  %v1671_v13 = vmul.f32 -1.442695, %v2564_v39 }
 0x15d   : > { %v2107_v9 = vpop.eup %2106  ;;  %v1324_v40 = vmul.f32 %v2105_v10, %v2451_v35  ;;  %1483 = vst.msk [vmem:[%s2440_s28 + $0x34] sm:$0xf] %vm1469_vm0, %v1720_v8  ;;  %2120 = vrcp.f32 %v1231_v24  ;;  %v1074_v16 = vmul.f32 %v2352_v58, %v1025_v48  ;;  %v1077_v35 = vmul.f32 %v2352_v58, %v1036_v28 }
 0x15e   : > { %v1232_v47 = vadd.f32 1.0, %v2107_v9  ;;  %2122 = vpow2.f32 %v1662_v29  ;;  %v2109_v51 = vpop.eup %2108  ;;  %v1068_v55 = vmul.f32 %v2352_v58, %v1001_v41  ;;  %v1004_v1 = vadd.f32 %v2472_v22, %v1826_v46 }
 0x15f   : > { %v1722_v37 = vpack.c.bf16 %v1324_v40, %v1324_v40  ;;  %2124 = vpow2.f32 %v1666_v7  ;;  %v1239_v31 = vadd.f32 1.0, %v2109_v51  ;;  %v2577_v12 = vadd.f32 %v2357_v62, %v1074_v16 }
 0x160   : > { %2126 = vrcp.f32 %v1232_v47  ;;  %v2583_v50 = vadd.f32 %v2357_v62, %v1068_v55  ;;  %v2586_v42 = vadd.f32 %v2357_v62, %v1077_v35  ;;  %v1028_v52 = vadd.f32 %v2343_v43, %v1027_v60 }
 0x161   : > { %v2111_v19 = vpop.eup %2110  ;;  %1485 = vst.msk [vmem:[%s2440_s28 + $0x3c] sm:$0xf] %vm1469_vm0, %v1722_v37  ;;  %2128 = vpow2.f32 %v1671_v13  ;;  %v1069_v56 = vmul.f32 %v2352_v58, %v1004_v1  ;;  %v1669_v22 = vmul.f32 -1.442695, %v2577_v12 }
 0x162   : > { %2130 = vrcp.f32 %v1239_v31  ;;  %v1233_v54 = vadd.f32 1.0, %v2111_v19  ;;  %v2113_v20 = vpop.eup %2112  ;;  %v1663_v59 = vmul.f32 -1.442695, %v2583_v50  ;;  %v1075_v61 = vmul.f32 %v2352_v58, %v1028_v52 }
 0x163   : > { %v1237_v49 = vadd.f32 1.0, %v2113_v20  ;;  %v2594_v38 = vadd.f32 %v2357_v62, %v1069_v56  ;;  %v1672_v60 = vmul.f32 -1.442695, %v2586_v42 }
 0x164   : > { %v2115_v30 = vpop.eup %2114  ;;  %2132 = vrcp.f32 %v1233_v54  ;;  %v2599_v3 = vadd.f32 %v2357_v62, %v1075_v61 }
 0x165   : > { %v2117_v2 = vpop.eup %2116  ;;  %v1325_v43 = vmul.f32 %v2115_v30, %v2476_v27  ;;  %2134 = vpow2.f32 %v1663_v59  ;;  %v1664_v58 = vmul.f32 -1.442695, %v2594_v38 }
 0x166   : > { %v2119_v5 = vpop.eup %2118  ;;  %2136 = vrcp.f32 %v1237_v49  ;;  %v1240_v6 = vadd.f32 1.0, %v2117_v2  ;;  %v1670_v18 = vmul.f32 -1.442695, %v2599_v3 }
 0x167   : > { %v2121_v4 = vpop.eup %2120  ;;  %v1723_v11 = vpack.c.bf16 %v1325_v43, %v1325_v43  ;;  %v1326_v15 = vmul.f32 %v2119_v5, %v2482_v34  ;;  %2138 = vpow2.f32 %v1669_v22 }
 0x168   : > { %v2123_v17 = vpop.eup %2122  ;;  %v1327_v27 = vmul.f32 %v2121_v4, %v2498_v53  ;;  %2140 = vrcp.f32 %v1240_v6 }
 0x169   : > { %v2125_v21 = vpop.eup %2124  ;;  %1486 = vst.msk [vmem:[%s2440_s28 + $0x40] sm:$0xf] %vm1469_vm0, %v1723_v11  ;;  %v1724_v62 = vpack.c.bf16 %v1326_v15, %v1326_v15  ;;  %v1234_v23 = vadd.f32 1.0, %v2123_v17  ;;  %2142 = vpow2.f32 %v1672_v60 }
 0x16a   : > { %v2127_v7 = vpop.eup %2126  ;;  %v1725_v26 = vpack.c.bf16 %v1327_v27, %v1327_v27  ;;  %v1238_v44 = vadd.f32 1.0, %v2125_v21  ;;  %2144 = vpow2.f32 %v1664_v58 }
 0x16b   : > { %v2129_v34 = vpop.eup %2128  ;;  %1487 = vst.msk [vmem:[%s2440_s28 + $0x44] sm:$0xf] %vm1469_vm0, %v1724_v62  ;;  %v1328_v53 = vmul.f32 %v2127_v7, %v2506_v63  ;;  %2146 = vrcp.f32 %v1234_v23 }
 0x16c   : > { %v2131_v29 = vpop.eup %2130  ;;  %1488 = vst.msk [vmem:[%s2440_s28 + $0x48] sm:$0xf] %vm1469_vm0, %v1725_v26  ;;  %2148 = vrcp.f32 %v1238_v44  ;;  %v1243_v36 = vadd.f32 1.0, %v2129_v34 }
 0x16d   : > { %v1726_v8 = vpack.c.bf16 %v1328_v53, %v1328_v53  ;;  %v1335_v24 = vmul.f32 %v2131_v29, %v2515_v14  ;;  %2150 = vpow2.f32 %v1670_v18 }
 0x16e   : > { %v2133_v33 = vpop.eup %2132  ;;  %2152 = vrcp.f32 %v1243_v36 }
 0x16f   : > { %v2135_v10 = vpop.eup %2134  ;;  %1489 = vst.msk [vmem:[%s2440_s28 + $0x4c] sm:$0xf] %vm1469_vm0, %v1726_v8  ;;  %v1733_v48 = vpack.c.bf16 %v1335_v24, %v1335_v24  ;;  %v1329_v63 = vmul.f32 %v2133_v33, %v2527_v45 }
 0x170   : > { %v2137_v28 = vpop.eup %2136  ;;  %v1235_v9 = vadd.f32 1.0, %v2135_v10 }
 0x171   : > { %v2139_v40 = vpop.eup %2138  ;;  %1496 = vst.msk [vmem:[%s2440_s28 + $0x68] sm:$0xf] %vm1469_vm0, %v1733_v48  ;;  %v1727_v41 = vpack.c.bf16 %v1329_v63, %v1329_v63  ;;  %v1333_v46 = vmul.f32 %v2137_v28, %v2537_v57 }
 0x172   : > { %v2141_v14 = vpop.eup %2140  ;;  %2154 = vrcp.f32 %v1235_v9  ;;  %v1241_v47 = vadd.f32 1.0, %v2139_v40 }
 0x173   : > { %v2143_v13 = vpop.eup %2142  ;;  %1490 = vst.msk [vmem:[%s2440_s28 + $0x50] sm:$0xf] %vm1469_vm0, %v1727_v41  ;;  %v1731_v16 = vpack.c.bf16 %v1333_v46, %v1333_v46  ;;  %v1336_v51 = vmul.f32 %v2141_v14, %v2541_v0 }
 0x174   : > { %v2145_v45 = vpop.eup %2144  ;;  %2156 = vrcp.f32 %v1241_v47  ;;  %v1244_v37 = vadd.f32 1.0, %v2143_v13 }
 0x175   : > { %v2147_v55 = vpop.eup %2146  ;;  %1494 = vst.msk [vmem:[%s2440_s28 + $0x60] sm:$0xf] %vm1469_vm0, %v1731_v16  ;;  %v1734_v35 = vpack.c.bf16 %v1336_v51, %v1336_v51  ;;  %v1236_v57 = vadd.f32 1.0, %v2145_v45 }
 0x176   : > { %v2149_v31 = vpop.eup %2148  ;;  %v1330_v1 = vmul.f32 %v2147_v55, %v2551_v25  ;;  %2158 = vrcp.f32 %v1244_v37 }
 0x177   : > { %v2151_v19 = vpop.eup %2150  ;;  %1497 = vst.msk [vmem:[%s2440_s28 + $0x6c] sm:$0xf] %vm1469_vm0, %v1734_v35  ;;  %v1334_v0 = vmul.f32 %v2149_v31, %v2545_v32  ;;  %2160 = vrcp.f32 %v1236_v57 }
 0x178   : > { %v2153_v52 = vpop.eup %2152  ;;  %v1728_v54 = vpack.c.bf16 %v1330_v1, %v1330_v1  ;;  %v1242_v56 = vadd.f32 1.0, %v2151_v19 }
 0x179   : > { %v1732_v20 = vpack.c.bf16 %v1334_v0, %v1334_v0  ;;  %v1339_v59 = vmul.f32 %v2153_v52, %v2564_v39 }
 0x17a   : > { %1491 = vst.msk [vmem:[%s2440_s28 + $0x54] sm:$0xf] %vm1469_vm0, %v1728_v54  ;;  %2162 = vrcp.f32 %v1242_v56 }
 0x17b   : > { %1495 = vst.msk [vmem:[%s2440_s28 + $0x64] sm:$0xf] %vm1469_vm0, %v1732_v20  ;;  %v1737_v25 = vpack.c.bf16 %v1339_v59, %v1339_v59 }
 0x17c   : > { %v2155_v22 = vpop.eup %2154 }
 0x17d   : > { %1500 = vst.msk [vmem:[%s2440_s28 + $0x78] sm:$0xf] %vm1469_vm0, %v1737_v25  ;;  %v1331_v32 = vmul.f32 %v2155_v22, %v2583_v50 }
 0x17e   : > { %v2157_v61 = vpop.eup %2156 }
 0x17f   : > { %v1729_v30 = vpack.c.bf16 %v1331_v32, %v1331_v32  ;;  %v1337_v49 = vmul.f32 %v2157_v61, %v2577_v12 }
 0x180   : > { %v2159_v39 = vpop.eup %2158 }
 0x181   : > { %v2161_v2 = vpop.eup %2160  ;;  %1492 = vst.msk [vmem:[%s2440_s28 + $0x58] sm:$0xf] %vm1469_vm0, %v1729_v30  ;;  %v1735_v43 = vpack.c.bf16 %v1337_v49, %v1337_v49  ;;  %v1340_v60 = vmul.f32 %v2159_v39, %v2586_v42 }
 0x182   : > { %v1332_v5 = vmul.f32 %v2161_v2, %v2594_v38 }
 0x183   : > { %1498 = vst.msk [vmem:[%s2440_s28 + $0x70] sm:$0xf] %vm1469_vm0, %v1735_v43  ;;  %v1738_v6 = vpack.c.bf16 %v1340_v60, %v1340_v60 }
 0x184   : > { %v2163_v58 = vpop.eup %2162  ;;  %v1730_v50 = vpack.c.bf16 %v1332_v5, %v1332_v5 }
 0x185   : > { %1501 = vst.msk [vmem:[%s2440_s28 + $0x7c] sm:$0xf] %vm1469_vm0, %v1738_v6  ;;  %v1338_v4 = vmul.f32 %v2163_v58, %v2599_v3 }
 0x186   : > { %1493 = vst.msk [vmem:[%s2440_s28 + $0x5c] sm:$0xf] %vm1469_vm0, %v1730_v50 }
 0x187   : > { %v1736_v12 = vpack.c.bf16 %v1338_v4, %v1338_v4 }
 0x189   : > { %1499 = vst.msk [vmem:[%s2440_s28 + $0x74] sm:$0xf] %vm1469_vm0, %v1736_v12 }
 0x18a PF: > { %s14_s15 = sadd.s32 1, %s2170_s15  }
 0x18b   : > { %p11_p4 = scmp.ge.s32.totalorder %s14_s15, 5  }
 0x18d   :  { %13 = sbr.rel (!%p11_p4) target bundleno = 1 (0x1), region = 66 }

</bundles_post_ra>
